<compile_context>
chip_gen: v7x
topology: tpu7x:2x2x1
jax: 0.10.0
libtpu: 0.0.40
codegen_flags: <defaults>
</compile_context>

<pallas_src>
import functools

import jax
import jax.numpy as jnp
from jax import lax
from jax.experimental import pallas as pl
from jax.experimental.pallas import tpu as pltpu


# ----------------------------------------------------------------------------
# Fused kernel: entire DecoupledHead forward for one batch element.
# ----------------------------------------------------------------------------
def _decoupled_head_kernel(*refs, H, W, n_cls, n_reg):
    HW = H * W
    n_layers = n_cls + n_reg
    x_ref = refs[0]                                  # (1, C, HW) bf16
    mask_ref = refs[1]                               # (9, 1, HW) f32 {0,1} tap-validity
    layer_refs = refs[2:2 + 3 * n_layers]            # (w, scale, bias) per layer
    cls_out_ref = refs[2 + 3 * n_layers]
    reg_out_ref = refs[3 + 3 * n_layers]
    acol_ref = refs[4 + 3 * n_layers]                # VMEM scratch (9*cin_max, HW) bf16

    def build_acol(a_f32):
        """im2col in channel-major layout.

        acol[t*cin + ci, p] = a[ci, p + off_t] where off_t = (dy-1)*W + (dx-1),
        zero when the source pixel is outside the image (SAME zero padding).
        All stores are at sublane-aligned offsets (cin multiple of 8/16).
        """
        cin = a_f32.shape[0]
        for dy in range(3):
            for dx in range(3):
                t = dy * 3 + dx
                off = (dy - 1) * W + (dx - 1)
                if off == 0:
                    tap = a_f32                      # center tap: no shift, always valid
                else:
                    # out[:, p] = a[:, (p + off) % HW]; edge wrap zeroed by the mask.
                    tap = pltpu.roll(a_f32, shift=(-off) % HW, axis=1)
                    tap = tap * mask_ref[t]          # (1, HW) broadcast over sublanes
                acol_ref[t * cin:(t + 1) * cin, :] = tap.astype(jnp.bfloat16)
        return 9 * cin

    def conv_from_acol(k_rows, w_ref, scale_ref, bias_ref):
        """One 3x3 conv as a single MXU dot (K = 9*cin) + folded BN + SiLU."""
        y = lax.dot_general(
            w_ref[...], acol_ref[0:k_rows, :],
            dimension_numbers=(((1,), (0,)), ((), ())),
            preferred_element_type=jnp.float32)      # (cout, HW) f32, MXU accumulation
        y = y * scale_ref[...] + bias_ref[...]       # folded BN (f32, lane-dense)
        return y * jax.nn.sigmoid(y)                 # SiLU (f32; v5e has no bf16 VPU/EUP)

    layers = [tuple(layer_refs[3 * i:3 * i + 3]) for i in range(n_layers)]
    cls_layers, reg_layers = layers[:n_cls], layers[n_cls:]

    # Layer 0 of both stacks shares the same input -> build the x im2col once.
    x_f32 = x_ref[0].astype(jnp.float32)             # (C, HW)
    k0 = build_acol(x_f32)
    cls_y = conv_from_acol(k0, *cls_layers[0])
    reg_y = conv_from_acol(k0, *reg_layers[0])       # must run before acol is rebuilt

    def continue_stack(y, rest):
        for (w_r, s_r, b_r) in rest:
            k = build_acol(y)                        # y is f32; cast to bf16 at store
            y = conv_from_acol(k, w_r, s_r, b_r)
        return y

    cls_y = continue_stack(cls_y, cls_layers[1:])
    cls_out_ref[0] = cls_y.astype(cls_out_ref.dtype)  # (cls_cout, HW): dense NCHW store
    reg_y = continue_stack(reg_y, reg_layers[1:])
    reg_out_ref[0] = reg_y.astype(reg_out_ref.dtype)  # (reg_cout, HW): dense NCHW store


# ----------------------------------------------------------------------------
# Wrapper: NCHW in -> (cls_feats, reg_feats) NCHW out, one pallas_call.
# ----------------------------------------------------------------------------
def decoupled_head_forward(params, x_nchw):
    B, C, H, W = x_nchw.shape
    hw = H * W
    n_cls, n_reg = len(params["cls"]), len(params["reg"])
    assert n_cls >= 1 and n_reg >= 1
    all_layers = list(params["cls"]) + list(params["reg"])
    cls_cout = int(params["cls"][-1]["w"].shape[-1])
    reg_cout = int(params["reg"][-1]["w"].shape[-1])
    cin_max = max(int(p["w"].shape[2]) for p in all_layers)

    # bf16 input DMA: the kernel feeds bf16 to the MXU anyway, so casting in
    # the wrapper halves the input HBM read with no precision change.
    x_flat = x_nchw.reshape(B, C, hw).astype(jnp.bfloat16)   # contiguous -> free reshape

    # Tap-validity masks (zero "SAME" halo), precomputed once: (9, 1, hw) f32 {0,1}.
    yy = jnp.arange(H).reshape(H, 1)
    xx = jnp.arange(W).reshape(1, W)
    rows = []
    for dy in range(3):
        for dx in range(3):
            oy, ox = dy - 1, dx - 1
            valid = ((yy + oy >= 0) & (yy + oy < H) &
                     (xx + ox >= 0) & (xx + ox < W))          # (H, W) bool
            rows.append(valid.reshape(1, hw))
    tap_masks = jnp.stack(rows, axis=0).astype(jnp.float32)   # (9, 1, hw)

    inputs = [x_flat, tap_masks]
    in_specs = [pl.BlockSpec((1, C, hw), lambda i: (i, 0, 0)),
                pl.BlockSpec((9, 1, hw), lambda i: (0, 0, 0))]
    for p in all_layers:
        w = p["w"]                                            # (3, 3, cin, cout) HWIO f32
        cin, cout = int(w.shape[2]), int(w.shape[3])
        # (cout, 9*cin) with K index = (dy*3 + dx)*cin + ci, matching the im2col rows.
        w2 = jnp.transpose(w, (3, 0, 1, 2)).reshape(cout, 9 * cin).astype(jnp.bfloat16)
        inputs.append(w2)
        inputs.append(p["scale"].reshape(cout, 1).astype(jnp.float32))
        inputs.append(p["bias"].reshape(cout, 1).astype(jnp.float32))
        in_specs.append(pl.BlockSpec((cout, 9 * cin), lambda i: (0, 0)))
        in_specs.append(pl.BlockSpec((cout, 1), lambda i: (0, 0)))
        in_specs.append(pl.BlockSpec((cout, 1), lambda i: (0, 0)))

    kernel = functools.partial(_decoupled_head_kernel, H=H, W=W,
                               n_cls=n_cls, n_reg=n_reg)

    cls_flat, reg_flat = pl.pallas_call(
        kernel,
        out_shape=(jax.ShapeDtypeStruct((B, cls_cout, hw), x_nchw.dtype),
                   jax.ShapeDtypeStruct((B, reg_cout, hw), x_nchw.dtype)),
        grid=(B,),
        in_specs=in_specs,
        out_specs=(pl.BlockSpec((1, cls_cout, hw), lambda i: (i, 0, 0)),
                   pl.BlockSpec((1, reg_cout, hw), lambda i: (i, 0, 0))),
        scratch_shapes=[pltpu.VMEM((9 * cin_max, hw), jnp.bfloat16)],
        compiler_params=pltpu.CompilerParams(
            dimension_semantics=("parallel",)),
    )(*inputs)

    return (cls_flat.reshape(B, cls_cout, H, W),
            reg_flat.reshape(B, reg_cout, H, W))


# ----------------------------------------------------------------------------
# Parameter construction (deterministic, synthetic), BN folded for eval mode.
# ----------------------------------------------------------------------------
def make_conv_params(key, cin, cout, eps=1e-5):
    k_w, k_g, k_b, k_m, k_v = jax.random.split(key, 5)
    w = 0.05 * jax.random.normal(k_w, (3, 3, cin, cout), jnp.float32)
    gamma = 1.0 + 0.1 * jax.random.normal(k_g, (cout,), jnp.float32)
    beta = 0.1 * jax.random.normal(k_b, (cout,), jnp.float32)
    mean = 0.1 * jax.random.normal(k_m, (cout,), jnp.float32)
    var = 1.0 + 0.1 * jnp.abs(jax.random.normal(k_v, (cout,), jnp.float32))
    scale = gamma / jnp.sqrt(var + eps)
    bias = beta - mean * scale
    return {"w": w, "scale": scale, "bias": bias}


def make_decoupled_head_params(key, cfg, in_dim, out_dim, num_classes):
    cls_out_dim = max(out_dim, num_classes)
    reg_out_dim = max(out_dim, 64)
    params = {"cls": [], "reg": []}
    for i in range(cfg["num_cls_head"]):
        key, sub = jax.random.split(key)
        cin = in_dim if i == 0 else cls_out_dim
        params["cls"].append(make_conv_params(sub, cin, cls_out_dim))
    for i in range(cfg["num_reg_head"]):
        key, sub = jax.random.split(key)
        cin = in_dim if i == 0 else reg_out_dim
        params["reg"].append(make_conv_params(sub, cin, reg_out_dim))
    return params


# ----------------------------------------------------------------------------
# Pure-JAX f32 reference (correctness check only).
# ----------------------------------------------------------------------------
def _ref_conv_bn_silu(x_nchw, w, scale, bias):
    y = lax.conv_general_dilated(
        x_nchw, w, window_strides=(1, 1), padding="SAME",
        dimension_numbers=("NCHW", "HWIO", "NCHW"),
        precision=lax.Precision.HIGHEST)
    y = y * scale.reshape(1, -1, 1, 1) + bias.reshape(1, -1, 1, 1)
    return y * jax.nn.sigmoid(y)


def _ref_forward(params, x_nchw):
    cls = x_nchw
    for p in params["cls"]:
        cls = _ref_conv_bn_silu(cls, p["w"], p["scale"], p["bias"])
    reg = x_nchw
    for p in params["reg"]:
        reg = _ref_conv_bn_silu(reg, p["w"], p["scale"], p["bias"])
    return cls, reg


if __name__ == "__main__":
    # Module-consistent config: num_cls_head=2, num_reg_head=2, SiLU, BN,
    # depthwise=False; in_dim=16, out_dim=32, num_classes=16
    # -> cls_out_dim=32, reg_out_dim=64.
    cfg = {"num_cls_head": 2, "num_reg_head": 2, "head_act": "silu",
           "head_norm": "BN", "head_depthwise": False}
    B, C, H, W = 2, 16, 16, 16
    in_dim, out_dim, num_classes = C, 32, 16

    key = jax.random.PRNGKey(0)
    k_x, k_p = jax.random.split(key)
    x = jax.random.normal(k_x, (B, C, H, W), jnp.float32)      # NCHW
    params = make_decoupled_head_params(k_p, cfg, in_dim, out_dim, num_classes)

    fwd = jax.jit(decoupled_head_forward)
    cls_out, reg_out = fwd(params, x)
    cls_out = jax.block_until_ready(cls_out)
    reg_out = jax.block_until_ready(reg_out)

    assert cls_out.shape == (B, max(out_dim, num_classes), H, W)
    assert reg_out.shape == (B, max(out_dim, 64), H, W)

    cls_ref, reg_ref = _ref_forward(params, x)
    # MXU operands are bf16 (f32 accumulation) -> tolerance scaled for bf16.
    assert jnp.max(jnp.abs(cls_out - cls_ref)) < 5e-2
    assert jnp.max(jnp.abs(reg_out - reg_ref)) < 5e-2

    print("KERNEL_OK")
</pallas_src>

<mosaic_0001>
module attributes {stable_mosaic.version = 11 : i64} {
  func.func @_decoupled_head_kernel(%arg0: i32, %arg1: memref<1x16x256xbf16, #tpu.memory_space<vmem>>, %arg2: memref<9x1x256xf32, #tpu.memory_space<vmem>>, %arg3: memref<32x144xbf16, #tpu.memory_space<vmem>>, %arg4: memref<32x1xf32, #tpu.memory_space<vmem>>, %arg5: memref<32x1xf32, #tpu.memory_space<vmem>>, %arg6: memref<32x288xbf16, #tpu.memory_space<vmem>>, %arg7: memref<32x1xf32, #tpu.memory_space<vmem>>, %arg8: memref<32x1xf32, #tpu.memory_space<vmem>>, %arg9: memref<64x144xbf16, #tpu.memory_space<vmem>>, %arg10: memref<64x1xf32, #tpu.memory_space<vmem>>, %arg11: memref<64x1xf32, #tpu.memory_space<vmem>>, %arg12: memref<64x576xbf16, #tpu.memory_space<vmem>>, %arg13: memref<64x1xf32, #tpu.memory_space<vmem>>, %arg14: memref<64x1xf32, #tpu.memory_space<vmem>>, %arg15: memref<1x32x256xf32, #tpu.memory_space<vmem>>, %arg16: memref<1x64x256xf32, #tpu.memory_space<vmem>>, %arg17: memref<576x256xbf16, #tpu.memory_space<vmem>>) attributes {dimension_semantics = [#tpu.dimension_semantics<parallel>], iteration_bounds = array<i64: 2>, scalar_prefetch = 0 : i64, scratch_operands = 1 : i64, tpu.core_type = #tpu.core_type<tc>, window_params = [{transform_indices = @transform_0, window_bounds = array<i64: 1, 16, 256>}, {pipeline_mode = #tpu.pipeline_mode<synchronous>, transform_indices = @transform_1, window_bounds = array<i64: 9, 1, 256>}, {pipeline_mode = #tpu.pipeline_mode<synchronous>, transform_indices = @transform_2, window_bounds = array<i64: 32, 144>}, {pipeline_mode = #tpu.pipeline_mode<synchronous>, transform_indices = @transform_3, window_bounds = array<i64: 32, 1>}, {pipeline_mode = #tpu.pipeline_mode<synchronous>, transform_indices = @transform_4, window_bounds = array<i64: 32, 1>}, {pipeline_mode = #tpu.pipeline_mode<synchronous>, transform_indices = @transform_5, window_bounds = array<i64: 32, 288>}, {pipeline_mode = #tpu.pipeline_mode<synchronous>, transform_indices = @transform_6, window_bounds = array<i64: 32, 1>}, {pipeline_mode = #tpu.pipeline_mode<synchronous>, transform_indices = @transform_7, window_bounds = array<i64: 32, 1>}, {pipeline_mode = #tpu.pipeline_mode<synchronous>, transform_indices = @transform_8, window_bounds = array<i64: 64, 144>}, {pipeline_mode = #tpu.pipeline_mode<synchronous>, transform_indices = @transform_9, window_bounds = array<i64: 64, 1>}, {pipeline_mode = #tpu.pipeline_mode<synchronous>, transform_indices = @transform_10, window_bounds = array<i64: 64, 1>}, {pipeline_mode = #tpu.pipeline_mode<synchronous>, transform_indices = @transform_11, window_bounds = array<i64: 64, 576>}, {pipeline_mode = #tpu.pipeline_mode<synchronous>, transform_indices = @transform_12, window_bounds = array<i64: 64, 1>}, {pipeline_mode = #tpu.pipeline_mode<synchronous>, transform_indices = @transform_13, window_bounds = array<i64: 64, 1>}, {transform_indices = @transform_14, window_bounds = array<i64: 1, 32, 256>}, {transform_indices = @transform_15, window_bounds = array<i64: 1, 64, 256>}]} {
    %c0 = arith.constant 0 : index
    %c0_0 = arith.constant 0 : index
    %c0_1 = arith.constant 0 : index
    %0 = vector.load %arg1[%c0, %c0_0, %c0_1] : memref<1x16x256xbf16, #tpu.memory_space<vmem>>, vector<1x16x256xbf16>
    %1 = vector.shape_cast %0 : vector<1x16x256xbf16> to vector<16x256xbf16>
    %2 = arith.extf %1 : vector<16x256xbf16> to vector<16x256xf32>
    %c17_i32 = arith.constant 17 : i32
    %3 = tpu.dynamic_rotate %2 by %c17_i32 dim 1 : vector<16x256xf32>, i32 -> vector<16x256xf32>
    %c0_2 = arith.constant 0 : index
    %c0_3 = arith.constant 0 : index
    %c0_4 = arith.constant 0 : index
    %4 = vector.load %arg2[%c0_2, %c0_3, %c0_4] : memref<9x1x256xf32, #tpu.memory_space<vmem>>, vector<1x1x256xf32>
    %5 = vector.shape_cast %4 : vector<1x1x256xf32> to vector<1x256xf32>
    %6 = vector.broadcast %5 : vector<1x256xf32> to vector<16x256xf32>
    %7 = arith.mulf %3, %6 : vector<16x256xf32>
    %8 = arith.truncf %7 : vector<16x256xf32> to vector<16x256xbf16>
    %c0_5 = arith.constant 0 : index
    %c0_6 = arith.constant 0 : index
    %9 = vector.load %arg17[%c0_5, %c0_6] : memref<576x256xbf16, #tpu.memory_space<vmem>>, vector<16x256xbf16>
    tpu.vector_store %arg17[%c0_5, %c0_6], %8 {strides = array<i32>} : memref<576x256xbf16, #tpu.memory_space<vmem>>, vector<16x256xbf16>,
    %c16_i32 = arith.constant 16 : i32
    %10 = tpu.dynamic_rotate %2 by %c16_i32 dim 1 : vector<16x256xf32>, i32 -> vector<16x256xf32>
    %c1 = arith.constant 1 : index
    %c0_7 = arith.constant 0 : index
    %c0_8 = arith.constant 0 : index
    %11 = vector.load %arg2[%c1, %c0_7, %c0_8] : memref<9x1x256xf32, #tpu.memory_space<vmem>>, vector<1x1x256xf32>
    %12 = vector.shape_cast %11 : vector<1x1x256xf32> to vector<1x256xf32>
    %13 = vector.broadcast %12 : vector<1x256xf32> to vector<16x256xf32>
    %14 = arith.mulf %10, %13 : vector<16x256xf32>
    %15 = arith.truncf %14 : vector<16x256xf32> to vector<16x256xbf16>
    %c16 = arith.constant 16 : index
    %c0_9 = arith.constant 0 : index
    %16 = vector.load %arg17[%c16, %c0_9] : memref<576x256xbf16, #tpu.memory_space<vmem>>, vector<16x256xbf16>
    tpu.vector_store %arg17[%c16, %c0_9], %15 {strides = array<i32>} : memref<576x256xbf16, #tpu.memory_space<vmem>>, vector<16x256xbf16>,
    %c15_i32 = arith.constant 15 : i32
    %17 = tpu.dynamic_rotate %2 by %c15_i32 dim 1 : vector<16x256xf32>, i32 -> vector<16x256xf32>
    %c2 = arith.constant 2 : index
    %c0_10 = arith.constant 0 : index
    %c0_11 = arith.constant 0 : index
    %18 = vector.load %arg2[%c2, %c0_10, %c0_11] : memref<9x1x256xf32, #tpu.memory_space<vmem>>, vector<1x1x256xf32>
    %19 = vector.shape_cast %18 : vector<1x1x256xf32> to vector<1x256xf32>
    %20 = vector.broadcast %19 : vector<1x256xf32> to vector<16x256xf32>
    %21 = arith.mulf %17, %20 : vector<16x256xf32>
    %22 = arith.truncf %21 : vector<16x256xf32> to vector<16x256xbf16>
    %c32 = arith.constant 32 : index
    %c0_12 = arith.constant 0 : index
    %23 = vector.load %arg17[%c32, %c0_12] : memref<576x256xbf16, #tpu.memory_space<vmem>>, vector<16x256xbf16>
    tpu.vector_store %arg17[%c32, %c0_12], %22 {strides = array<i32>} : memref<576x256xbf16, #tpu.memory_space<vmem>>, vector<16x256xbf16>,
    %c1_i32 = arith.constant 1 : i32
    %24 = tpu.dynamic_rotate %2 by %c1_i32 dim 1 : vector<16x256xf32>, i32 -> vector<16x256xf32>
    %c3 = arith.constant 3 : index
    %c0_13 = arith.constant 0 : index
    %c0_14 = arith.constant 0 : index
    %25 = vector.load %arg2[%c3, %c0_13, %c0_14] : memref<9x1x256xf32, #tpu.memory_space<vmem>>, vector<1x1x256xf32>
    %26 = vector.shape_cast %25 : vector<1x1x256xf32> to vector<1x256xf32>
    %27 = vector.broadcast %26 : vector<1x256xf32> to vector<16x256xf32>
    %28 = arith.mulf %24, %27 : vector<16x256xf32>
    %29 = arith.truncf %28 : vector<16x256xf32> to vector<16x256xbf16>
    %c48 = arith.constant 48 : index
    %c0_15 = arith.constant 0 : index
    %30 = vector.load %arg17[%c48, %c0_15] : memref<576x256xbf16, #tpu.memory_space<vmem>>, vector<16x256xbf16>
    tpu.vector_store %arg17[%c48, %c0_15], %29 {strides = array<i32>} : memref<576x256xbf16, #tpu.memory_space<vmem>>, vector<16x256xbf16>,
    %31 = arith.truncf %2 : vector<16x256xf32> to vector<16x256xbf16>
    %c64 = arith.constant 64 : index
    %c0_16 = arith.constant 0 : index
    %32 = vector.load %arg17[%c64, %c0_16] : memref<576x256xbf16, #tpu.memory_space<vmem>>, vector<16x256xbf16>
    tpu.vector_store %arg17[%c64, %c0_16], %31 {strides = array<i32>} : memref<576x256xbf16, #tpu.memory_space<vmem>>, vector<16x256xbf16>,
    %c255_i32 = arith.constant 255 : i32
    %33 = tpu.dynamic_rotate %2 by %c255_i32 dim 1 : vector<16x256xf32>, i32 -> vector<16x256xf32>
    %c5 = arith.constant 5 : index
    %c0_17 = arith.constant 0 : index
    %c0_18 = arith.constant 0 : index
    %34 = vector.load %arg2[%c5, %c0_17, %c0_18] : memref<9x1x256xf32, #tpu.memory_space<vmem>>, vector<1x1x256xf32>
    %35 = vector.shape_cast %34 : vector<1x1x256xf32> to vector<1x256xf32>
    %36 = vector.broadcast %35 : vector<1x256xf32> to vector<16x256xf32>
    %37 = arith.mulf %33, %36 : vector<16x256xf32>
    %38 = arith.truncf %37 : vector<16x256xf32> to vector<16x256xbf16>
    %c80 = arith.constant 80 : index
    %c0_19 = arith.constant 0 : index
    %39 = vector.load %arg17[%c80, %c0_19] : memref<576x256xbf16, #tpu.memory_space<vmem>>, vector<16x256xbf16>
    tpu.vector_store %arg17[%c80, %c0_19], %38 {strides = array<i32>} : memref<576x256xbf16, #tpu.memory_space<vmem>>, vector<16x256xbf16>,
    %c241_i32 = arith.constant 241 : i32
    %40 = tpu.dynamic_rotate %2 by %c241_i32 dim 1 : vector<16x256xf32>, i32 -> vector<16x256xf32>
    %c6 = arith.constant 6 : index
    %c0_20 = arith.constant 0 : index
    %c0_21 = arith.constant 0 : index
    %41 = vector.load %arg2[%c6, %c0_20, %c0_21] : memref<9x1x256xf32, #tpu.memory_space<vmem>>, vector<1x1x256xf32>
    %42 = vector.shape_cast %41 : vector<1x1x256xf32> to vector<1x256xf32>
    %43 = vector.broadcast %42 : vector<1x256xf32> to vector<16x256xf32>
    %44 = arith.mulf %40, %43 : vector<16x256xf32>
    %45 = arith.truncf %44 : vector<16x256xf32> to vector<16x256xbf16>
    %c96 = arith.constant 96 : index
    %c0_22 = arith.constant 0 : index
    %46 = vector.load %arg17[%c96, %c0_22] : memref<576x256xbf16, #tpu.memory_space<vmem>>, vector<16x256xbf16>
    tpu.vector_store %arg17[%c96, %c0_22], %45 {strides = array<i32>} : memref<576x256xbf16, #tpu.memory_space<vmem>>, vector<16x256xbf16>,
    %c240_i32 = arith.constant 240 : i32
    %47 = tpu.dynamic_rotate %2 by %c240_i32 dim 1 : vector<16x256xf32>, i32 -> vector<16x256xf32>
    %c7 = arith.constant 7 : index
    %c0_23 = arith.constant 0 : index
    %c0_24 = arith.constant 0 : index
    %48 = vector.load %arg2[%c7, %c0_23, %c0_24] : memref<9x1x256xf32, #tpu.memory_space<vmem>>, vector<1x1x256xf32>
    %49 = vector.shape_cast %48 : vector<1x1x256xf32> to vector<1x256xf32>
    %50 = vector.broadcast %49 : vector<1x256xf32> to vector<16x256xf32>
    %51 = arith.mulf %47, %50 : vector<16x256xf32>
    %52 = arith.truncf %51 : vector<16x256xf32> to vector<16x256xbf16>
    %c112 = arith.constant 112 : index
    %c0_25 = arith.constant 0 : index
    %53 = vector.load %arg17[%c112, %c0_25] : memref<576x256xbf16, #tpu.memory_space<vmem>>, vector<16x256xbf16>
    tpu.vector_store %arg17[%c112, %c0_25], %52 {strides = array<i32>} : memref<576x256xbf16, #tpu.memory_space<vmem>>, vector<16x256xbf16>,
    %c239_i32 = arith.constant 239 : i32
    %54 = tpu.dynamic_rotate %2 by %c239_i32 dim 1 : vector<16x256xf32>, i32 -> vector<16x256xf32>
    %c8 = arith.constant 8 : index
    %c0_26 = arith.constant 0 : index
    %c0_27 = arith.constant 0 : index
    %55 = vector.load %arg2[%c8, %c0_26, %c0_27] : memref<9x1x256xf32, #tpu.memory_space<vmem>>, vector<1x1x256xf32>
    %56 = vector.shape_cast %55 : vector<1x1x256xf32> to vector<1x256xf32>
    %57 = vector.broadcast %56 : vector<1x256xf32> to vector<16x256xf32>
    %58 = arith.mulf %54, %57 : vector<16x256xf32>
    %59 = arith.truncf %58 : vector<16x256xf32> to vector<16x256xbf16>
    %c128 = arith.constant 128 : index
    %c0_28 = arith.constant 0 : index
    %60 = vector.load %arg17[%c128, %c0_28] : memref<576x256xbf16, #tpu.memory_space<vmem>>, vector<16x256xbf16>
    tpu.vector_store %arg17[%c128, %c0_28], %59 {strides = array<i32>} : memref<576x256xbf16, #tpu.memory_space<vmem>>, vector<16x256xbf16>,
    %c0_29 = arith.constant 0 : index
    %c0_30 = arith.constant 0 : index
    %61 = vector.load %arg3[%c0_29, %c0_30] : memref<32x144xbf16, #tpu.memory_space<vmem>>, vector<32x144xbf16>
    %c0_31 = arith.constant 0 : index
    %c0_32 = arith.constant 0 : index
    %62 = vector.load %arg17[%c0_31, %c0_32] : memref<576x256xbf16, #tpu.memory_space<vmem>>, vector<144x256xbf16>
    %cst = arith.constant dense<0.000000e+00> : vector<32x256xf32>
    %63 = tpu.matmul %61, %62, %cst {dimension_numbers = #tpu.dot_dimension_numbers<[1], [0], [0], [1], [0, 0, 1, 1], [], []>} : vector<32x144xbf16>, vector<144x256xbf16>, vector<32x256xf32> -> vector<32x256xf32>
    %c0_33 = arith.constant 0 : index
    %c0_34 = arith.constant 0 : index
    %64 = vector.load %arg4[%c0_33, %c0_34] : memref<32x1xf32, #tpu.memory_space<vmem>>, vector<32x1xf32>
    %65 = vector.broadcast %64 : vector<32x1xf32> to vector<32x256xf32>
    %66 = arith.mulf %63, %65 : vector<32x256xf32>
    %c0_35 = arith.constant 0 : index
    %c0_36 = arith.constant 0 : index
    %67 = vector.load %arg5[%c0_35, %c0_36] : memref<32x1xf32, #tpu.memory_space<vmem>>, vector<32x1xf32>
    %68 = vector.broadcast %67 : vector<32x1xf32> to vector<32x256xf32>
    %69 = arith.addf %66, %68 : vector<32x256xf32>
    %70 = arith.negf %69 : vector<32x256xf32>
    %71 = math.exp %70 : vector<32x256xf32>
    %cst_37 = arith.constant 1.000000e+00 : f32
    %72 = vector.broadcast %cst_37 : f32 to vector<32x256xf32>
    %73 = arith.addf %72, %71 : vector<32x256xf32>
    %74 = arith.divf %72, %73 : vector<32x256xf32>
    %75 = arith.mulf %69, %74 : vector<32x256xf32>
    %c0_38 = arith.constant 0 : index
    %c0_39 = arith.constant 0 : index
    %76 = vector.load %arg9[%c0_38, %c0_39] : memref<64x144xbf16, #tpu.memory_space<vmem>>, vector<64x144xbf16>
    %c0_40 = arith.constant 0 : index
    %c0_41 = arith.constant 0 : index
    %77 = vector.load %arg17[%c0_40, %c0_41] : memref<576x256xbf16, #tpu.memory_space<vmem>>, vector<144x256xbf16>
    %cst_42 = arith.constant dense<0.000000e+00> : vector<64x256xf32>
    %78 = tpu.matmul %76, %77, %cst_42 {dimension_numbers = #tpu.dot_dimension_numbers<[1], [0], [0], [1], [0, 0, 1, 1], [], []>} : vector<64x144xbf16>, vector<144x256xbf16>, vector<64x256xf32> -> vector<64x256xf32>
    %c0_43 = arith.constant 0 : index
    %c0_44 = arith.constant 0 : index
    %79 = vector.load %arg10[%c0_43, %c0_44] : memref<64x1xf32, #tpu.memory_space<vmem>>, vector<64x1xf32>
    %80 = vector.broadcast %79 : vector<64x1xf32> to vector<64x256xf32>
    %81 = arith.mulf %78, %80 : vector<64x256xf32>
    %c0_45 = arith.constant 0 : index
    %c0_46 = arith.constant 0 : index
    %82 = vector.load %arg11[%c0_45, %c0_46] : memref<64x1xf32, #tpu.memory_space<vmem>>, vector<64x1xf32>
    %83 = vector.broadcast %82 : vector<64x1xf32> to vector<64x256xf32>
    %84 = arith.addf %81, %83 : vector<64x256xf32>
    %85 = arith.negf %84 : vector<64x256xf32>
    %86 = math.exp %85 : vector<64x256xf32>
    %cst_47 = arith.constant 1.000000e+00 : f32
    %87 = vector.broadcast %cst_47 : f32 to vector<64x256xf32>
    %88 = arith.addf %87, %86 : vector<64x256xf32>
    %89 = arith.divf %87, %88 : vector<64x256xf32>
    %90 = arith.mulf %84, %89 : vector<64x256xf32>
    %c17_i32_48 = arith.constant 17 : i32
    %91 = tpu.dynamic_rotate %75 by %c17_i32_48 dim 1 : vector<32x256xf32>, i32 -> vector<32x256xf32>
    %c0_49 = arith.constant 0 : index
    %c0_50 = arith.constant 0 : index
    %c0_51 = arith.constant 0 : index
    %92 = vector.load %arg2[%c0_49, %c0_50, %c0_51] : memref<9x1x256xf32, #tpu.memory_space<vmem>>, vector<1x1x256xf32>
    %93 = vector.shape_cast %92 : vector<1x1x256xf32> to vector<1x256xf32>
    %94 = vector.broadcast %93 : vector<1x256xf32> to vector<32x256xf32>
    %95 = arith.mulf %91, %94 : vector<32x256xf32>
    %96 = arith.truncf %95 : vector<32x256xf32> to vector<32x256xbf16>
    %c0_52 = arith.constant 0 : index
    %c0_53 = arith.constant 0 : index
    %97 = vector.load %arg17[%c0_52, %c0_53] : memref<576x256xbf16, #tpu.memory_space<vmem>>, vector<32x256xbf16>
    tpu.vector_store %arg17[%c0_52, %c0_53], %96 {strides = array<i32>} : memref<576x256xbf16, #tpu.memory_space<vmem>>, vector<32x256xbf16>,
    %c16_i32_54 = arith.constant 16 : i32
    %98 = tpu.dynamic_rotate %75 by %c16_i32_54 dim 1 : vector<32x256xf32>, i32 -> vector<32x256xf32>
    %c1_55 = arith.constant 1 : index
    %c0_56 = arith.constant 0 : index
    %c0_57 = arith.constant 0 : index
    %99 = vector.load %arg2[%c1_55, %c0_56, %c0_57] : memref<9x1x256xf32, #tpu.memory_space<vmem>>, vector<1x1x256xf32>
    %100 = vector.shape_cast %99 : vector<1x1x256xf32> to vector<1x256xf32>
    %101 = vector.broadcast %100 : vector<1x256xf32> to vector<32x256xf32>
    %102 = arith.mulf %98, %101 : vector<32x256xf32>
    %103 = arith.truncf %102 : vector<32x256xf32> to vector<32x256xbf16>
    %c32_58 = arith.constant 32 : index
    %c0_59 = arith.constant 0 : index
    %104 = vector.load %arg17[%c32_58, %c0_59] : memref<576x256xbf16, #tpu.memory_space<vmem>>, vector<32x256xbf16>
    tpu.vector_store %arg17[%c32_58, %c0_59], %103 {strides = array<i32>} : memref<576x256xbf16, #tpu.memory_space<vmem>>, vector<32x256xbf16>,
    %c15_i32_60 = arith.constant 15 : i32
    %105 = tpu.dynamic_rotate %75 by %c15_i32_60 dim 1 : vector<32x256xf32>, i32 -> vector<32x256xf32>
    %c2_61 = arith.constant 2 : index
    %c0_62 = arith.constant 0 : index
    %c0_63 = arith.constant 0 : index
    %106 = vector.load %arg2[%c2_61, %c0_62, %c0_63] : memref<9x1x256xf32, #tpu.memory_space<vmem>>, vector<1x1x256xf32>
    %107 = vector.shape_cast %106 : vector<1x1x256xf32> to vector<1x256xf32>
    %108 = vector.broadcast %107 : vector<1x256xf32> to vector<32x256xf32>
    %109 = arith.mulf %105, %108 : vector<32x256xf32>
    %110 = arith.truncf %109 : vector<32x256xf32> to vector<32x256xbf16>
    %c64_64 = arith.constant 64 : index
    %c0_65 = arith.constant 0 : index
    %111 = vector.load %arg17[%c64_64, %c0_65] : memref<576x256xbf16, #tpu.memory_space<vmem>>, vector<32x256xbf16>
    tpu.vector_store %arg17[%c64_64, %c0_65], %110 {strides = array<i32>} : memref<576x256xbf16, #tpu.memory_space<vmem>>, vector<32x256xbf16>,
    %c1_i32_66 = arith.constant 1 : i32
    %112 = tpu.dynamic_rotate %75 by %c1_i32_66 dim 1 : vector<32x256xf32>, i32 -> vector<32x256xf32>
    %c3_67 = arith.constant 3 : index
    %c0_68 = arith.constant 0 : index
    %c0_69 = arith.constant 0 : index
    %113 = vector.load %arg2[%c3_67, %c0_68, %c0_69] : memref<9x1x256xf32, #tpu.memory_space<vmem>>, vector<1x1x256xf32>
    %114 = vector.shape_cast %113 : vector<1x1x256xf32> to vector<1x256xf32>
    %115 = vector.broadcast %114 : vector<1x256xf32> to vector<32x256xf32>
    %116 = arith.mulf %112, %115 : vector<32x256xf32>
    %117 = arith.truncf %116 : vector<32x256xf32> to vector<32x256xbf16>
    %c96_70 = arith.constant 96 : index
    %c0_71 = arith.constant 0 : index
    %118 = vector.load %arg17[%c96_70, %c0_71] : memref<576x256xbf16, #tpu.memory_space<vmem>>, vector<32x256xbf16>
    tpu.vector_store %arg17[%c96_70, %c0_71], %117 {strides = array<i32>} : memref<576x256xbf16, #tpu.memory_space<vmem>>, vector<32x256xbf16>,
    %119 = arith.truncf %75 : vector<32x256xf32> to vector<32x256xbf16>
    %c128_72 = arith.constant 128 : index
    %c0_73 = arith.constant 0 : index
    %120 = vector.load %arg17[%c128_72, %c0_73] : memref<576x256xbf16, #tpu.memory_space<vmem>>, vector<32x256xbf16>
    tpu.vector_store %arg17[%c128_72, %c0_73], %119 {strides = array<i32>} : memref<576x256xbf16, #tpu.memory_space<vmem>>, vector<32x256xbf16>,
    %c255_i32_74 = arith.constant 255 : i32
    %121 = tpu.dynamic_rotate %75 by %c255_i32_74 dim 1 : vector<32x256xf32>, i32 -> vector<32x256xf32>
    %c5_75 = arith.constant 5 : index
    %c0_76 = arith.constant 0 : index
    %c0_77 = arith.constant 0 : index
    %122 = vector.load %arg2[%c5_75, %c0_76, %c0_77] : memref<9x1x256xf32, #tpu.memory_space<vmem>>, vector<1x1x256xf32>
    %123 = vector.shape_cast %122 : vector<1x1x256xf32> to vector<1x256xf32>
    %124 = vector.broadcast %123 : vector<1x256xf32> to vector<32x256xf32>
    %125 = arith.mulf %121, %124 : vector<32x256xf32>
    %126 = arith.truncf %125 : vector<32x256xf32> to vector<32x256xbf16>
    %c160 = arith.constant 160 : index
    %c0_78 = arith.constant 0 : index
    %127 = vector.load %arg17[%c160, %c0_78] : memref<576x256xbf16, #tpu.memory_space<vmem>>, vector<32x256xbf16>
    tpu.vector_store %arg17[%c160, %c0_78], %126 {strides = array<i32>} : memref<576x256xbf16, #tpu.memory_space<vmem>>, vector<32x256xbf16>,
    %c241_i32_79 = arith.constant 241 : i32
    %128 = tpu.dynamic_rotate %75 by %c241_i32_79 dim 1 : vector<32x256xf32>, i32 -> vector<32x256xf32>
    %c6_80 = arith.constant 6 : index
    %c0_81 = arith.constant 0 : index
    %c0_82 = arith.constant 0 : index
    %129 = vector.load %arg2[%c6_80, %c0_81, %c0_82] : memref<9x1x256xf32, #tpu.memory_space<vmem>>, vector<1x1x256xf32>
    %130 = vector.shape_cast %129 : vector<1x1x256xf32> to vector<1x256xf32>
    %131 = vector.broadcast %130 : vector<1x256xf32> to vector<32x256xf32>
    %132 = arith.mulf %128, %131 : vector<32x256xf32>
    %133 = arith.truncf %132 : vector<32x256xf32> to vector<32x256xbf16>
    %c192 = arith.constant 192 : index
    %c0_83 = arith.constant 0 : index
    %134 = vector.load %arg17[%c192, %c0_83] : memref<576x256xbf16, #tpu.memory_space<vmem>>, vector<32x256xbf16>
    tpu.vector_store %arg17[%c192, %c0_83], %133 {strides = array<i32>} : memref<576x256xbf16, #tpu.memory_space<vmem>>, vector<32x256xbf16>,
    %c240_i32_84 = arith.constant 240 : i32
    %135 = tpu.dynamic_rotate %75 by %c240_i32_84 dim 1 : vector<32x256xf32>, i32 -> vector<32x256xf32>
    %c7_85 = arith.constant 7 : index
    %c0_86 = arith.constant 0 : index
    %c0_87 = arith.constant 0 : index
    %136 = vector.load %arg2[%c7_85, %c0_86, %c0_87] : memref<9x1x256xf32, #tpu.memory_space<vmem>>, vector<1x1x256xf32>
    %137 = vector.shape_cast %136 : vector<1x1x256xf32> to vector<1x256xf32>
    %138 = vector.broadcast %137 : vector<1x256xf32> to vector<32x256xf32>
    %139 = arith.mulf %135, %138 : vector<32x256xf32>
    %140 = arith.truncf %139 : vector<32x256xf32> to vector<32x256xbf16>
    %c224 = arith.constant 224 : index
    %c0_88 = arith.constant 0 : index
    %141 = vector.load %arg17[%c224, %c0_88] : memref<576x256xbf16, #tpu.memory_space<vmem>>, vector<32x256xbf16>
    tpu.vector_store %arg17[%c224, %c0_88], %140 {strides = array<i32>} : memref<576x256xbf16, #tpu.memory_space<vmem>>, vector<32x256xbf16>,
    %c239_i32_89 = arith.constant 239 : i32
    %142 = tpu.dynamic_rotate %75 by %c239_i32_89 dim 1 : vector<32x256xf32>, i32 -> vector<32x256xf32>
    %c8_90 = arith.constant 8 : index
    %c0_91 = arith.constant 0 : index
    %c0_92 = arith.constant 0 : index
    %143 = vector.load %arg2[%c8_90, %c0_91, %c0_92] : memref<9x1x256xf32, #tpu.memory_space<vmem>>, vector<1x1x256xf32>
    %144 = vector.shape_cast %143 : vector<1x1x256xf32> to vector<1x256xf32>
    %145 = vector.broadcast %144 : vector<1x256xf32> to vector<32x256xf32>
    %146 = arith.mulf %142, %145 : vector<32x256xf32>
    %147 = arith.truncf %146 : vector<32x256xf32> to vector<32x256xbf16>
    %c256 = arith.constant 256 : index
    %c0_93 = arith.constant 0 : index
    %148 = vector.load %arg17[%c256, %c0_93] : memref<576x256xbf16, #tpu.memory_space<vmem>>, vector<32x256xbf16>
    tpu.vector_store %arg17[%c256, %c0_93], %147 {strides = array<i32>} : memref<576x256xbf16, #tpu.memory_space<vmem>>, vector<32x256xbf16>,
    %c0_94 = arith.constant 0 : index
    %c0_95 = arith.constant 0 : index
    %149 = vector.load %arg6[%c0_94, %c0_95] : memref<32x288xbf16, #tpu.memory_space<vmem>>, vector<32x288xbf16>
    %c0_96 = arith.constant 0 : index
    %c0_97 = arith.constant 0 : index
    %150 = vector.load %arg17[%c0_96, %c0_97] : memref<576x256xbf16, #tpu.memory_space<vmem>>, vector<288x256xbf16>
    %cst_98 = arith.constant dense<0.000000e+00> : vector<32x256xf32>
    %151 = tpu.matmul %149, %150, %cst_98 {dimension_numbers = #tpu.dot_dimension_numbers<[1], [0], [0], [1], [0, 0, 1, 1], [], []>} : vector<32x288xbf16>, vector<288x256xbf16>, vector<32x256xf32> -> vector<32x256xf32>
    %c0_99 = arith.constant 0 : index
    %c0_100 = arith.constant 0 : index
    %152 = vector.load %arg7[%c0_99, %c0_100] : memref<32x1xf32, #tpu.memory_space<vmem>>, vector<32x1xf32>
    %153 = vector.broadcast %152 : vector<32x1xf32> to vector<32x256xf32>
    %154 = arith.mulf %151, %153 : vector<32x256xf32>
    %c0_101 = arith.constant 0 : index
    %c0_102 = arith.constant 0 : index
    %155 = vector.load %arg8[%c0_101, %c0_102] : memref<32x1xf32, #tpu.memory_space<vmem>>, vector<32x1xf32>
    %156 = vector.broadcast %155 : vector<32x1xf32> to vector<32x256xf32>
    %157 = arith.addf %154, %156 : vector<32x256xf32>
    %158 = arith.negf %157 : vector<32x256xf32>
    %159 = math.exp %158 : vector<32x256xf32>
    %cst_103 = arith.constant 1.000000e+00 : f32
    %160 = vector.broadcast %cst_103 : f32 to vector<32x256xf32>
    %161 = arith.addf %160, %159 : vector<32x256xf32>
    %162 = arith.divf %160, %161 : vector<32x256xf32>
    %163 = arith.mulf %157, %162 : vector<32x256xf32>
    %c0_104 = arith.constant 0 : index
    %c0_105 = arith.constant 0 : index
    %c0_106 = arith.constant 0 : index
    %164 = vector.load %arg15[%c0_104, %c0_105, %c0_106] : memref<1x32x256xf32, #tpu.memory_space<vmem>>, vector<1x32x256xf32>
    %165 = vector.shape_cast %164 : vector<1x32x256xf32> to vector<32x256xf32>
    %166 = vector.shape_cast %163 : vector<32x256xf32> to vector<1x32x256xf32>
    tpu.vector_store %arg15[%c0_104, %c0_105, %c0_106], %166 {strides = array<i32>} : memref<1x32x256xf32, #tpu.memory_space<vmem>>, vector<1x32x256xf32>,
    %c17_i32_107 = arith.constant 17 : i32
    %167 = tpu.dynamic_rotate %90 by %c17_i32_107 dim 1 : vector<64x256xf32>, i32 -> vector<64x256xf32>
    %c0_108 = arith.constant 0 : index
    %c0_109 = arith.constant 0 : index
    %c0_110 = arith.constant 0 : index
    %168 = vector.load %arg2[%c0_108, %c0_109, %c0_110] : memref<9x1x256xf32, #tpu.memory_space<vmem>>, vector<1x1x256xf32>
    %169 = vector.shape_cast %168 : vector<1x1x256xf32> to vector<1x256xf32>
    %170 = vector.broadcast %169 : vector<1x256xf32> to vector<64x256xf32>
    %171 = arith.mulf %167, %170 : vector<64x256xf32>
    %172 = arith.truncf %171 : vector<64x256xf32> to vector<64x256xbf16>
    %c0_111 = arith.constant 0 : index
    %c0_112 = arith.constant 0 : index
    %173 = vector.load %arg17[%c0_111, %c0_112] : memref<576x256xbf16, #tpu.memory_space<vmem>>, vector<64x256xbf16>
    tpu.vector_store %arg17[%c0_111, %c0_112], %172 {strides = array<i32>} : memref<576x256xbf16, #tpu.memory_space<vmem>>, vector<64x256xbf16>,
    %c16_i32_113 = arith.constant 16 : i32
    %174 = tpu.dynamic_rotate %90 by %c16_i32_113 dim 1 : vector<64x256xf32>, i32 -> vector<64x256xf32>
    %c1_114 = arith.constant 1 : index
    %c0_115 = arith.constant 0 : index
    %c0_116 = arith.constant 0 : index
    %175 = vector.load %arg2[%c1_114, %c0_115, %c0_116] : memref<9x1x256xf32, #tpu.memory_space<vmem>>, vector<1x1x256xf32>
    %176 = vector.shape_cast %175 : vector<1x1x256xf32> to vector<1x256xf32>
    %177 = vector.broadcast %176 : vector<1x256xf32> to vector<64x256xf32>
    %178 = arith.mulf %174, %177 : vector<64x256xf32>
    %179 = arith.truncf %178 : vector<64x256xf32> to vector<64x256xbf16>
    %c64_117 = arith.constant 64 : index
    %c0_118 = arith.constant 0 : index
    %180 = vector.load %arg17[%c64_117, %c0_118] : memref<576x256xbf16, #tpu.memory_space<vmem>>, vector<64x256xbf16>
    tpu.vector_store %arg17[%c64_117, %c0_118], %179 {strides = array<i32>} : memref<576x256xbf16, #tpu.memory_space<vmem>>, vector<64x256xbf16>,
    %c15_i32_119 = arith.constant 15 : i32
    %181 = tpu.dynamic_rotate %90 by %c15_i32_119 dim 1 : vector<64x256xf32>, i32 -> vector<64x256xf32>
    %c2_120 = arith.constant 2 : index
    %c0_121 = arith.constant 0 : index
    %c0_122 = arith.constant 0 : index
    %182 = vector.load %arg2[%c2_120, %c0_121, %c0_122] : memref<9x1x256xf32, #tpu.memory_space<vmem>>, vector<1x1x256xf32>
    %183 = vector.shape_cast %182 : vector<1x1x256xf32> to vector<1x256xf32>
    %184 = vector.broadcast %183 : vector<1x256xf32> to vector<64x256xf32>
    %185 = arith.mulf %181, %184 : vector<64x256xf32>
    %186 = arith.truncf %185 : vector<64x256xf32> to vector<64x256xbf16>
    %c128_123 = arith.constant 128 : index
    %c0_124 = arith.constant 0 : index
    %187 = vector.load %arg17[%c128_123, %c0_124] : memref<576x256xbf16, #tpu.memory_space<vmem>>, vector<64x256xbf16>
    tpu.vector_store %arg17[%c128_123, %c0_124], %186 {strides = array<i32>} : memref<576x256xbf16, #tpu.memory_space<vmem>>, vector<64x256xbf16>,
    %c1_i32_125 = arith.constant 1 : i32
    %188 = tpu.dynamic_rotate %90 by %c1_i32_125 dim 1 : vector<64x256xf32>, i32 -> vector<64x256xf32>
    %c3_126 = arith.constant 3 : index
    %c0_127 = arith.constant 0 : index
    %c0_128 = arith.constant 0 : index
    %189 = vector.load %arg2[%c3_126, %c0_127, %c0_128] : memref<9x1x256xf32, #tpu.memory_space<vmem>>, vector<1x1x256xf32>
    %190 = vector.shape_cast %189 : vector<1x1x256xf32> to vector<1x256xf32>
    %191 = vector.broadcast %190 : vector<1x256xf32> to vector<64x256xf32>
    %192 = arith.mulf %188, %191 : vector<64x256xf32>
    %193 = arith.truncf %192 : vector<64x256xf32> to vector<64x256xbf16>
    %c192_129 = arith.constant 192 : index
    %c0_130 = arith.constant 0 : index
    %194 = vector.load %arg17[%c192_129, %c0_130] : memref<576x256xbf16, #tpu.memory_space<vmem>>, vector<64x256xbf16>
    tpu.vector_store %arg17[%c192_129, %c0_130], %193 {strides = array<i32>} : memref<576x256xbf16, #tpu.memory_space<vmem>>, vector<64x256xbf16>,
    %195 = arith.truncf %90 : vector<64x256xf32> to vector<64x256xbf16>
    %c256_131 = arith.constant 256 : index
    %c0_132 = arith.constant 0 : index
    %196 = vector.load %arg17[%c256_131, %c0_132] : memref<576x256xbf16, #tpu.memory_space<vmem>>, vector<64x256xbf16>
    tpu.vector_store %arg17[%c256_131, %c0_132], %195 {strides = array<i32>} : memref<576x256xbf16, #tpu.memory_space<vmem>>, vector<64x256xbf16>,
    %c255_i32_133 = arith.constant 255 : i32
    %197 = tpu.dynamic_rotate %90 by %c255_i32_133 dim 1 : vector<64x256xf32>, i32 -> vector<64x256xf32>
    %c5_134 = arith.constant 5 : index
    %c0_135 = arith.constant 0 : index
    %c0_136 = arith.constant 0 : index
    %198 = vector.load %arg2[%c5_134, %c0_135, %c0_136] : memref<9x1x256xf32, #tpu.memory_space<vmem>>, vector<1x1x256xf32>
    %199 = vector.shape_cast %198 : vector<1x1x256xf32> to vector<1x256xf32>
    %200 = vector.broadcast %199 : vector<1x256xf32> to vector<64x256xf32>
    %201 = arith.mulf %197, %200 : vector<64x256xf32>
    %202 = arith.truncf %201 : vector<64x256xf32> to vector<64x256xbf16>
    %c320 = arith.constant 320 : index
    %c0_137 = arith.constant 0 : index
    %203 = vector.load %arg17[%c320, %c0_137] : memref<576x256xbf16, #tpu.memory_space<vmem>>, vector<64x256xbf16>
    tpu.vector_store %arg17[%c320, %c0_137], %202 {strides = array<i32>} : memref<576x256xbf16, #tpu.memory_space<vmem>>, vector<64x256xbf16>,
    %c241_i32_138 = arith.constant 241 : i32
    %204 = tpu.dynamic_rotate %90 by %c241_i32_138 dim 1 : vector<64x256xf32>, i32 -> vector<64x256xf32>
    %c6_139 = arith.constant 6 : index
    %c0_140 = arith.constant 0 : index
    %c0_141 = arith.constant 0 : index
    %205 = vector.load %arg2[%c6_139, %c0_140, %c0_141] : memref<9x1x256xf32, #tpu.memory_space<vmem>>, vector<1x1x256xf32>
    %206 = vector.shape_cast %205 : vector<1x1x256xf32> to vector<1x256xf32>
    %207 = vector.broadcast %206 : vector<1x256xf32> to vector<64x256xf32>
    %208 = arith.mulf %204, %207 : vector<64x256xf32>
    %209 = arith.truncf %208 : vector<64x256xf32> to vector<64x256xbf16>
    %c384 = arith.constant 384 : index
    %c0_142 = arith.constant 0 : index
    %210 = vector.load %arg17[%c384, %c0_142] : memref<576x256xbf16, #tpu.memory_space<vmem>>, vector<64x256xbf16>
    tpu.vector_store %arg17[%c384, %c0_142], %209 {strides = array<i32>} : memref<576x256xbf16, #tpu.memory_space<vmem>>, vector<64x256xbf16>,
    %c240_i32_143 = arith.constant 240 : i32
    %211 = tpu.dynamic_rotate %90 by %c240_i32_143 dim 1 : vector<64x256xf32>, i32 -> vector<64x256xf32>
    %c7_144 = arith.constant 7 : index
    %c0_145 = arith.constant 0 : index
    %c0_146 = arith.constant 0 : index
    %212 = vector.load %arg2[%c7_144, %c0_145, %c0_146] : memref<9x1x256xf32, #tpu.memory_space<vmem>>, vector<1x1x256xf32>
    %213 = vector.shape_cast %212 : vector<1x1x256xf32> to vector<1x256xf32>
    %214 = vector.broadcast %213 : vector<1x256xf32> to vector<64x256xf32>
    %215 = arith.mulf %211, %214 : vector<64x256xf32>
    %216 = arith.truncf %215 : vector<64x256xf32> to vector<64x256xbf16>
    %c448 = arith.constant 448 : index
    %c0_147 = arith.constant 0 : index
    %217 = vector.load %arg17[%c448, %c0_147] : memref<576x256xbf16, #tpu.memory_space<vmem>>, vector<64x256xbf16>
    tpu.vector_store %arg17[%c448, %c0_147], %216 {strides = array<i32>} : memref<576x256xbf16, #tpu.memory_space<vmem>>, vector<64x256xbf16>,
    %c239_i32_148 = arith.constant 239 : i32
    %218 = tpu.dynamic_rotate %90 by %c239_i32_148 dim 1 : vector<64x256xf32>, i32 -> vector<64x256xf32>
    %c8_149 = arith.constant 8 : index
    %c0_150 = arith.constant 0 : index
    %c0_151 = arith.constant 0 : index
    %219 = vector.load %arg2[%c8_149, %c0_150, %c0_151] : memref<9x1x256xf32, #tpu.memory_space<vmem>>, vector<1x1x256xf32>
    %220 = vector.shape_cast %219 : vector<1x1x256xf32> to vector<1x256xf32>
    %221 = vector.broadcast %220 : vector<1x256xf32> to vector<64x256xf32>
    %222 = arith.mulf %218, %221 : vector<64x256xf32>
    %223 = arith.truncf %222 : vector<64x256xf32> to vector<64x256xbf16>
    %c512 = arith.constant 512 : index
    %c0_152 = arith.constant 0 : index
    %224 = vector.load %arg17[%c512, %c0_152] : memref<576x256xbf16, #tpu.memory_space<vmem>>, vector<64x256xbf16>
    tpu.vector_store %arg17[%c512, %c0_152], %223 {strides = array<i32>} : memref<576x256xbf16, #tpu.memory_space<vmem>>, vector<64x256xbf16>,
    %c0_153 = arith.constant 0 : index
    %c0_154 = arith.constant 0 : index
    %225 = vector.load %arg12[%c0_153, %c0_154] : memref<64x576xbf16, #tpu.memory_space<vmem>>, vector<64x576xbf16>
    %c0_155 = arith.constant 0 : index
    %c0_156 = arith.constant 0 : index
    %226 = vector.load %arg17[%c0_155, %c0_156] : memref<576x256xbf16, #tpu.memory_space<vmem>>, vector<576x256xbf16>
    %cst_157 = arith.constant dense<0.000000e+00> : vector<64x256xf32>
    %227 = tpu.matmul %225, %226, %cst_157 {dimension_numbers = #tpu.dot_dimension_numbers<[1], [0], [0], [1], [0, 0, 1, 1], [], []>} : vector<64x576xbf16>, vector<576x256xbf16>, vector<64x256xf32> -> vector<64x256xf32>
    %c0_158 = arith.constant 0 : index
    %c0_159 = arith.constant 0 : index
    %228 = vector.load %arg13[%c0_158, %c0_159] : memref<64x1xf32, #tpu.memory_space<vmem>>, vector<64x1xf32>
    %229 = vector.broadcast %228 : vector<64x1xf32> to vector<64x256xf32>
    %230 = arith.mulf %227, %229 : vector<64x256xf32>
    %c0_160 = arith.constant 0 : index
    %c0_161 = arith.constant 0 : index
    %231 = vector.load %arg14[%c0_160, %c0_161] : memref<64x1xf32, #tpu.memory_space<vmem>>, vector<64x1xf32>
    %232 = vector.broadcast %231 : vector<64x1xf32> to vector<64x256xf32>
    %233 = arith.addf %230, %232 : vector<64x256xf32>
    %234 = arith.negf %233 : vector<64x256xf32>
    %235 = math.exp %234 : vector<64x256xf32>
    %cst_162 = arith.constant 1.000000e+00 : f32
    %236 = vector.broadcast %cst_162 : f32 to vector<64x256xf32>
    %237 = arith.addf %236, %235 : vector<64x256xf32>
    %238 = arith.divf %236, %237 : vector<64x256xf32>
    %239 = arith.mulf %233, %238 : vector<64x256xf32>
    %c0_163 = arith.constant 0 : index
    %c0_164 = arith.constant 0 : index
    %c0_165 = arith.constant 0 : index
    %240 = vector.load %arg16[%c0_163, %c0_164, %c0_165] : memref<1x64x256xf32, #tpu.memory_space<vmem>>, vector<1x64x256xf32>
    %241 = vector.shape_cast %240 : vector<1x64x256xf32> to vector<64x256xf32>
    %242 = vector.shape_cast %239 : vector<64x256xf32> to vector<1x64x256xf32>
    tpu.vector_store %arg16[%c0_163, %c0_164, %c0_165], %242 {strides = array<i32>} : memref<1x64x256xf32, #tpu.memory_space<vmem>>, vector<1x64x256xf32>,
    return
  }
  func.func @transform_0(%arg0: i32) -> (i32, i32, i32) {
    %c0_i32 = arith.constant 0 : i32
    %c0_i32_0 = arith.constant 0 : i32
    %c0_i32_1 = arith.constant 0 : i32
    return %arg0, %c0_i32, %c0_i32_0 : i32, i32, i32
  }
  func.func @transform_1(%arg0: i32) -> (i32, i32, i32) {
    %c0_i32 = arith.constant 0 : i32
    %c0_i32_0 = arith.constant 0 : i32
    %c0_i32_1 = arith.constant 0 : i32
    %c0_i32_2 = arith.constant 0 : i32
    return %c0_i32, %c0_i32_0, %c0_i32_1 : i32, i32, i32
  }
  func.func @transform_2(%arg0: i32) -> (i32, i32) {
    %c0_i32 = arith.constant 0 : i32
    %c0_i32_0 = arith.constant 0 : i32
    %c0_i32_1 = arith.constant 0 : i32
    return %c0_i32, %c0_i32_0 : i32, i32
  }
  func.func @transform_3(%arg0: i32) -> (i32, i32) {
    %c0_i32 = arith.constant 0 : i32
    %c0_i32_0 = arith.constant 0 : i32
    %c0_i32_1 = arith.constant 0 : i32
    return %c0_i32, %c0_i32_0 : i32, i32
  }
  func.func @transform_4(%arg0: i32) -> (i32, i32) {
    %c0_i32 = arith.constant 0 : i32
    %c0_i32_0 = arith.constant 0 : i32
    %c0_i32_1 = arith.constant 0 : i32
    return %c0_i32, %c0_i32_0 : i32, i32
  }
  func.func @transform_5(%arg0: i32) -> (i32, i32) {
    %c0_i32 = arith.constant 0 : i32
    %c0_i32_0 = arith.constant 0 : i32
    %c0_i32_1 = arith.constant 0 : i32
    return %c0_i32, %c0_i32_0 : i32, i32
  }
  func.func @transform_6(%arg0: i32) -> (i32, i32) {
    %c0_i32 = arith.constant 0 : i32
    %c0_i32_0 = arith.constant 0 : i32
    %c0_i32_1 = arith.constant 0 : i32
    return %c0_i32, %c0_i32_0 : i32, i32
  }
  func.func @transform_7(%arg0: i32) -> (i32, i32) {
    %c0_i32 = arith.constant 0 : i32
    %c0_i32_0 = arith.constant 0 : i32
    %c0_i32_1 = arith.constant 0 : i32
    return %c0_i32, %c0_i32_0 : i32, i32
  }
  func.func @transform_8(%arg0: i32) -> (i32, i32) {
    %c0_i32 = arith.constant 0 : i32
    %c0_i32_0 = arith.constant 0 : i32
    %c0_i32_1 = arith.constant 0 : i32
    return %c0_i32, %c0_i32_0 : i32, i32
  }
  func.func @transform_9(%arg0: i32) -> (i32, i32) {
    %c0_i32 = arith.constant 0 : i32
    %c0_i32_0 = arith.constant 0 : i32
    %c0_i32_1 = arith.constant 0 : i32
    return %c0_i32, %c0_i32_0 : i32, i32
  }
  func.func @transform_10(%arg0: i32) -> (i32, i32) {
    %c0_i32 = arith.constant 0 : i32
    %c0_i32_0 = arith.constant 0 : i32
    %c0_i32_1 = arith.constant 0 : i32
    return %c0_i32, %c0_i32_0 : i32, i32
  }
  func.func @transform_11(%arg0: i32) -> (i32, i32) {
    %c0_i32 = arith.constant 0 : i32
    %c0_i32_0 = arith.constant 0 : i32
    %c0_i32_1 = arith.constant 0 : i32
    return %c0_i32, %c0_i32_0 : i32, i32
  }
  func.func @transform_12(%arg0: i32) -> (i32, i32) {
    %c0_i32 = arith.constant 0 : i32
    %c0_i32_0 = arith.constant 0 : i32
    %c0_i32_1 = arith.constant 0 : i32
    return %c0_i32, %c0_i32_0 : i32, i32
  }
  func.func @transform_13(%arg0: i32) -> (i32, i32) {
    %c0_i32 = arith.constant 0 : i32
    %c0_i32_0 = arith.constant 0 : i32
    %c0_i32_1 = arith.constant 0 : i32
    return %c0_i32, %c0_i32_0 : i32, i32
  }
  func.func @transform_14(%arg0: i32) -> (i32, i32, i32) {
    %c0_i32 = arith.constant 0 : i32
    %c0_i32_0 = arith.constant 0 : i32
    %c0_i32_1 = arith.constant 0 : i32
    return %arg0, %c0_i32, %c0_i32_0 : i32, i32, i32
  }
  func.func @transform_15(%arg0: i32) -> (i32, i32, i32) {
    %c0_i32 = arith.constant 0 : i32
    %c0_i32_0 = arith.constant 0 : i32
    %c0_i32_1 = arith.constant 0 : i32
    return %arg0, %c0_i32, %c0_i32_0 : i32, i32, i32
  }
}

</mosaic_0001>

<bundles_post_ra>
// kernel: decoupled_head_forward.1
= control target key start
LH: loop header
LB: loop body
LE: loop exit
PB: predicated region body
PF: predicated region fallthrough
CT: control target
= control target key end

     0   :  { %s4281_s18 = smov 0   ;;  %s6761_s0 = inlined_call_operand.vmem [shape: bf16[2,16,256], index: 0, kind: input, shape index: {}]   ;;  %s6762_s1 = inlined_call_operand.vmem [shape: f32[9,1,256], index: 1, kind: input, shape index: {}]   ;;  %s6763_s2 = inlined_call_operand.vmem [shape: bf16[32,144], index: 2, kind: input, shape index: {}]   ;;  %s6764_s3 = inlined_call_operand.vmem [shape: f32[32,1], index: 3, kind: input, shape index: {}]   ;;  %s6765_s4 = inlined_call_operand.vmem [shape: f32[32,1], index: 4, kind: input, shape index: {}]   ;;  %s6766_s5 = inlined_call_operand.vmem [shape: bf16[32,288], index: 5, kind: input, shape index: {}]   ;;  %s6767_s6 = inlined_call_operand.vmem [shape: f32[32,1], index: 6, kind: input, shape index: {}]   ;;  %s6768_s7 = inlined_call_operand.vmem [shape: f32[32,1], index: 7, kind: input, shape index: {}]   ;;  %s6769_s8 = inlined_call_operand.vmem [shape: bf16[64,144], index: 8, kind: input, shape index: {}]   ;;  %s6770_s9 = inlined_call_operand.vmem [shape: f32[64,1], index: 9, kind: input, shape index: {}]   ;;  %s6771_s10 = inlined_call_operand.vmem [shape: f32[64,1], index: 10, kind: input, shape index: {}]   ;;  %s6772_s11 = inlined_call_operand.vmem [shape: bf16[64,576], index: 11, kind: input, shape index: {}]   ;;  %s6773_s12 = inlined_call_operand.vmem [shape: f32[64,1], index: 12, kind: input, shape index: {}]   ;;  %s6774_s13 = inlined_call_operand.vmem [shape: f32[64,1], index: 13, kind: input, shape index: {}]   ;;  %s6775_s14 = inlined_call_operand.vmem [shape: f32[2,32,256], index: 14, kind: output, shape index: {0}]   ;;  %s6776_s15 = inlined_call_operand.vmem [shape: f32[2,64,256], index: 15, kind: output, shape index: {1}]  }
   0x1 LB: > { %s3652_s19 = sadd.s32 4294967295, %s4190_s18   ;;  %p3656_p0 = scmp.ge.s32.totalorder %s4190_s18, 1  ;;  %s4190_s18 = sphi %s4281_s18, %s26_s18  }
   0x2   : > { %p440_p1 = scmp.lt.s32.totalorder %s4190_s18, 3 }
   0x4   : > { %p441_p2 = pnand %p3656_p0, %p440_p1 }
   0x6   : > { %444 = sbr.rel (%p441_p2) target bundleno = 1217 (0x4c1), region = 76 }
   0xd   : > { %p493_p3 = scmp.lt.s32.totalorder %s3652_s19, 1  ;;  %s4192_s24 = smov 16   ;;  %v3940_v10 = vld [vmem:[%s6763_s2 + $0x4] ss:$8 sps:$4 sm:$0xff]   ;;  %vm840_vm0 = vcmask 130048   ;;  %v6787_v12 = vmov 0   ;;  %v523_v36 = vlaneseq }
   0xe   : > { %s4193_s25 = smov 17   ;;  %s4194_s26 = smov 15   ;;  %3676 = vmatprep.mubr.msk.bf16.mxu0 %vm840_vm0, %v3940_v10  ;;  %v1150_v11 = vld [vmem:[%s6770_s9 + $0x8] sm:$0xff]  ;;  %3935 = vset.pattern.permute.xlu1 %v6787_v12  ;;  %v1213_v13 = vld [vmem:[%s6771_s10] sm:$0xff]  ;;  %v1151_v15 = vld [vmem:[%s6770_s9 + $0x10] sm:$0xff]  ;;  %vm1887_vm9 = vcmask 261120  }
   0xf   : > { %s6985_s19 = smov (!%p493_p3, %s3652_s19), 1  ;;  %s6785_s27 = smov 1   ;;  %3934 = vset.pattern.permute.xlu0 %v6787_v12  ;;  %v1149_v14 = vld [vmem:[%s6770_s9] sm:$0xff]  ;;  %v1214_v16 = vld [vmem:[%s6771_s10 + $0x8] sm:$0xff]  ;;  %v1215_v17 = vld [vmem:[%s6771_s10 + $0x10] sm:$0xff]  ;;  %v533_v37 = vshrl.u32 %v523_v36, 7 }
  0x10   : > { %s3786_s20 = sshll.u32 %s6985_s19, 4  ;;  %s6783_s28 = smov 127   ;;  %v1152_v18 = vld [vmem:[%s6770_s9 + $0x18] sm:$0xff]  ;;  %v1153_v19 = vld [vmem:[%s6770_s9 + $0x20] sm:$0xff]  ;;  %v1154_v22 = vld [vmem:[%s6770_s9 + $0x28] sm:$0xff]  ;;  %v4393_v38 = vand.u32 127, %v523_v36 }
  0x11   : > { %s497_s23 = scalar_lea.vmem %s6761_s0, %s3786_s20  ;;  %s6781_s29 = smov 113   ;;  %v1216_v20 = vld [vmem:[%s6771_s10 + $0x18] sm:$0xff]  ;;  %v1217_v21 = vld [vmem:[%s6771_s10 + $0x20] sm:$0xff]  ;;  %v1155_v23 = vld [vmem:[%s6770_s9 + $0x30] sm:$0xff]  ;;  %v4395_v39 = vsub.s32 0, %v533_v37  ;;  %v4397_v40 = vsub.s32 1, %v533_v37 }
  0x12   : > { %v509_v0 = vld [vmem:[%s497_s23] sm:$0xff]  ;;  %v510_v1 = vld [vmem:[%s497_s23 + $0x8] sm:$0xff]  ;;  %s6777_s30 = smov 112   ;;  %s6779_s16 = smov 111   ;;  %v1219_v25 = vld [vmem:[%s6771_s10 + $0x30] sm:$0xff]  ;;  %vm525_vm1 = vcmp.lt.s32.totalorder %v4393_v38, 17 }
  0x13   : > { %v511_v2 = vunpack.c.l.bf16 %v509_v0  ;;  %v513_v3 = vunpack.c.l.bf16 %v510_v1  ;;  %v512_v4 = vunpack.c.h.bf16 %v509_v0  ;;  %v514_v5 = vunpack.c.h.bf16 %v510_v1  ;;  %v1218_v24 = vld [vmem:[%s6771_s10 + $0x28] sm:$0xff]  ;;  %v1156_v26 = vld [vmem:[%s6770_s9 + $0x38] sm:$0xff]  ;;  %v900_v27 = vld [vmem:[%s6764_s3] sm:$0xff]  ;;  %s6861_s20 = smov 127   ;;  %s6862_s21 = smov 113  }
  0x14   : > { %v4301_v8 = vcombine.high %v509_v0, %v510_v1  ;;  %v4305_v9 = vcombine.low %v509_v0, %v510_v1  ;;  %v1220_v28 = vld [vmem:[%s6771_s10 + $0x38] sm:$0xff]  ;;  %v901_v29 = vld [vmem:[%s6764_s3 + $0x8] sm:$0xff]  ;;  %v902_v30 = vld [vmem:[%s6764_s3 + $0x10] sm:$0xff]  ;;  %vm558_vm2 = vcmp.lt.s32.totalorder %v4393_v38, 16  ;;  %vm592_vm3 = vcmp.lt.s32.totalorder %v4393_v38, 15  ;;  %s6863_s22 = smov 112  }
  0x15   : > { %v3864_v6 = vpack.i.bf16 %v513_v3, %v511_v2  ;;  %v3869_v7 = vpack.i.bf16 %v514_v5, %v512_v4  ;;  %v932_v31 = vld [vmem:[%s6765_s4] sm:$0xff]  ;;  %v933_v32 = vld [vmem:[%s6765_s4 + $0x8] sm:$0xff]  ;;  %v903_v33 = vld [vmem:[%s6764_s3 + $0x18] sm:$0xff]  ;;  %vm626_vm4 = vcmp.lt.s32.totalorder %v4393_v38, 1  ;;  %vm672_vm5 = vcmp.lt.s32.totalorder %v4393_v38, 127 }
  0x16   : > { %v934_v34 = vld [vmem:[%s6765_s4 + $0x10] sm:$0xff]  ;;  %v935_v35 = vld [vmem:[%s6765_s4 + $0x18] sm:$0xff]  ;;  %v530_v41 = vld [vmem:[%s6762_s1] sm:$0x3]  ;;  %vm706_vm6 = vcmp.lt.s32.totalorder %v4393_v38, 113  ;;  %vm740_vm7 = vcmp.lt.s32.totalorder %v4393_v38, 112 }
  0x17   : > { %3865 = vrot.lane.b32.xlu1 %v3864_v6, %s4192_s24  ;;  %3855 = vrot.lane.b32.xlu0 %v3864_v6, %s4193_s25  ;;  %v3663_v42 = vld [vmem:[%s6762_s1 + $0x2] sm:$0x3]  ;;  %v3664_v45 = vld [vmem:[%s6762_s1 + $0x4] sm:$0x3]  ;;  %v539_v48 = vrot.slane %v530_v41, %v4397_v40  ;;  %v535_v49 = vrot.slane %v530_v41, %v4395_v39  ;;  %vm774_vm8 = vcmp.lt.s32.totalorder %v4393_v38, 111  ;;  %vm3076_vm10 = vcmask 523264  }
  0x18   : > { %v3665_v46 = vld [vmem:[%s6762_s1 + $0x6] sm:$0x3]  ;;  %v3668_v47 = vld [vmem:[%s6762_s1 + $0xa] sm:$0x3]  ;;  %v573_v50 = vrot.slane %v3663_v42, %v4397_v40  ;;  %v569_v51 = vrot.slane %v3663_v42, %v4395_v39  ;;  %v607_v52 = vrot.slane %v3664_v45, %v4397_v40  ;;  %v4423_v53 = vrot.slane %v3664_v45, %v4395_v39  ;;  %v3987_v38 = vld [vmem:[%s6766_s5 + $0x20] ss:$12 sps:$4 sm:$0xff]  }
  0x19   : > { %v4427_v56 = vrot.slane %v3665_v46, %v4397_v40  ;;  %v4430_v57 = vrot.slane %v3665_v46, %v4395_v39  ;;  %v4433_v58 = vrot.slane %v3668_v47, %v4397_v40  ;;  %v4436_v59 = vrot.slane %v3668_v47, %v4395_v39 }
  0x1b   : > { %3870 = vrot.lane.b32.xlu1 %v3869_v7, %s4192_s24  ;;  %3860 = vrot.lane.b32.xlu0 %v3869_v7, %s4193_s25 }
  0x1f   : > { %3880 = vrot.lane.b32.xlu1 %v3869_v7, %s4194_s26  ;;  %3875 = vrot.lane.b32.xlu0 %v3864_v6, %s4194_s26 }
  0x23   : > { %3890 = vrot.lane.b32.xlu1 %v3869_v7, %s6785_s27  ;;  %3885 = vrot.lane.b32.xlu0 %v3864_v6, %s6785_s27 }
  0x27   : > { %3900 = vrot.lane.b32.xlu1 %v3869_v7, %s6783_s28  ;;  %3895 = vrot.lane.b32.xlu0 %v3864_v6, %s6783_s28  ;;  %s3788_s28 = sshll.u32 %s6985_s19, 7 }
  0x28   : > { %s6705_s23 = scalar_lea.vmem %s6776_s15, %s3788_s28 }
  0x2b   : > { %3910 = vrot.lane.b32.xlu1 %v3869_v7, %s6781_s29  ;;  %3905 = vrot.lane.b32.xlu0 %v3864_v6, %s6781_s29  ;;  %s6858_s29 = smov 1  }
  0x2f   : > { %3920 = vrot.lane.b32.xlu1 %v3869_v7, %s6777_s30  ;;  %3915 = vrot.lane.b32.xlu0 %v3864_v6, %s6777_s30 }
  0x33   : > { %3930 = vrot.lane.b32.xlu1 %v3869_v7, %s6779_s16  ;;  %3925 = vrot.lane.b32.xlu0 %v3864_v6, %s6779_s16  ;;  %s3787_s16 = sshll.u32 %s6985_s19, 6 }
  0x37   : > { %1164 = vperm.xlu1 %3935, %v1150_v11   ;;  %1159 = vperm.xlu0 %3934, %v1149_v14  }
  0x3b   : > { %1223 = vperm.xlu1 %3935, %v1213_v13   ;;  %1228 = vperm.xlu0 %3934, %v1214_v16  }
  0x3f   : > { %1169 = vperm.xlu1 %3935, %v1151_v15   ;;  %1174 = vperm.xlu0 %3934, %v1152_v18  }
  0x43   : > { %1233 = vperm.xlu1 %3935, %v1215_v17   ;;  %1238 = vperm.xlu0 %3934, %v1216_v20  }
  0x47   : > { %1179 = vperm.xlu1 %3935, %v1153_v19   ;;  %1184 = vperm.xlu0 %3934, %v1154_v22  }
  0x4b   : > { %1243 = vperm.xlu1 %3935, %v1217_v21   ;;  %1248 = vperm.xlu0 %3934, %v1218_v24  }
  0x4f   : > { %1189 = vperm.xlu1 %3935, %v1155_v23   ;;  %1194 = vperm.xlu0 %3934, %v1156_v26  }
  0x53   : > { %1253 = vperm.xlu1 %3935, %v1219_v25   ;;  %1258 = vperm.xlu0 %3934, %v1220_v28  }
  0x57   : > { %906 = vperm.xlu1 %3935, %v900_v27   ;;  %911 = vperm.xlu0 %3934, %v901_v29  }
  0x5b   : > { %916 = vperm.xlu1 %3935, %v902_v30   ;;  %938 = vperm.xlu0 %3934, %v932_v31  }
  0x5f   : > { %943 = vperm.xlu1 %3935, %v933_v32   ;;  %921 = vperm.xlu0 %3934, %v903_v33  }
  0x63   : > { %948 = vperm.xlu1 %3935, %v934_v34   ;;  %953 = vperm.xlu0 %3934, %v935_v35  }
  0x89   : > { %v3866_v43 = vpop.permute.xlu1 %3865  ;;  %v3856_v44 = vpop.permute.xlu0 %3855 }
  0x8a   : > { %v3858_v60 = vunpack.i.h.bf16 %v3856_v44  ;;  %v3857_v61 = vunpack.i.l.bf16 %v3856_v44  ;;  %v3868_v0 = vunpack.i.h.bf16 %v3866_v43  ;;  %v3867_v1 = vunpack.i.l.bf16 %v3866_v43 }
  0x8d   : > { %v3871_v54 = vpop.permute.xlu1 %3870  ;;  %v3861_v55 = vpop.permute.xlu0 %3860 }
  0x8e   : > { %v3863_v62 = vunpack.i.h.bf16 %v3861_v55  ;;  %v3862_v63 = vunpack.i.l.bf16 %v3861_v55  ;;  %v3873_v2 = vunpack.i.h.bf16 %v3871_v54  ;;  %v3872_v3 = vunpack.i.l.bf16 %v3871_v54 }
  0x90   : > { %v526_v4 = vsel %vm525_vm1, %v3857_v61, %v3862_v63  ;;  %v527_v5 = vsel %vm525_vm1, %v3858_v60, %v3863_v62  ;;  %v528_v6 = vsel %vm525_vm1, %v3862_v63, %v3857_v61  ;;  %v529_v7 = vsel %vm525_vm1, %v3863_v62, %v3858_v60 }
  0x91   : > { %v3881_v10 = vpop.permute.xlu1 %3880  ;;  %v3876_v11 = vpop.permute.xlu0 %3875  ;;  %v543_v13 = vmul.f32 %v539_v48, %v526_v4  ;;  %v545_v14 = vmul.f32 %v539_v48, %v527_v5  ;;  %v542_v15 = vmul.f32 %v535_v49, %v528_v6  ;;  %v544_v16 = vmul.f32 %v535_v49, %v529_v7 }
  0x92   : > { %v3883_v17 = vunpack.i.h.bf16 %v3881_v10  ;;  %v3882_v18 = vunpack.i.l.bf16 %v3881_v10  ;;  %v3878_v19 = vunpack.i.h.bf16 %v3876_v11  ;;  %v3877_v20 = vunpack.i.l.bf16 %v3876_v11 }
  0x93   : > { %v4447_v21 = vpack.c.bf16 %v545_v14, %v543_v13  ;;  %v4449_v22 = vpack.c.bf16 %v544_v16, %v542_v15  ;;  %v559_v23 = vsel %vm558_vm2, %v3867_v1, %v3872_v3  ;;  %v560_v24 = vsel %vm558_vm2, %v3868_v0, %v3873_v2 }
  0x94   : > { %v577_v25 = vmul.f32 %v573_v50, %v559_v23  ;;  %v579_v26 = vmul.f32 %v573_v50, %v560_v24  ;;  %v561_v27 = vsel %vm558_vm2, %v3872_v3, %v3867_v1  ;;  %v562_v28 = vsel %vm558_vm2, %v3873_v2, %v3868_v0  ;;  %v3669_v1 = vld [vmem:[%s6762_s1 + $0xc] sm:$0x3] }
  0x95   : > { %847 = vmatprep.subr.bf16.mxu0 %v4447_v21  ;;  %v3891_v29 = vpop.permute.xlu1 %3890  ;;  %v3886_v30 = vpop.permute.xlu0 %3885  ;;  %v576_v31 = vmul.f32 %v569_v51, %v561_v27  ;;  %v578_v32 = vmul.f32 %v569_v51, %v562_v28  ;;  %v593_v33 = vsel %vm592_vm3, %v3877_v20, %v3882_v18  ;;  %v594_v34 = vsel %vm592_vm3, %v3878_v19, %v3883_v17 }
  0x96   : > { %848 = vmatpush1.bf16.msra.mxu0 %v4449_v22  ;;  %v4466_v35 = vpack.c.bf16 %v579_v26, %v577_v25  ;;  %v3893_v36 = vunpack.i.h.bf16 %v3891_v29  ;;  %v3892_v37 = vunpack.i.l.bf16 %v3891_v29  ;;  %v3888_v41 = vunpack.i.h.bf16 %v3886_v30 }
  0x97   : > { %v3887_v42 = vunpack.i.l.bf16 %v3886_v30  ;;  %v4468_v43 = vpack.c.bf16 %v578_v32, %v576_v31  ;;  %v611_v44 = vmul.f32 %v607_v52, %v593_v33  ;;  %v613_v45 = vmul.f32 %v607_v52, %v594_v34 }
  0x98   : > { %849 = vmatprep.subr.bf16.mxu0 %v4466_v35  ;;  %v595_v46 = vsel %vm592_vm3, %v3882_v18, %v3877_v20  ;;  %v596_v47 = vsel %vm592_vm3, %v3883_v17, %v3878_v19  ;;  %v628_v48 = vsel %vm626_vm4, %v3888_v41, %v3893_v36  ;;  %v630_v49 = vsel %vm626_vm4, %v3893_v36, %v3888_v41 }
  0x99   : > { %v4479_v50 = vpack.c.bf16 %v613_v45, %v611_v44  ;;  %v610_v51 = vmul.f32 %v4423_v53, %v595_v46  ;;  %v612_v52 = vmul.f32 %v4423_v53, %v596_v47  ;;  %v3901_v54 = vpop.permute.xlu1 %3900  ;;  %v3896_v55 = vpop.permute.xlu0 %3895  ;;  %v627_v60 = vsel %vm626_vm4, %v3887_v42, %v3892_v37 }
  0x9a   : > { %850 = vmatpush1.bf16.msra.mxu0 %v4468_v43  ;;  %v3903_v61 = vunpack.i.h.bf16 %v3901_v54  ;;  %v3902_v62 = vunpack.i.l.bf16 %v3901_v54  ;;  %v3898_v63 = vunpack.i.h.bf16 %v3896_v55  ;;  %v3897_v0 = vunpack.i.l.bf16 %v3896_v55 }
  0x9b   : > { %851 = vmatprep.subr.bf16.mxu0 %v4479_v50  ;;  %v4490_v2 = vpack.c.bf16 %v612_v52, %v610_v51  ;;  %v645_v53 = vmul.f32 %v4427_v56, %v627_v60  ;;  %v647_v3 = vmul.f32 %v4427_v56, %v628_v48  ;;  %v629_v4 = vsel %vm626_vm4, %v3892_v37, %v3887_v42  ;;  %v3671_v51 = vld [vmem:[%s6762_s1 + $0x10] sm:$0x3] }
  0x9c   : > { %v644_v5 = vmul.f32 %v4430_v57, %v629_v4  ;;  %v646_v6 = vmul.f32 %v4430_v57, %v630_v49  ;;  %v675_v7 = vsel %vm672_vm5, %v3902_v62, %v3897_v0  ;;  %v676_v10 = vsel %vm672_vm5, %v3903_v61, %v3898_v63  ;;  %v3670_v57 = vld [vmem:[%s6762_s1 + $0xe] sm:$0x3] }
  0x9d   : > { %v4502_v11 = vpack.c.bf16 %v647_v3, %v645_v53  ;;  %v3911_v13 = vpop.permute.xlu1 %3910  ;;  %v3906_v14 = vpop.permute.xlu0 %3905  ;;  %v673_v56 = vsel %vm672_vm5, %v3897_v0, %v3902_v62  ;;  %v721_v15 = vrot.slane %v3669_v1, %v4397_v40  ;;  %v717_v16 = vrot.slane %v3669_v1, %v4395_v39 }
  0x9e   : > { %852 = vmatpush1.bf16.msra.mxu0 %v4490_v2  ;;  %v4512_v17 = vpack.c.bf16 %v646_v6, %v644_v5  ;;  %v3913_v18 = vunpack.i.h.bf16 %v3911_v13  ;;  %v3912_v19 = vunpack.i.l.bf16 %v3911_v13  ;;  %v3908_v20 = vunpack.i.h.bf16 %v3906_v14 }
  0x9f   : > { %853 = vmatprep.subr.bf16.mxu0 %v4502_v11  ;;  %v3907_v23 = vunpack.i.l.bf16 %v3906_v14  ;;  %v691_v24 = vmul.f32 %v4433_v58, %v675_v7  ;;  %v693_v25 = vmul.f32 %v4433_v58, %v676_v10  ;;  %v674_v26 = vsel %vm672_vm5, %v3898_v63, %v3903_v61 }
  0xa0   : > { %v690_v27 = vmul.f32 %v4436_v59, %v673_v56  ;;  %v710_v28 = vsel %vm706_vm6, %v3913_v18, %v3908_v20  ;;  %v755_v29 = vrot.slane %v3670_v57, %v4397_v40  ;;  %v692_v32 = vmul.f32 %v4436_v59, %v674_v26 }
  0xa1   : > { %v3921_v30 = vpop.permute.xlu1 %3920  ;;  %v3916_v31 = vpop.permute.xlu0 %3915  ;;  %v709_v33 = vsel %vm706_vm6, %v3912_v19, %v3907_v23  ;;  %v707_v58 = vsel %vm706_vm6, %v3907_v23, %v3912_v19  ;;  %v708_v34 = vsel %vm706_vm6, %v3908_v20, %v3913_v18  ;;  %v4533_v44 = vpack.c.bf16 %v693_v25, %v691_v24 }
  0xa2   : > { %854 = vmatpush1.bf16.msra.mxu0 %v4512_v17  ;;  %v3923_v36 = vunpack.i.h.bf16 %v3921_v30  ;;  %v3922_v37 = vunpack.i.l.bf16 %v3921_v30  ;;  %v3918_v41 = vunpack.i.h.bf16 %v3916_v31  ;;  %v3917_v42 = vunpack.i.l.bf16 %v3916_v31  ;;  %v3943_v30 = vld [vmem:[%s6763_s2 + $0x10] ss:$8 sps:$4 sm:$0xff]   ;;  %v3946_v31 = vld [vmem:[%s6769_s8 + $0x4] ss:$8 sps:$4 sm:$0xff]  }
  0xa3   : > { %855 = vmatprep.subr.bf16.mxu0 %v4301_v8  ;;  %v725_v59 = vmul.f32 %v721_v15, %v709_v33  ;;  %v727_v45 = vmul.f32 %v721_v15, %v710_v28  ;;  %v751_v46 = vrot.slane %v3670_v57, %v4395_v39  ;;  %v726_v47 = vmul.f32 %v717_v16, %v708_v34  ;;  %v3938_v28 = vld [vmem:[%s6763_s2] ss:$8 sps:$4 sm:$0xff]  }
  0xa4   : > { %v743_v48 = vsel %vm740_vm7, %v3922_v37, %v3917_v42  ;;  %v744_v49 = vsel %vm740_vm7, %v3923_v36, %v3918_v41  ;;  %v694_v52 = vpack.c.bf16 %v692_v32, %v690_v27  ;;  %v724_v60 = vmul.f32 %v717_v16, %v707_v58 }
  0xa5   : > { %v3931_v54 = vpop.permute.xlu1 %3930  ;;  %v3926_v55 = vpop.permute.xlu0 %3925  ;;  %v759_v61 = vmul.f32 %v755_v29, %v743_v48  ;;  %v761_v62 = vmul.f32 %v755_v29, %v744_v49  ;;  %v729_v3 = vpack.c.bf16 %v727_v45, %v725_v59  ;;  %v741_v4 = vsel %vm740_vm7, %v3917_v42, %v3922_v37  ;;  %v3941_v29 = vld [vmem:[%s6763_s2 + $0x14] ss:$8 sps:$4 sm:$0xff]  }
  0xa6   : > { %856 = vmatpush1.bf16.msra.mxu0 %v4305_v9  ;;  %v3933_v63 = vunpack.i.h.bf16 %v3931_v54  ;;  %v3932_v0 = vunpack.i.l.bf16 %v3931_v54  ;;  %v3928_v1 = vunpack.i.h.bf16 %v3926_v55  ;;  %v3927_v53 = vunpack.i.l.bf16 %v3926_v55 }
  0xa7   : > { %857 = vmatprep.subr.bf16.mxu0 %v4533_v44  ;;  %v742_v5 = vsel %vm740_vm7, %v3918_v41, %v3923_v36  ;;  %v789_v6 = vrot.slane %v3671_v51, %v4397_v40  ;;  %v785_v13 = vrot.slane %v3671_v51, %v4395_v39  ;;  %v728_v14 = vpack.c.bf16 %v726_v47, %v724_v60 }
  0xa8   : > { %v777_v7 = vsel %vm774_vm8, %v3932_v0, %v3927_v53  ;;  %v778_v10 = vsel %vm774_vm8, %v3933_v63, %v3928_v1  ;;  %v763_v56 = vpack.c.bf16 %v761_v62, %v759_v61  ;;  %v758_v15 = vmul.f32 %v751_v46, %v741_v4 }
  0xa9   : > { %v760_v16 = vmul.f32 %v751_v46, %v742_v5  ;;  %v793_v57 = vmul.f32 %v789_v6, %v777_v7  ;;  %v795_v18 = vmul.f32 %v789_v6, %v778_v10  ;;  %v775_v19 = vsel %vm774_vm8, %v3927_v53, %v3932_v0 }
  0xaa   : > { %858 = vmatpush1.bf16.msra.mxu0 %v694_v52  ;;  %v776_v20 = vsel %vm774_vm8, %v3928_v1, %v3933_v63  ;;  %v792_v24 = vmul.f32 %v785_v13, %v775_v19 }
  0xab   : > { %859 = vmatprep.subr.bf16.mxu0 %v729_v3  ;;  %v762_v23 = vpack.c.bf16 %v760_v16, %v758_v15  ;;  %v794_v25 = vmul.f32 %v785_v13, %v776_v20  ;;  %v797_v26 = vpack.c.bf16 %v795_v18, %v793_v57 }
  0xad   : > { %v796_v27 = vpack.c.bf16 %v794_v25, %v792_v24 }
  0xae   : > { %860 = vmatpush1.bf16.msra.mxu0 %v728_v14 }
  0xaf   : > { %861 = vmatprep.subr.bf16.mxu0 %v763_v56 }
  0xb2   : > { %862 = vmatpush1.bf16.msra.mxu0 %v762_v23 }
  0xb3   : > { %863 = vmatprep.subr.bf16.mxu0 %v797_v26 }
  0xb6   : > { %864 = vmatpush1.bf16.msra.mxu0 %v796_v27 }
  0xb7   : > { %1076 = vmatprep.subr.bf16.mxu0 %v4447_v21  ;;  %v3944_v21 = vld [vmem:[%s6769_s8] ss:$8 sps:$4 sm:$0xff]  }
  0xb9   : > { %880 = vmatmul.mubr.bf16.vlgmr.msra.gmra.mrb[0].mxu0 %v3938_v28 }
  0xba   : > { %1077 = vmatpush1.bf16.msra.mxu0 %v4449_v22  ;;  %3677 = vmatprep.mubr.msk.bf16.mxu0 %vm840_vm0, %v3941_v29  ;;  %v3947_v22 = vld [vmem:[%s6769_s8 + $0x14] ss:$8 sps:$4 sm:$0xff]  }
  0xbb   : > { %1078 = vmatprep.subr.bf16.mxu0 %v4466_v35  ;;  %v3952_v35 = vld [vmem:[%s6769_s8 + $0x20] ss:$8 sps:$4 sm:$0xff]  }
  0xbe   : > { %1079 = vmatpush1.bf16.msra.mxu0 %v4468_v43  ;;  %v3953_v43 = vld [vmem:[%s6769_s8 + $0x34] ss:$8 sps:$4 sm:$0xff]  }
  0xbf   : > { %1080 = vmatprep.subr.bf16.mxu0 %v4479_v50  ;;  %v3955_v50 = vld [vmem:[%s6769_s8 + $0x30] ss:$8 sps:$4 sm:$0xff]  }
  0xc1   : > { %890 = vmatmul.mubr.bf16.gmra.mrb[4].mxu0 %v3943_v30 }
  0xc2   : > { %1081 = vmatpush1.bf16.msra.mxu0 %v4490_v2  ;;  %3694 = vmatprep.mubr.msk.bf16.mxu0 %vm840_vm0, %v3946_v31  ;;  %v4609_v2 = vpop.permute.xlu1 %1164 }
  0xc3   : > { %1082 = vmatprep.subr.bf16.mxu0 %v4502_v11  ;;  %v4611_v11 = vpop.permute.xlu0 %1159 }
  0xc6   : > { %1083 = vmatpush1.bf16.msra.mxu0 %v4512_v17  ;;  %v4613_v17 = vpop.permute.xlu1 %1223 }
  0xc7   : > { %1084 = vmatprep.subr.bf16.mxu0 %v4301_v8  ;;  %v3949_v8 = vld [vmem:[%s6769_s8 + $0x10] ss:$8 sps:$4 sm:$0xff]   ;;  %v4615_v32 = vpop.permute.xlu0 %1228 }
  0xca   : > { %1085 = vmatpush1.bf16.msra.mxu0 %v4305_v9  ;;  %v3950_v9 = vld [vmem:[%s6769_s8 + $0x24] ss:$8 sps:$4 sm:$0xff]   ;;  %v4617_v33 = vpop.permute.xlu1 %1169 }
  0xcb   : > { %1086 = vmatprep.subr.bf16.mxu0 %v4533_v44  ;;  %v4619_v58 = vpop.permute.xlu0 %1174 }
  0xce   : > { %1087 = vmatpush1.bf16.msra.mxu0 %v694_v52  ;;  %v4621_v34 = vpop.permute.xlu1 %1233 }
  0xcf   : > { %1088 = vmatprep.subr.bf16.mxu0 %v729_v3  ;;  %v4623_v36 = vpop.permute.xlu0 %1238 }
  0xd2   : > { %1089 = vmatpush1.bf16.msra.mxu0 %v728_v14  ;;  %v4625_v37 = vpop.permute.xlu1 %1179 }
  0xd3   : > { %1090 = vmatprep.subr.bf16.mxu0 %v763_v56  ;;  %v4627_v41 = vpop.permute.xlu0 %1184 }
  0xd6   : > { %1091 = vmatpush1.bf16.msra.mxu0 %v762_v23  ;;  %v4629_v42 = vpop.permute.xlu1 %1243 }
  0xd7   : > { %1092 = vmatprep.subr.bf16.mxu0 %v797_v26  ;;  %v4631_v44 = vpop.permute.xlu0 %1248 }
  0xda   : > { %1093 = vmatpush1.bf16.msra.mxu0 %v796_v27  ;;  %v4633_v59 = vpop.permute.xlu1 %1189 }
  0xdb   : > { %v4635_v45 = vpop.permute.xlu0 %1194 }
  0xdd   : > { %1109 = vmatmul.mubr.bf16.vlgmr.msra.gmra.mrb[8].mxu0 %v3944_v21 }
  0xde   : > { %3695 = vmatprep.mubr.msk.bf16.mxu0 %vm840_vm0, %v3947_v22  ;;  %v4637_v46 = vpop.permute.xlu1 %1253 }
  0xdf   : > { %v4639_v47 = vpop.permute.xlu0 %1258 }
  0xe2   : > { %v907_v48 = vpop.permute.xlu1 %906 }
  0xe3   : > { %v912_v49 = vpop.permute.xlu0 %911 }
  0xe5   : > { %1119 = vmatmul.mubr.bf16.gmra.mrb[12].mxu0 %v3949_v8 }
  0xe6   : > { %3696 = vmatprep.mubr.msk.bf16.mxu0 %vm840_vm0, %v3950_v9  ;;  %v917_v51 = vpop.permute.xlu1 %916 }
  0xe7   : > { %v939_v60 = vpop.permute.xlu0 %938 }
  0xea   : > { %v944_v1 = vpop.permute.xlu1 %943 }
  0xeb   : > { %v922_v23 = vpop.permute.xlu0 %921 }
  0xed   : > { %1129 = vmatmul.mubr.bf16.gmra.mrb[16].mxu0 %v3952_v35 }
  0xee   : > { %3697 = vmatprep.mubr.msk.bf16.mxu0 %vm840_vm0, %v3953_v43  ;;  %v949_v27 = vpop.permute.xlu1 %948 }
  0xef   : > { %v954_v29 = vpop.permute.xlu0 %953 }
  0xf5   : > { %1139 = vmatmul.mubr.bf16.gmra.mrb[20].mxu0 %v3955_v50 }
 0x18c   : > { %v881_v52 = vpop.f32.mrb[0].mxu0 }
 0x18d   : > { %v924_v54 = vmul.f32 %v907_v48, %v881_v52  ;;  %v883_v55 = vpop.f32.mrb[1].mxu0 }
 0x18e   : > { %v885_v61 = vpop.f32.mrb[2].mxu0  ;;  %v925_v3 = vmul.f32 %v907_v48, %v883_v55 }
 0x18f   : > { %v956_v62 = vadd.f32 %v939_v60, %v924_v54  ;;  %v926_v63 = vmul.f32 %v912_v49, %v885_v61  ;;  %v887_v0 = vpop.f32.mrb[3].mxu0 }
 0x190   : > { %v927_v6 = vmul.f32 %v912_v49, %v887_v0  ;;  %v957_v10 = vadd.f32 %v939_v60, %v925_v3 }
 0x191   : > { %v3678_v53 = vmul.f32 -1.442695, %v956_v62  ;;  %v958_v4 = vadd.f32 %v944_v1, %v926_v63 }
 0x192   : > { %v959_v56 = vadd.f32 %v944_v1, %v927_v6  ;;  %v3679_v16 = vmul.f32 -1.442695, %v957_v10 }
 0x193   : > { %3992 = vpow2.f32 %v3678_v53  ;;  %v3680_v5 = vmul.f32 -1.442695, %v958_v4 }
 0x194   : > { %v891_v7 = vpop.f32.mrb[4].mxu0  ;;  %v3681_v57 = vmul.f32 -1.442695, %v959_v56 }
 0x195   : > { %3994 = vpow2.f32 %v3680_v5  ;;  %v893_v13 = vpop.f32.mrb[5].mxu0  ;;  %v928_v25 = vmul.f32 %v917_v51, %v891_v7 }
 0x196   : > { %v895_v14 = vpop.f32.mrb[6].mxu0  ;;  %3996 = vpow2.f32 %v3679_v16  ;;  %v929_v54 = vmul.f32 %v917_v51, %v893_v13 }
 0x197   : > { %v897_v15 = vpop.f32.mrb[7].mxu0  ;;  %3998 = vpow2.f32 %v3681_v57  ;;  %v930_v26 = vmul.f32 %v922_v23, %v895_v14  ;;  %v4641_v28 = vadd.f32 %v949_v27, %v928_v25 }
 0x198   : > { %v931_v61 = vmul.f32 %v922_v23, %v897_v15  ;;  %v4663_v63 = vadd.f32 %v949_v27, %v929_v54 }
 0x199   : > { %v4643_v31 = vadd.f32 %v954_v29, %v930_v26  ;;  %v3682_v22 = vmul.f32 -1.442695, %v4641_v28 }
 0x19a   : > { %v4667_v1 = vadd.f32 %v954_v29, %v931_v61 }
 0x19b   : > { %v3684_v43 = vmul.f32 -1.442695, %v4643_v31 }
 0x19c   : > { %v3685_v15 = vmul.f32 -1.442695, %v4667_v1 }
 0x19d   : > { %v3993_v18 = vpop.eup %3992 }
 0x19e   : > { %v988_v19 = vadd.f32 1.0, %v3993_v18 }
 0x19f   : > { %v3995_v20 = vpop.eup %3994 }
 0x1a0   : > { %4000 = vrcp.f32 %v988_v19  ;;  %v990_v24 = vadd.f32 1.0, %v3995_v20  ;;  %v3997_v30 = vpop.eup %3996 }
 0x1a1   : > { %v3999_v21 = vpop.eup %3998  ;;  %v989_v9 = vadd.f32 1.0, %v3997_v30 }
 0x1a2   : > { %4002 = vrcp.f32 %v990_v24  ;;  %v991_v48 = vadd.f32 1.0, %v3999_v21 }
 0x1a3   : > { %4004 = vpow2.f32 %v3682_v22 }
 0x1a4   : > { %4006 = vrcp.f32 %v989_v9 }
 0x1a5   : > { %4008 = vpow2.f32 %v3684_v43 }
 0x1a6   : > { %4010 = vrcp.f32 %v991_v48 }
 0x1aa   : > { %v4001_v8 = vpop.eup %4000 }
 0x1ab   : > { %v4646_v35 = vmul.f32 %v4001_v8, %v956_v62 }
 0x1ac   : > { %v4003_v50 = vpop.eup %4002 }
 0x1ad   : > { %v4649_v49 = vmul.f32 %v4003_v50, %v958_v4  ;;  %1389 = vrot.lane.b32.xlu1 %v4646_v35, %s4193_s25  ;;  %v4005_v0 = vpop.eup %4004  ;;  %v3683_v4 = vmul.f32 -1.442695, %v4663_v63 }
 0x1ae   : > { %v4007_v51 = vpop.eup %4006  ;;  %v992_v7 = vadd.f32 1.0, %v4005_v0 }
 0x1af   : > { %1391 = vrot.lane.b32.xlu0 %v4649_v49, %s4193_s25  ;;  %v4009_v3 = vpop.eup %4008  ;;  %v4680_v14 = vmul.f32 %v4007_v51, %v957_v10  ;;  %4012 = vpow2.f32 %v3683_v4 }
 0x1b0   : > { %v1110_v52 = vpop.f32.mrb[8].mxu0  ;;  %v4011_v6 = vpop.eup %4010  ;;  %v994_v57 = vadd.f32 1.0, %v4009_v3  ;;  %4014 = vrcp.f32 %v992_v7 }
 0x1b1   : > { %1441 = vrot.lane.b32.xlu1 %v4646_v35, %s4192_s24  ;;  %v4657_v55 = vpop.f32.mrb[9].mxu0  ;;  %v4687_v18 = vmul.f32 %v4011_v6, %v959_v56  ;;  %4016 = vpow2.f32 %v3685_v15  ;;  %v1197_v19 = vmul.f32 %v4611_v11, %v1110_v52 }
 0x1b2   : > { %v1114_v60 = vpop.f32.mrb[10].mxu0  ;;  %4018 = vrcp.f32 %v994_v57  ;;  %v1198_v15 = vmul.f32 %v4611_v11, %v4657_v55 }
 0x1b3   : > { %1443 = vrot.lane.b32.xlu0 %v4649_v49, %s4192_s24  ;;  %v4661_v62 = vpop.f32.mrb[11].mxu0  ;;  %v1199_v23 = vmul.f32 %v4609_v2, %v1114_v60  ;;  %v1261_v25 = vadd.f32 %v4613_v17, %v1197_v19 }
 0x1b4   : > { %v1200_v57 = vmul.f32 %v4609_v2, %v4661_v62 }
 0x1b5   : > { %1493 = vrot.lane.b32.xlu1 %v4646_v35, %s4194_s26  ;;  %v1263_v27 = vadd.f32 %v4615_v32, %v1199_v23  ;;  %v3698_v22 = vmul.f32 -1.442695, %v1261_v25 }
 0x1b7   : > { %1495 = vrot.lane.b32.xlu0 %v4649_v49, %s4194_s26  ;;  %v3700_v52 = vmul.f32 -1.442695, %v1263_v27  ;;  %4020 = vpow2.f32 %v3698_v22 }
 0x1b8   : > { %v4671_v53 = vpop.f32.mrb[12].mxu0 }
 0x1b9   : > { %1545 = vrot.lane.b32.xlu1 %v4646_v35, %s6858_s29  ;;  %v4676_v5 = vpop.f32.mrb[13].mxu0  ;;  %v4013_v26 = vpop.eup %4012 }
 0x1ba   : > { %v4678_v13 = vpop.f32.mrb[14].mxu0  ;;  %v4015_v29 = vpop.eup %4014  ;;  %v993_v43 = vadd.f32 1.0, %v4013_v26 }
 0x1bb   : > { %1547 = vrot.lane.b32.xlu0 %v4649_v49, %s6858_s29  ;;  %v4685_v16 = vpop.f32.mrb[15].mxu0  ;;  %v4017_v21 = vpop.eup %4016  ;;  %v4722_v48 = vmul.f32 %v4015_v29, %v4641_v28 }
 0x1bc   : > { %v4019_v9 = vpop.eup %4018  ;;  %v995_v60 = vadd.f32 1.0, %v4017_v21  ;;  %4022 = vrcp.f32 %v993_v43 }
 0x1bd   : > { %1397 = vrot.lane.b32.xlu1 %v4680_v14, %s4193_s25  ;;  %v4729_v61 = vmul.f32 %v4019_v9, %v4643_v31  ;;  %4024 = vpow2.f32 %v3700_v52 }
 0x1be   : > { %4026 = vrcp.f32 %v995_v60 }
 0x1bf   : > { %1399 = vrot.lane.b32.xlu0 %v4687_v18, %s4193_s25 }
 0x1c0   : > { %v4693_v10 = vpop.f32.mrb[16].mxu0 }
 0x1c1   : > { %1449 = vrot.lane.b32.xlu1 %v4680_v14, %s4192_s24  ;;  %v4698_v20 = vpop.f32.mrb[17].mxu0  ;;  %v4021_v28 = vpop.eup %4020 }
 0x1c2   : > { %v4700_v56 = vpop.f32.mrb[18].mxu0  ;;  %v1325_v3 = vadd.f32 1.0, %v4021_v28 }
 0x1c3   : > { %1451 = vrot.lane.b32.xlu0 %v4687_v18, %s4192_s24  ;;  %v4705_v24 = vpop.f32.mrb[19].mxu0 }
 0x1c4   : > { %4028 = vrcp.f32 %v1325_v3  ;;  %v1204_v3 = vmul.f32 %v4619_v58, %v4685_v16 }
 0x1c5   : > { %1501 = vrot.lane.b32.xlu1 %v4680_v14, %s4194_s26 }
 0x1c6   : > { %v4023_v31 = vpop.eup %4022 }
 0x1c7   : > { %1503 = vrot.lane.b32.xlu0 %v4687_v18, %s4194_s26  ;;  %v4025_v0 = vpop.eup %4024  ;;  %v4746_v4 = vmul.f32 %v4023_v31, %v4663_v63  ;;  %v1262_v63 = vadd.f32 %v4613_v17, %v1198_v15 }
 0x1c8   : > { %v4713_v30 = vpop.f32.mrb[20].mxu0  ;;  %v4027_v51 = vpop.eup %4026  ;;  %v1327_v6 = vadd.f32 1.0, %v4025_v0  ;;  %v1202_v0 = vmul.f32 %v4617_v33, %v4676_v5 }
 0x1c9   : > { %1553 = vrot.lane.b32.xlu1 %v4680_v14, %s6858_s29  ;;  %v4717_v8 = vpop.f32.mrb[21].mxu0  ;;  %v4751_v7 = vmul.f32 %v4027_v51, %v4667_v1  ;;  %v1264_v1 = vadd.f32 %v4615_v32, %v1200_v57  ;;  %v3699_v11 = vmul.f32 -1.442695, %v1262_v63 }
 0x1ca   : > { %v4719_v50 = vpop.f32.mrb[22].mxu0  ;;  %4030 = vrcp.f32 %v1327_v6  ;;  %v4830_v15 = vadd.f32 %v4621_v34, %v1202_v0 }
 0x1cb   : > { %1555 = vrot.lane.b32.xlu0 %v4687_v18, %s6858_s29  ;;  %v4726_v54 = vpop.f32.mrb[23].mxu0  ;;  %v3701_v55 = vmul.f32 -1.442695, %v1264_v1  ;;  %4032 = vpow2.f32 %v3699_v11 }
 0x1cd   : > { %1393 = vrot.lane.b32.xlu1 %v4722_v48, %s4193_s25  ;;  %4034 = vpow2.f32 %v3701_v55 }
 0x1ce   : > { %v4029_v2 = vpop.eup %4028 }
 0x1cf   : > { %1395 = vrot.lane.b32.xlu0 %v4729_v61, %s4193_s25  ;;  %v4773_v62 = vmul.f32 %v4029_v2, %v1261_v25  ;;  %v1201_v25 = vmul.f32 %v4617_v33, %v4671_v53  ;;  %v4835_v33 = vadd.f32 %v4623_v36, %v1204_v3 }
 0x1d1   : > { %1445 = vrot.lane.b32.xlu1 %v4722_v48, %s4192_s24  ;;  %6859 = vst [vmem:[#allocation3_spill] sm:$0xff] %v4773_v62  ;;  %v1265_v21 = vadd.f32 %v4621_v34, %v1201_v25  ;;  %v3705_v5 = vmul.f32 -1.442695, %v4835_v33  ;;  %v1207_v25 = vmul.f32 %v4627_v41, %v4700_v56  ;;  %v1413_v56 = vld [vmem:[%s6762_s1] sm:$0x3] }
 0x1d3   : > { %1447 = vrot.lane.b32.xlu0 %v4729_v61, %s4192_s24  ;;  %v3702_v53 = vmul.f32 -1.442695, %v1265_v21 }
 0x1d4   : > { %v4031_v17 = vpop.eup %4030 }
 0x1d5   : > { %1497 = vrot.lane.b32.xlu1 %v4722_v48, %s4194_s26  ;;  %v4777_v32 = vmul.f32 %v4031_v17, %v1263_v27  ;;  %v4033_v19 = vpop.eup %4032  ;;  %v1203_v27 = vmul.f32 %v4619_v58, %v4678_v13  ;;  %v3703_v58 = vmul.f32 -1.442695, %v4830_v15  ;;  %v1205_v17 = vmul.f32 %v4625_v37, %v4693_v10 }
 0x1d6   : > { %v1326_v26 = vadd.f32 1.0, %v4033_v19  ;;  %v4883_v10 = vadd.f32 %v4631_v44, %v1207_v25 }
 0x1d7   : > { %1499 = vrot.lane.b32.xlu0 %v4729_v61, %s4194_s26  ;;  %6860 = vst [vmem:[#allocation4_spill] sm:$0xff] %v4777_v32  ;;  %v4035_v23 = vpop.eup %4034  ;;  %v1267_v22 = vadd.f32 %v4623_v36, %v1203_v27 }
 0x1d8   : > { %v1328_v29 = vadd.f32 1.0, %v4035_v23  ;;  %4036 = vrcp.f32 %v1326_v26 }
 0x1d9   : > { %1549 = vrot.lane.b32.xlu1 %v4722_v48, %s6858_s29  ;;  %v3704_v13 = vmul.f32 -1.442695, %v1267_v22 }
 0x1da   : > { %4038 = vrcp.f32 %v1328_v29  ;;  %v4876_v29 = vadd.f32 %v4629_v42, %v1205_v17 }
 0x1db   : > { %1551 = vrot.lane.b32.xlu0 %v4729_v61, %s6858_s29  ;;  %4040 = vpow2.f32 %v3702_v53 }
 0x1dc   : > { %4042 = vpow2.f32 %v3704_v13  ;;  %v3706_v53 = vmul.f32 -1.442695, %v4876_v29 }
 0x1dd   : > { %1401 = vrot.lane.b32.xlu1 %v4746_v4, %s4193_s25 }
 0x1df   : > { %1403 = vrot.lane.b32.xlu0 %v4751_v7, %s4193_s25 }
 0x1e1   : > { %1453 = vrot.lane.b32.xlu1 %v4746_v4, %s4192_s24 }
 0x1e2   : > { %v4037_v9 = vpop.eup %4036 }
 0x1e3   : > { %1455 = vrot.lane.b32.xlu0 %v4751_v7, %s4192_s24  ;;  %v4811_v52 = vmul.f32 %v4037_v9, %v1262_v63  ;;  %v3708_v9 = vmul.f32 -1.442695, %v4883_v10 }
 0x1e4   : > { %v4039_v43 = vpop.eup %4038 }
 0x1e5   : > { %1505 = vrot.lane.b32.xlu1 %v4746_v4, %s4194_s26  ;;  %6864 = vst [vmem:[#allocation5_spill] sm:$0xff] %v4811_v52  ;;  %v4815_v60 = vmul.f32 %v4039_v43, %v1264_v1  ;;  %v4041_v28 = vpop.eup %4040  ;;  %v4899_v43 = vrot.slane %v1413_v56, %v4395_v39 }
 0x1e6   : > { %v4043_v31 = vpop.eup %4042  ;;  %v1329_v51 = vadd.f32 1.0, %v4041_v28  ;;  %v4902_v28 = vrot.slane %v1413_v56, %v4397_v40 }
 0x1e7   : > { %1507 = vrot.lane.b32.xlu0 %v4751_v7, %s4194_s26  ;;  %6865 = vst [vmem:[#allocation6_spill] sm:$0xff] %v4815_v60  ;;  %v1331_v6 = vadd.f32 1.0, %v4043_v31 }
 0x1e8   : > { %4044 = vrcp.f32 %v1329_v51 }
 0x1e9   : > { %1557 = vrot.lane.b32.xlu1 %v4746_v4, %s6858_s29  ;;  %4046 = vrcp.f32 %v1331_v6 }
 0x1ea   : > { %4048 = vpow2.f32 %v3703_v58 }
 0x1eb   : > { %1559 = vrot.lane.b32.xlu0 %v4751_v7, %s6858_s29  ;;  %4050 = vpow2.f32 %v3705_v5 }
 0x1ed   : > { %2128 = vrot.lane.b32.xlu1 %v4773_v62, %s4193_s25 }
 0x1ef   : > { %2130 = vrot.lane.b32.xlu0 %v4777_v32, %s4193_s25 }
 0x1f1   : > { %2220 = vrot.lane.b32.xlu1 %v4773_v62, %s4192_s24 }
 0x1f2   : > { %v4045_v34 = vpop.eup %4044 }
 0x1f3   : > { %2222 = vrot.lane.b32.xlu0 %v4777_v32, %s4192_s24  ;;  %v4047_v36 = vpop.eup %4046  ;;  %v4851_v16 = vmul.f32 %v4045_v34, %v1265_v21 }
 0x1f4   : > { %v4855_v63 = vmul.f32 %v4047_v36, %v1267_v22  ;;  %v4049_v11 = vpop.eup %4048 }
 0x1f5   : > { %2312 = vrot.lane.b32.xlu1 %v4773_v62, %s4194_s26  ;;  %6866 = vst [vmem:[#allocation7_spill] sm:$0xff] %v4851_v16  ;;  %v4051_v2 = vpop.eup %4050  ;;  %v1330_v23 = vadd.f32 1.0, %v4049_v11 }
 0x1f6   : > { %6867 = vst [vmem:[#allocation8_spill] sm:$0xff] %v4855_v63  ;;  %v1332_v27 = vadd.f32 1.0, %v4051_v2 }
 0x1f7   : > { %2314 = vrot.lane.b32.xlu0 %v4777_v32, %s4194_s26  ;;  %4052 = vrcp.f32 %v1330_v23 }
 0x1f8   : > { %4054 = vrcp.f32 %v1332_v27 }
 0x1f9   : > { %2404 = vrot.lane.b32.xlu1 %v4773_v62, %s6858_s29  ;;  %4056 = vpow2.f32 %v3706_v53 }
 0x1fa   : > { %4058 = vpow2.f32 %v3708_v9 }
 0x1fb   : > { %2406 = vrot.lane.b32.xlu0 %v4777_v32, %s6858_s29 }
 0x1fd   : > { %2512 = vrot.lane.b32.xlu1 %v4773_v62, %s6861_s20 }
 0x1ff   : > { %2514 = vrot.lane.b32.xlu0 %v4777_v32, %s6861_s20 }
 0x201   : > { %2604 = vrot.lane.b32.xlu1 %v4773_v62, %s6862_s21  ;;  %v4053_v2 = vpop.eup %4052 }
 0x202   : > { %v4055_v25 = vpop.eup %4054  ;;  %v4927_v27 = vmul.f32 %v4053_v2, %v4830_v15 }
 0x203   : > { %2606 = vrot.lane.b32.xlu0 %v4777_v32, %s6862_s21  ;;  %v4934_v53 = vmul.f32 %v4055_v25, %v4835_v33 }
 0x204   : > { %6868 = vst [vmem:[#allocation9_spill] sm:$0xff] %v4927_v27 }
 0x205   : > { %2696 = vrot.lane.b32.xlu1 %v4773_v62, %s6863_s22  ;;  %6869 = vst [vmem:[#allocation10_spill] sm:$0xff] %v4934_v53 }
 0x207   : > { %2698 = vrot.lane.b32.xlu0 %v4777_v32, %s6863_s22 }
 0x209   : > { %2144 = vrot.lane.b32.xlu1 %v4811_v52, %s4193_s25 }
 0x20b   : > { %2146 = vrot.lane.b32.xlu0 %v4815_v60, %s4193_s25 }
 0x20d   : > { %2236 = vrot.lane.b32.xlu1 %v4811_v52, %s4192_s24 }
 0x20f   : > { %2238 = vrot.lane.b32.xlu0 %v4815_v60, %s4192_s24 }
 0x211   : > { %2328 = vrot.lane.b32.xlu1 %v4811_v52, %s4194_s26 }
 0x213   : > { %2330 = vrot.lane.b32.xlu0 %v4815_v60, %s4194_s26 }
 0x215   : > { %2420 = vrot.lane.b32.xlu1 %v4811_v52, %s6858_s29 }
 0x217   : > { %2422 = vrot.lane.b32.xlu0 %v4815_v60, %s6858_s29 }
 0x219   : > { %2528 = vrot.lane.b32.xlu1 %v4811_v52, %s6861_s20 }
 0x21b   : > { %2530 = vrot.lane.b32.xlu0 %v4815_v60, %s6861_s20 }
 0x21d   : > { %2620 = vrot.lane.b32.xlu1 %v4811_v52, %s6862_s21 }
 0x21f   : > { %v1390_v57 = vpop.permute.xlu1 %1389  ;;  %2622 = vrot.lane.b32.xlu0 %v4815_v60, %s6862_s21 }
 0x221   : > { %v1392_v1 = vpop.permute.xlu0 %1391  ;;  %2132 = vrot.lane.b32.xlu1 %v4851_v16, %s4193_s25 }
 0x223   : > { %v4859_v55 = vpop.permute.xlu1 %1441  ;;  %2134 = vrot.lane.b32.xlu0 %v4855_v63, %s4193_s25 }
 0x225   : > { %v4865_v19 = vpop.permute.xlu0 %1443  ;;  %2224 = vrot.lane.b32.xlu1 %v4851_v16, %s4192_s24 }
 0x227   : > { %v4871_v26 = vpop.permute.xlu1 %1493  ;;  %2226 = vrot.lane.b32.xlu0 %v4855_v63, %s4192_s24 }
 0x229   : > { %v4878_v21 = vpop.permute.xlu0 %1495  ;;  %2316 = vrot.lane.b32.xlu1 %v4851_v16, %s4194_s26 }
 0x22b   : > { %v4885_v22 = vpop.permute.xlu1 %1545  ;;  %2318 = vrot.lane.b32.xlu0 %v4855_v63, %s4194_s26 }
 0x22d   : > { %v4893_v13 = vpop.permute.xlu0 %1547  ;;  %2408 = vrot.lane.b32.xlu1 %v4851_v16, %s6858_s29 }
 0x22f   : > { %v1398_v31 = vpop.permute.xlu1 %1397  ;;  %2410 = vrot.lane.b32.xlu0 %v4855_v63, %s6858_s29 }
 0x230   : > { %v1405_v0 = vsel %vm525_vm1, %v1390_v57, %v1398_v31  ;;  %v1409_v51 = vsel %vm525_vm1, %v1398_v31, %v1390_v57  ;;  %v4057_v31 = vpop.eup %4056 }
 0x231   : > { %v1400_v3 = vpop.permute.xlu0 %1399  ;;  %2516 = vrot.lane.b32.xlu1 %v4851_v16, %s6861_s20  ;;  %v1425_v5 = vmul.f32 %v4899_v43, %v1409_v51  ;;  %v1426_v34 = vmul.f32 %v4902_v28, %v1405_v0  ;;  %v4059_v15 = vpop.eup %4058  ;;  %v1206_v51 = vmul.f32 %v4625_v37, %v4698_v20  ;;  %v1333_v33 = vadd.f32 1.0, %v4057_v31 }
 0x232   : > { %v1406_v6 = vsel %vm525_vm1, %v1392_v1, %v1400_v3  ;;  %v1410_v58 = vsel %vm525_vm1, %v1400_v3, %v1392_v1 }
 0x233   : > { %v1427_v36 = vmul.f32 %v4899_v43, %v1410_v58  ;;  %v1428_v57 = vmul.f32 %v4902_v28, %v1406_v6  ;;  %v4920_v11 = vpop.permute.xlu1 %1449  ;;  %2518 = vrot.lane.b32.xlu0 %v4855_v63, %s6861_s20  ;;  %v1208_v6 = vmul.f32 %v4627_v41, %v4705_v24  ;;  %4060 = vrcp.f32 %v1333_v33 }
 0x235   : > { %v1433_v17 = vpack.c.bf16 %v1427_v36, %v1425_v5  ;;  %v1452_v23 = vpop.permute.xlu0 %1451  ;;  %2608 = vrot.lane.b32.xlu1 %v4851_v16, %s6862_s21  ;;  %v1434_v1 = vpack.c.bf16 %v1428_v57, %v1426_v34  ;;  %v1335_v5 = vadd.f32 1.0, %v4059_v15  ;;  %v4955_v34 = vadd.f32 %v4629_v42, %v1206_v51 }
 0x236   : > { %v4960_v37 = vadd.f32 %v4631_v44, %v1208_v6  ;;  %v1458_v51 = vsel %vm558_vm2, %v4865_v19, %v1452_v23 }
 0x237   : > { %v4929_v56 = vpop.permute.xlu1 %1501  ;;  %1894 = vmatprep.subr.bf16.mxu0 %v1434_v1  ;;  %2610 = vrot.lane.b32.xlu0 %v4855_v63, %s6862_s21  ;;  %4062 = vrcp.f32 %v1335_v5  ;;  %v3707_v41 = vmul.f32 -1.442695, %v4955_v34  ;;  %v3714_v1 = vld [vmem:[%s6762_s1 + $0x2] sm:$0x3] }
 0x238   : > { %1895 = vmatpush1.bf16.msra.mxu0 %v1433_v17  ;;  %v3709_v42 = vmul.f32 -1.442695, %v4960_v37  ;;  %v1474_v6 = vrot.slane %v3714_v1, %v4397_v40 }
 0x239   : > { %v4936_v9 = vpop.permute.xlu0 %1503  ;;  %2148 = vrot.lane.b32.xlu1 %v4927_v27, %s4193_s25  ;;  %4064 = vpow2.f32 %v3707_v41 }
 0x23a   : > { %4066 = vpow2.f32 %v3709_v42 }
 0x23b   : > { %v4940_v0 = vpop.permute.xlu1 %1553  ;;  %2150 = vrot.lane.b32.xlu0 %v4934_v53, %s4193_s25 }
 0x23d   : > { %v4946_v3 = vpop.permute.xlu0 %1555  ;;  %2240 = vrot.lane.b32.xlu1 %v4927_v27, %s4192_s24  ;;  %v4061_v17 = vpop.eup %4060 }
 0x23e   : > { %v4990_v15 = vmul.f32 %v4061_v17, %v4876_v29  ;;  %v1457_v29 = vsel %vm558_vm2, %v4859_v55, %v4920_v11  ;;  %v3715_v17 = vld [vmem:[%s6762_s1 + $0x4] sm:$0x3] }
 0x23f   : > { %v1394_v58 = vpop.permute.xlu1 %1393  ;;  %2242 = vrot.lane.b32.xlu0 %v4934_v53, %s4192_s24 }
 0x241   : > { %v1396_v36 = vpop.permute.xlu0 %1395  ;;  %2332 = vrot.lane.b32.xlu1 %v4927_v27, %s4194_s26  ;;  %v4063_v31 = vpop.eup %4062 }
 0x242   : > { %v5003_v42 = vmul.f32 %v4063_v31, %v4883_v10 }
 0x243   : > { %v4962_v20 = vpop.permute.xlu1 %1445  ;;  %2334 = vrot.lane.b32.xlu0 %v4934_v53, %s4194_s26  ;;  %v4065_v62 = vpop.eup %4064 }
 0x245   : > { %v1448_v24 = vpop.permute.xlu0 %1447  ;;  %2424 = vrot.lane.b32.xlu1 %v4927_v27, %s6858_s29 }
 0x247   : > { %v4970_v57 = vpop.permute.xlu1 %1497  ;;  %2426 = vrot.lane.b32.xlu0 %v4934_v53, %s6858_s29 }
 0x249   : > { %v4974_v44 = vpop.permute.xlu0 %1499  ;;  %2532 = vrot.lane.b32.xlu1 %v4927_v27, %s6861_s20 }
 0x24b   : > { %v4978_v2 = vpop.permute.xlu1 %1549  ;;  %2534 = vrot.lane.b32.xlu0 %v4934_v53, %s6861_s20 }
 0x24d   : > { %v4985_v25 = vpop.permute.xlu0 %1551  ;;  %2624 = vrot.lane.b32.xlu1 %v4927_v27, %s6862_s21 }
 0x24f   : > { %v1402_v33 = vpop.permute.xlu1 %1401  ;;  %2626 = vrot.lane.b32.xlu0 %v4934_v53, %s6862_s21 }
 0x250   : > { %v1407_v5 = vsel %vm525_vm1, %v1394_v58, %v1402_v33  ;;  %v1411_v41 = vsel %vm525_vm1, %v1402_v33, %v1394_v58  ;;  %v1462_v58 = vsel %vm558_vm2, %v1452_v23, %v4865_v19  ;;  %v1480_v33 = vmul.f32 %v1474_v6, %v1458_v51  ;;  %v4067_v51 = vpop.eup %4066 }
 0x251   : > { %2136 = vrot.lane.b32.xlu1 %v4990_v15, %s4193_s25  ;;  %v1404_v12 = vpop.permute.xlu0 %1403  ;;  %v1429_v32 = vmul.f32 %v4899_v43, %v1411_v41  ;;  %v1430_v27 = vmul.f32 %v4902_v28, %v1407_v5  ;;  %v1209_v19 = vmul.f32 %v4633_v59, %v4713_v30  ;;  %v1211_v23 = vmul.f32 %v4635_v45, %v4719_v50 }
 0x252   : > { %v1408_v10 = vsel %vm525_vm1, %v1396_v36, %v1404_v12  ;;  %v1412_v31 = vsel %vm525_vm1, %v1404_v12, %v1396_v36  ;;  %v1470_v12 = vrot.slane %v3714_v1, %v4395_v39  ;;  %v5033_v36 = vrot.slane %v3715_v17, %v4395_v39 }
 0x253   : > { %v1431_v16 = vmul.f32 %v4899_v43, %v1412_v31  ;;  %v1432_v53 = vmul.f32 %v4902_v28, %v1408_v10  ;;  %v1454_v63 = vpop.permute.xlu1 %1453  ;;  %2138 = vrot.lane.b32.xlu0 %v5003_v42, %s4193_s25  ;;  %v1461_v43 = vsel %vm558_vm2, %v4920_v11, %v4859_v55  ;;  %v1478_v28 = vmul.f32 %v1474_v6, %v1457_v29 }
 0x254   : > { %v1334_v10 = vadd.f32 1.0, %v4065_v62  ;;  %v1479_v50 = vmul.f32 %v1470_v12, %v1462_v58  ;;  %v1459_v1 = vsel %vm558_vm2, %v4962_v20, %v1454_v63  ;;  %v5051_v62 = vadd.f32 %v4637_v46, %v1209_v19 }
 0x255   : > { %v1435_v5 = vpack.c.bf16 %v1431_v16, %v1429_v32  ;;  %2228 = vrot.lane.b32.xlu1 %v4990_v15, %s4192_s24  ;;  %v1456_v30 = vpop.permute.xlu0 %1455  ;;  %v1436_v41 = vpack.c.bf16 %v1432_v53, %v1430_v27  ;;  %v1486_v32 = vpack.c.bf16 %v1480_v33, %v1478_v28  ;;  %v1336_v16 = vadd.f32 1.0, %v4067_v51 }
 0x256   : > { %v1460_v31 = vsel %vm558_vm2, %v1448_v24, %v1456_v30  ;;  %v1464_v60 = vsel %vm558_vm2, %v1456_v30, %v1448_v24  ;;  %v1477_v27 = vmul.f32 %v1470_v12, %v1461_v43  ;;  %v1510_v53 = vsel %vm592_vm3, %v4878_v21, %v4936_v9 }
 0x257   : > { %v1484_v55 = vmul.f32 %v1474_v6, %v1460_v31  ;;  %v1506_v11 = vpop.permute.xlu1 %1505  ;;  %2230 = vrot.lane.b32.xlu0 %v5003_v42, %s4192_s24  ;;  %1896 = vmatprep.subr.bf16.mxu0 %v1436_v41  ;;  %v1526_v24 = vrot.slane %v3715_v17, %v4397_v40  ;;  %v1463_v29 = vsel %vm558_vm2, %v1454_v63, %v4962_v20  ;;  %4068 = vrcp.f32 %v1334_v10 }
 0x258   : > { %1897 = vmatpush1.bf16.msra.mxu0 %v1435_v5  ;;  %v1482_v58 = vmul.f32 %v1474_v6, %v1459_v1  ;;  %v1485_v19 = vpack.c.bf16 %v1479_v50, %v1477_v27  ;;  %v1509_v51 = vsel %vm592_vm3, %v4871_v26, %v4929_v56  ;;  %v1483_v43 = vmul.f32 %v1470_v12, %v1464_v60 }
 0x259   : > { %2320 = vrot.lane.b32.xlu1 %v4990_v15, %s4194_s26  ;;  %1898 = vmatprep.subr.bf16.mxu0 %v1486_v32  ;;  %v1508_v33 = vpop.permute.xlu0 %1507  ;;  %v5068_v17 = vadd.f32 %v4639_v47, %v1211_v23  ;;  %v1514_v63 = vsel %vm592_vm3, %v4936_v9, %v4878_v21  ;;  %v1532_v20 = vmul.f32 %v1526_v24, %v1510_v53  ;;  %4070 = vrcp.f32 %v1336_v16 }
 0x25a   : > { %v1488_v28 = vpack.c.bf16 %v1484_v55, %v1482_v58  ;;  %v3710_v5 = vmul.f32 -1.442695, %v5051_v62  ;;  %v1481_v30 = vmul.f32 %v1470_v12, %v1463_v29  ;;  %v1512_v60 = vsel %vm592_vm3, %v4974_v44, %v1508_v33  ;;  %v3716_v12 = vld [vmem:[%s6762_s1 + $0x6] sm:$0x3] }
 0x25b   : > { %v5074_v6 = vpop.permute.xlu1 %1557  ;;  %2322 = vrot.lane.b32.xlu0 %v5003_v42, %s4194_s26  ;;  %v1513_v21 = vsel %vm592_vm3, %v4929_v56, %v4871_v26  ;;  %v1530_v9 = vmul.f32 %v1526_v24, %v1509_v51  ;;  %v1531_v41 = vmul.f32 %v5033_v36, %v1514_v63  ;;  %v1511_v50 = vsel %vm592_vm3, %v4970_v57, %v1506_v11 }
 0x25c   : > { %1899 = vmatpush1.bf16.msra.mxu0 %v1485_v19  ;;  %v1487_v10 = vpack.c.bf16 %v1483_v43, %v1481_v30  ;;  %v3712_v1 = vmul.f32 -1.442695, %v5068_v17  ;;  %v1516_v26 = vsel %vm592_vm3, %v1508_v33, %v4974_v44  ;;  %v1536_v56 = vmul.f32 %v1526_v24, %v1512_v60 }
 0x25d   : > { %2412 = vrot.lane.b32.xlu1 %v4990_v15, %s6858_s29  ;;  %1900 = vmatprep.subr.bf16.mxu0 %v1488_v28  ;;  %v1560_v23 = vpop.permute.xlu0 %1559  ;;  %v1538_v55 = vpack.c.bf16 %v1532_v20, %v1530_v9  ;;  %4072 = vpow2.f32 %v3710_v5  ;;  %v1529_v32 = vmul.f32 %v5033_v36, %v1513_v21  ;;  %v1562_v16 = vsel %vm626_vm4, %v4893_v13, %v4946_v3 }
 0x25e   : > { %v1578_v27 = vrot.slane %v3716_v12, %v4397_v40  ;;  %v1515_v44 = vsel %vm592_vm3, %v1506_v11, %v4970_v57  ;;  %v1534_v53 = vmul.f32 %v1526_v24, %v1511_v50  ;;  %v1561_v33 = vsel %vm626_vm4, %v4885_v22, %v4940_v0 }
 0x25f   : > { %v5099_v31 = vpop.permute.xlu1 %2128  ;;  %2414 = vrot.lane.b32.xlu0 %v5003_v42, %s6858_s29  ;;  %v1537_v58 = vpack.c.bf16 %v1531_v41, %v1529_v32  ;;  %v1535_v19 = vmul.f32 %v5033_v36, %v1516_v26  ;;  %4074 = vpow2.f32 %v3712_v1  ;;  %v1566_v57 = vsel %vm626_vm4, %v4946_v3, %v4893_v13 }
 0x260   : > { %1901 = vmatpush1.bf16.msra.mxu0 %v1487_v10  ;;  %v1584_v11 = vmul.f32 %v1578_v27, %v1562_v16  ;;  %v1540_v51 = vpack.c.bf16 %v1536_v56, %v1534_v53  ;;  %v1574_v63 = vrot.slane %v3716_v12, %v4395_v39  ;;  %v1533_v20 = vmul.f32 %v5033_v36, %v1515_v44 }
 0x261   : > { %2520 = vrot.lane.b32.xlu1 %v4990_v15, %s6861_s20  ;;  %1902 = vmatprep.subr.bf16.mxu0 %v1538_v55  ;;  %v5114_v29 = vpop.permute.xlu0 %2130  ;;  %v4069_v43 = vpop.eup %4068  ;;  %v1564_v28 = vsel %vm626_vm4, %v4985_v25, %v1560_v23  ;;  %v1565_v13 = vsel %vm626_vm4, %v4940_v0, %v4885_v22  ;;  %v1582_v3 = vmul.f32 %v1578_v27, %v1561_v33 }
 0x262   : > { %v1583_v60 = vmul.f32 %v1574_v63, %v1566_v57  ;;  %v1539_v36 = vpack.c.bf16 %v1535_v19, %v1533_v20  ;;  %v1563_v21 = vsel %vm626_vm4, %v4978_v2, %v5074_v6  ;;  %v5147_v9 = vmul.f32 %v4069_v43, %v4955_v34  ;;  %v2176_v20 = vld [vmem:[%s6762_s1] sm:$0x3] }
 0x263   : > { %v5125_v24 = vpop.permute.xlu1 %2220  ;;  %2522 = vrot.lane.b32.xlu0 %v5003_v42, %s6861_s20  ;;  %v4071_v30 = vpop.eup %4070  ;;  %v1568_v22 = vsel %vm626_vm4, %v1560_v23, %v4985_v25  ;;  %v1588_v0 = vmul.f32 %v1578_v27, %v1564_v28  ;;  %v1590_v12 = vpack.c.bf16 %v1584_v11, %v1582_v3  ;;  %v1581_v10 = vmul.f32 %v1574_v63, %v1565_v13 }
 0x264   : > { %1903 = vmatpush1.bf16.msra.mxu0 %v1537_v58  ;;  %v5157_v50 = vmul.f32 %v4071_v30, %v4960_v37  ;;  %v1567_v34 = vsel %vm626_vm4, %v5074_v6, %v4978_v2  ;;  %v1586_v1 = vmul.f32 %v1578_v27, %v1563_v21  ;;  %v1587_v56 = vmul.f32 %v1574_v63, %v1568_v22 }
 0x265   : > { %2612 = vrot.lane.b32.xlu1 %v4990_v15, %s6862_s21  ;;  %1904 = vmatprep.subr.bf16.mxu0 %v1540_v51  ;;  %v5140_v5 = vpop.permute.xlu0 %2222  ;;  %v1589_v26 = vpack.c.bf16 %v1583_v60, %v1581_v10  ;;  %v1585_v32 = vmul.f32 %v1574_v63, %v1567_v34  ;;  %v1210_v6 = vmul.f32 %v4633_v59, %v4717_v8 }
 0x266   : > { %v1592_v37 = vpack.c.bf16 %v1588_v0, %v1586_v1  ;;  %v1212_v53 = vmul.f32 %v4635_v45, %v4726_v54  ;;  %v1598_v33 = vpack.c.bf16 %v4687_v18, %v4680_v14  ;;  %v1597_v45 = vpack.c.bf16 %v4649_v49, %v4646_v35 }
 0x267   : > { %v5152_v41 = vpop.permute.xlu1 %2312  ;;  %2614 = vrot.lane.b32.xlu0 %v5003_v42, %s6862_s21  ;;  %v4073_v23 = vpop.eup %4072  ;;  %v1591_v44 = vpack.c.bf16 %v1587_v56, %v1585_v32  ;;  %v5186_v59 = vadd.f32 %v4637_v46, %v1210_v6  ;;  %v1600_v46 = vpack.c.bf16 %v4751_v7, %v4746_v4  ;;  %v5225_v30 = vrot.slane %v2176_v20, %v4397_v40 }
 0x268   : > { %1905 = vmatpush1.bf16.msra.mxu0 %v1539_v36  ;;  %v1337_v2 = vadd.f32 1.0, %v4073_v23  ;;  %v5195_v54 = vadd.f32 %v4639_v47, %v1212_v53  ;;  %v1599_v47 = vpack.c.bf16 %v4729_v61, %v4722_v48  ;;  %v5228_v60 = vrot.slane %v2176_v20, %v4395_v39 }
 0x269   : > { %2152 = vrot.lane.b32.xlu1 %v5147_v9, %s4193_s25  ;;  %1906 = vmatprep.subr.bf16.mxu0 %v1590_v12  ;;  %v5165_v25 = vpop.permute.xlu0 %2314  ;;  %v4075_v16 = vpop.eup %4074  ;;  %v3711_v11 = vmul.f32 -1.442695, %v5186_v59 }
 0x26a   : > { %v1339_v19 = vadd.f32 1.0, %v4075_v16  ;;  %4076 = vrcp.f32 %v1337_v2  ;;  %v3713_v43 = vmul.f32 -1.442695, %v5195_v54 }
 0x26b   : > { %v5167_v55 = vpop.permute.xlu1 %2404  ;;  %2154 = vrot.lane.b32.xlu0 %v5157_v50, %s4193_s25 }
 0x26c   : > { %1907 = vmatpush1.bf16.msra.mxu0 %v1589_v26  ;;  %4078 = vrcp.f32 %v1339_v19 }
 0x26d   : > { %2244 = vrot.lane.b32.xlu1 %v5147_v9, %s4192_s24  ;;  %1908 = vmatprep.subr.bf16.mxu0 %v1592_v37  ;;  %v5175_v27 = vpop.permute.xlu0 %2406  ;;  %4080 = vpow2.f32 %v3711_v11 }
 0x26e   : > { %6870 = vst [vmem:[#allocation11_spill] sm:$0xff] %v5175_v27  ;;  %4082 = vpow2.f32 %v3713_v43 }
 0x26f   : > { %v5179_v58 = vpop.permute.xlu1 %2512  ;;  %2246 = vrot.lane.b32.xlu0 %v5157_v50, %s4192_s24 }
 0x270   : > { %6871 = vst [vmem:[#allocation12_spill] sm:$0xff] %v5179_v58  ;;  %1909 = vmatpush1.bf16.msra.mxu0 %v1591_v44 }
 0x271   : > { %2336 = vrot.lane.b32.xlu1 %v5147_v9, %s4194_s26  ;;  %1910 = vmatprep.subr.bf16.mxu0 %v1598_v33  ;;  %v5190_v8 = vpop.permute.xlu0 %2514 }
 0x272   : > { %6872 = vst [vmem:[#allocation13_spill] sm:$0xff] %v5190_v8 }
 0x273   : > { %v5197_v57 = vpop.permute.xlu1 %2604  ;;  %2338 = vrot.lane.b32.xlu0 %v5157_v50, %s4194_s26 }
 0x274   : > { %6873 = vst [vmem:[#allocation14_spill] sm:$0xff] %v5197_v57  ;;  %1911 = vmatpush1.bf16.msra.mxu0 %v1597_v45  ;;  %v4077_v13 = vpop.eup %4076 }
 0x275   : > { %2428 = vrot.lane.b32.xlu1 %v5147_v9, %s6858_s29  ;;  %v5206_v51 = vpop.permute.xlu0 %2606  ;;  %1912 = vmatprep.subr.bf16.mxu0 %v1600_v46  ;;  %v5239_v12 = vmul.f32 %v4077_v13, %v5051_v62 }
 0x276   : > { %6874 = vst [vmem:[#allocation15_spill] sm:$0xff] %v5206_v51  ;;  %v4079_v0 = vpop.eup %4078 }
 0x277   : > { %v5211_v63 = vpop.permute.xlu1 %2696  ;;  %2430 = vrot.lane.b32.xlu0 %v5157_v50, %s6858_s29  ;;  %v5256_v56 = vmul.f32 %v4079_v0, %v5068_v17  ;;  %v4081_v16 = vpop.eup %4080 }
 0x278   : > { %1913 = vmatpush1.bf16.msra.mxu0 %v1599_v47  ;;  %v4083_v6 = vpop.eup %4082  ;;  %v1338_v44 = vadd.f32 1.0, %v4081_v16 }
 0x279   : > { %2536 = vrot.lane.b32.xlu1 %v5147_v9, %s6861_s20  ;;  %v5220_v28 = vpop.permute.xlu0 %2698  ;;  %6875 = vst [vmem:[#allocation16_spill] sm:$0xff] %v5256_v56  ;;  %v1340_v33 = vadd.f32 1.0, %v4083_v6 }
 0x27a   : > { %4084 = vrcp.f32 %v1338_v44 }
 0x27b   : > { %v2145_v3 = vpop.permute.xlu1 %2144  ;;  %2538 = vrot.lane.b32.xlu0 %v5157_v50, %s6861_s20  ;;  %4086 = vrcp.f32 %v1340_v33 }
 0x27c   : > { %v2168_v36 = vsel %vm525_vm1, %v2145_v3, %v5099_v31  ;;  %v2160_v21 = vsel %vm525_vm1, %v5099_v31, %v2145_v3 }
 0x27d   : > { %2628 = vrot.lane.b32.xlu1 %v5147_v9, %s6862_s21  ;;  %v2147_v22 = vpop.permute.xlu0 %2146  ;;  %v2189_v31 = vmul.f32 %v5225_v30, %v2160_v21  ;;  %v2188_v62 = vmul.f32 %v5228_v60, %v2168_v36 }
 0x27e   : > { %v2169_v10 = vsel %vm525_vm1, %v2147_v22, %v5114_v29  ;;  %v2161_v34 = vsel %vm525_vm1, %v5114_v29, %v2147_v22 }
 0x27f   : > { %v5247_v1 = vpop.permute.xlu1 %2236  ;;  %2630 = vrot.lane.b32.xlu0 %v5157_v50, %s6862_s21  ;;  %v2191_v23 = vmul.f32 %v5225_v30, %v2161_v34  ;;  %v2190_v26 = vmul.f32 %v5228_v60, %v2169_v10 }
 0x281   : > { %2140 = vrot.lane.b32.xlu1 %v5239_v12, %s4193_s25  ;;  %v5260_v29 = vpop.permute.xlu0 %2238  ;;  %v2205_v37 = vpack.c.bf16 %v2191_v23, %v2189_v31  ;;  %v2204_v32 = vpack.c.bf16 %v2190_v26, %v2188_v62  ;;  %v6886_v62 = vld [vmem:[#allocation8_spill] sm:$0xff] }
 0x283   : > { %v5262_v2 = vpop.permute.xlu1 %2328  ;;  %2142 = vrot.lane.b32.xlu0 %v5256_v56, %s4193_s25  ;;  %3089 = vmatprep.subr.bf16.mxu1 %v2205_v37 }
 0x284   : > { %3090 = vmatpush1.bf16.msra.mxu1 %v2204_v32  ;;  %v4085_v20 = vpop.eup %4084  ;;  %v6889_v32 = vld [vmem:[#allocation10_spill] sm:$0xff] }
 0x285   : > { %2232 = vrot.lane.b32.xlu1 %v5239_v12, %s4192_s24  ;;  %v5268_v17 = vpop.permute.xlu0 %2330  ;;  %v4087_v3 = vpop.eup %4086  ;;  %v5299_v36 = vmul.f32 %v4085_v20, %v5186_v59 }
 0x286   : > { %v5306_v22 = vmul.f32 %v4087_v3, %v5195_v54  ;;  %v6883_v54 = vld [vmem:[#allocation6_spill] sm:$0xff] }
 0x287   : > { %v5270_v53 = vpop.permute.xlu1 %2420  ;;  %2234 = vrot.lane.b32.xlu0 %v5256_v56, %s4192_s24  ;;  %6880 = vst [vmem:[#allocation21_spill] sm:$0xff] %v5299_v36 }
 0x288   : > { %6881 = vst [vmem:[#allocation22_spill] sm:$0xff] %v5306_v22 }
 0x289   : > { %2324 = vrot.lane.b32.xlu1 %v5239_v12, %s4194_s26  ;;  %v5276_v19 = vpop.permute.xlu0 %2422 }
 0x28b   : > { %v5278_v45 = vpop.permute.xlu1 %2528  ;;  %2326 = vrot.lane.b32.xlu0 %v5256_v56, %s4194_s26 }
 0x28c   : > { %6876 = vst [vmem:[#allocation17_spill] sm:$0xff] %v5278_v45 }
 0x28d   : > { %2416 = vrot.lane.b32.xlu1 %v5239_v12, %s6858_s29  ;;  %v5284_v46 = vpop.permute.xlu0 %2530 }
 0x28e   : > { %6877 = vst [vmem:[#allocation18_spill] sm:$0xff] %v5284_v46 }
 0x28f   : > { %v5286_v11 = vpop.permute.xlu1 %2620  ;;  %2418 = vrot.lane.b32.xlu0 %v5256_v56, %s6858_s29 }
 0x290   : > { %6878 = vst [vmem:[#allocation19_spill] sm:$0xff] %v5286_v11 }
 0x291   : > { %2524 = vrot.lane.b32.xlu1 %v5239_v12, %s6861_s20  ;;  %v5292_v47 = vpop.permute.xlu0 %2622 }
 0x292   : > { %6879 = vst [vmem:[#allocation20_spill] sm:$0xff] %v5292_v47 }
 0x293   : > { %v2133_v43 = vpop.permute.xlu1 %2132  ;;  %2526 = vrot.lane.b32.xlu0 %v5256_v56, %s6861_s20 }
 0x295   : > { %2616 = vrot.lane.b32.xlu1 %v5239_v12, %s6862_s21  ;;  %v2135_v13 = vpop.permute.xlu0 %2134 }
 0x297   : > { %v5301_v21 = vpop.permute.xlu1 %2224  ;;  %2618 = vrot.lane.b32.xlu0 %v5256_v56, %s6862_s21 }
 0x299   : > { %2156 = vrot.lane.b32.xlu1 %v5299_v36, %s4193_s25  ;;  %v5310_v0 = vpop.permute.xlu0 %2226 }
 0x29b   : > { %v5312_v10 = vpop.permute.xlu1 %2316  ;;  %2158 = vrot.lane.b32.xlu0 %v5306_v22, %s4193_s25 }
 0x29d   : > { %2712 = vrot.lane.b32.xlu1 %v4811_v52, %s6863_s22  ;;  %v5318_v59 = vpop.permute.xlu0 %2318 }
 0x29f   : > { %v5320_v34 = vpop.permute.xlu1 %2408  ;;  %2714 = vrot.lane.b32.xlu0 %v6883_v54, %s6863_s22 }
 0x2a0   : > { %6882 = vst [vmem:[#allocation23_spill] sm:$0xff] %v5320_v34 }
 0x2a1   : > { %2248 = vrot.lane.b32.xlu1 %v5299_v36, %s4192_s24  ;;  %v5326_v31 = vpop.permute.xlu0 %2410 }
 0x2a2   : > { %6884 = vst [vmem:[#allocation24_spill] sm:$0xff] %v5326_v31 }
 0x2a3   : > { %v5328_v23 = vpop.permute.xlu1 %2516  ;;  %2702 = vrot.lane.b32.xlu0 %v6886_v62, %s6863_s22 }
 0x2a4   : > { %6885 = vst [vmem:[#allocation25_spill] sm:$0xff] %v5328_v23 }
 0x2a5   : > { %2340 = vrot.lane.b32.xlu1 %v5299_v36, %s4194_s26  ;;  %v5334_v26 = vpop.permute.xlu0 %2518 }
 0x2a6   : > { %6887 = vst [vmem:[#allocation26_spill] sm:$0xff] %v5334_v26 }
 0x2a7   : > { %v5336_v37 = vpop.permute.xlu1 %2608  ;;  %2718 = vrot.lane.b32.xlu0 %v6889_v32, %s6863_s22 }
 0x2a8   : > { %6888 = vst [vmem:[#allocation27_spill] sm:$0xff] %v5336_v37 }
 0x2a9   : > { %2432 = vrot.lane.b32.xlu1 %v5299_v36, %s6858_s29  ;;  %v5342_v16 = vpop.permute.xlu0 %2610 }
 0x2aa   : > { %6890 = vst [vmem:[#allocation28_spill] sm:$0xff] %v5342_v16 }
 0x2ab   : > { %v2149_v6 = vpop.permute.xlu1 %2148  ;;  %2250 = vrot.lane.b32.xlu0 %v5306_v22, %s4192_s24 }
 0x2ac   : > { %v2162_v44 = vsel %vm525_vm1, %v2133_v43, %v2149_v6  ;;  %v2170_v33 = vsel %vm525_vm1, %v2149_v6, %v2133_v43 }
 0x2ad   : > { %2540 = vrot.lane.b32.xlu1 %v5299_v36, %s6861_s20  ;;  %v2151_v20 = vpop.permute.xlu0 %2150  ;;  %v2192_v16 = vmul.f32 %v5228_v60, %v2170_v33  ;;  %v2193_v47 = vmul.f32 %v5225_v30, %v2162_v44 }
 0x2ae   : > { %v2163_v3 = vsel %vm525_vm1, %v2135_v13, %v2151_v20  ;;  %v2171_v37 = vsel %vm525_vm1, %v2151_v20, %v2135_v13 }
 0x2af   : > { %v2194_v51 = vmul.f32 %v5228_v60, %v2171_v37  ;;  %v2195_v23 = vmul.f32 %v5225_v30, %v2163_v3  ;;  %v5360_v57 = vpop.permute.xlu1 %2240  ;;  %1607 = vrot.lane.b32.xlu0 %v4649_v49, %s6861_s20  ;;  %v6891_v37 = vld [vmem:[#allocation7_spill] sm:$0xff] }
 0x2b1   : > { %2632 = vrot.lane.b32.xlu1 %v5299_v36, %s6862_s21  ;;  %v5366_v43 = vpop.permute.xlu0 %2242  ;;  %v2207_v6 = vpack.c.bf16 %v2195_v23, %v2193_v47  ;;  %v2206_v13 = vpack.c.bf16 %v2194_v51, %v2192_v16  ;;  %v6893_v47 = vld [vmem:[#allocation9_spill] sm:$0xff] }
 0x2b3   : > { %v5368_v20 = vpop.permute.xlu1 %2332  ;;  %1615 = vrot.lane.b32.xlu0 %v4687_v18, %s6861_s20  ;;  %3091 = vmatprep.subr.bf16.mxu1 %v2207_v6 }
 0x2b4   : > { %3092 = vmatpush1.bf16.msra.mxu1 %v2206_v13 }
 0x2b5   : > { %2700 = vrot.lane.b32.xlu1 %v6891_v37, %s6863_s22  ;;  %v5374_v44 = vpop.permute.xlu0 %2334 }
 0x2b7   : > { %v5376_v33 = vpop.permute.xlu1 %2424  ;;  %2706 = vrot.lane.b32.xlu0 %v5003_v42, %s6863_s22 }
 0x2b8   : > { %6892 = vst [vmem:[#allocation29_spill] sm:$0xff] %v5376_v33 }
 0x2b9   : > { %2716 = vrot.lane.b32.xlu1 %v6893_v47, %s6863_s22  ;;  %v5382_v51 = vpop.permute.xlu0 %2426 }
 0x2ba   : > { %6894 = vst [vmem:[#allocation30_spill] sm:$0xff] %v5382_v51 }
 0x2bb   : > { %v5384_v23 = vpop.permute.xlu1 %2532  ;;  %2342 = vrot.lane.b32.xlu0 %v5306_v22, %s4194_s26  ;;  %s6913_s26 = smov 111  }
 0x2bc   : > { %6895 = vst [vmem:[#allocation31_spill] sm:$0xff] %v5384_v23 }
 0x2bd   : > { %1605 = vrot.lane.b32.xlu1 %v4646_v35, %s6861_s20  ;;  %v5390_v16 = vpop.permute.xlu0 %2534 }
 0x2be   : > { %6896 = vst [vmem:[#allocation32_spill] sm:$0xff] %v5390_v16 }
 0x2bf   : > { %v5392_v3 = vpop.permute.xlu1 %2624  ;;  %2722 = vrot.lane.b32.xlu0 %v5157_v50, %s6863_s22 }
 0x2c0   : > { %6897 = vst [vmem:[#allocation33_spill] sm:$0xff] %v5392_v3  ;;  %v3958_v3 = vld [vmem:[%s6772_s11 + $0x4] ss:$20 sps:$4 sm:$0xff]  }
 0x2c1   : > { %1613 = vrot.lane.b32.xlu1 %v4680_v14, %s6861_s20  ;;  %v5398_v6 = vpop.permute.xlu0 %2626  ;;  %3121 = vmatprep.mubr.bf16.mxu1 %v3958_v3 }
 0x2c2   : > { %6898 = vst [vmem:[#allocation34_spill] sm:$0xff] %v5398_v6 }
 0x2c3   : > { %v2137_v13 = vpop.permute.xlu1 %2136  ;;  %1611 = vrot.lane.b32.xlu0 %v4729_v61, %s6861_s20 }
 0x2c5   : > { %2704 = vrot.lane.b32.xlu1 %v4990_v15, %s6863_s22  ;;  %v2139_v23 = vpop.permute.xlu0 %2138 }
 0x2c7   : > { %v5404_v11 = vpop.permute.xlu1 %2228  ;;  %1619 = vrot.lane.b32.xlu0 %v4751_v7, %s6861_s20 }
 0x2c9   : > { %2720 = vrot.lane.b32.xlu1 %v5147_v9, %s6863_s22  ;;  %v5413_v6 = vpop.permute.xlu0 %2230 }
 0x2cb   : > { %v5415_v16 = vpop.permute.xlu1 %2320  ;;  %2434 = vrot.lane.b32.xlu0 %v5306_v22, %s6858_s29 }
 0x2cc   : > { %6899 = vst [vmem:[#allocation35_spill] sm:$0xff] %v5415_v16 }
 0x2cd   : > { %1609 = vrot.lane.b32.xlu1 %v4722_v48, %s6861_s20  ;;  %v5421_v26 = vpop.permute.xlu0 %2322 }
 0x2cf   : > { %v5423_v58 = vpop.permute.xlu1 %2412  ;;  %2710 = vrot.lane.b32.xlu0 %v5256_v56, %s6863_s22 }
 0x2d0   : > { %6900 = vst [vmem:[#allocation36_spill] sm:$0xff] %v5423_v58 }
 0x2d1   : > { %1617 = vrot.lane.b32.xlu1 %v4746_v4, %s6861_s20  ;;  %v5429_v45 = vpop.permute.xlu0 %2414 }
 0x2d2   : > { %6901 = vst [vmem:[#allocation37_spill] sm:$0xff] %v5429_v45 }
 0x2d3   : > { %v5431_v3 = vpop.permute.xlu1 %2520  ;;  %1659 = vrot.lane.b32.xlu0 %v4649_v49, %s6862_s21 }
 0x2d4   : > { %6902 = vst [vmem:[#allocation38_spill] sm:$0xff] %v5431_v3 }
 0x2d5   : > { %2708 = vrot.lane.b32.xlu1 %v5239_v12, %s6863_s22  ;;  %v5437_v8 = vpop.permute.xlu0 %2522 }
 0x2d6   : > { %6903 = vst [vmem:[#allocation39_spill] sm:$0xff] %v5437_v8 }
 0x2d7   : > { %v5439_v46 = vpop.permute.xlu1 %2612  ;;  %1667 = vrot.lane.b32.xlu0 %v4687_v18, %s6862_s21 }
 0x2d8   : > { %6904 = vst [vmem:[#allocation40_spill] sm:$0xff] %v5439_v46 }
 0x2d9   : > { %2724 = vrot.lane.b32.xlu1 %v5299_v36, %s6863_s22  ;;  %v5445_v58 = vpop.permute.xlu0 %2614 }
 0x2da   : > { %6905 = vst [vmem:[#allocation41_spill] sm:$0xff] %v5445_v58 }
 0x2db   : > { %v2153_v45 = vpop.permute.xlu1 %2152  ;;  %1663 = vrot.lane.b32.xlu0 %v4729_v61, %s6862_s21 }
 0x2dc   : > { %v2164_v3 = vsel %vm525_vm1, %v2137_v13, %v2153_v45  ;;  %v2172_v8 = vsel %vm525_vm1, %v2153_v45, %v2137_v13 }
 0x2dd   : > { %1657 = vrot.lane.b32.xlu1 %v4646_v35, %s6862_s21  ;;  %v2155_v46 = vpop.permute.xlu0 %2154  ;;  %v2196_v33 = vmul.f32 %v5228_v60, %v2172_v8  ;;  %v2197_v31 = vmul.f32 %v5225_v30, %v2164_v3 }
 0x2de   : > { %v2165_v34 = vsel %vm525_vm1, %v2139_v23, %v2155_v46  ;;  %v2173_v58 = vsel %vm525_vm1, %v2155_v46, %v2139_v23 }
 0x2df   : > { %v2198_v51 = vmul.f32 %v5228_v60, %v2173_v58  ;;  %v2199_v36 = vmul.f32 %v5225_v30, %v2165_v34  ;;  %v5463_v56 = vpop.permute.xlu1 %2244  ;;  %1671 = vrot.lane.b32.xlu0 %v4751_v7, %s6862_s21 }
 0x2e1   : > { %1665 = vrot.lane.b32.xlu1 %v4680_v14, %s6862_s21  ;;  %v5469_v45 = vpop.permute.xlu0 %2246  ;;  %v2209_v13 = vpack.c.bf16 %v2199_v36, %v2197_v31  ;;  %v2208_v46 = vpack.c.bf16 %v2198_v51, %v2196_v33 }
 0x2e3   : > { %v5471_v23 = vpop.permute.xlu1 %2336  ;;  %1711 = vrot.lane.b32.xlu0 %v4649_v49, %s6863_s22  ;;  %3093 = vmatprep.subr.bf16.mxu1 %v2209_v13 }
 0x2e4   : > { %6906 = vst [vmem:[#allocation42_spill] sm:$0xff] %v5471_v23  ;;  %3094 = vmatpush1.bf16.msra.mxu1 %v2208_v46 }
 0x2e5   : > { %1661 = vrot.lane.b32.xlu1 %v4722_v48, %s6862_s21  ;;  %v5477_v58 = vpop.permute.xlu0 %2338 }
 0x2e7   : > { %v5479_v8 = vpop.permute.xlu1 %2428  ;;  %1719 = vrot.lane.b32.xlu0 %v4687_v18, %s6863_s22 }
 0x2e8   : > { %6907 = vst [vmem:[#allocation43_spill] sm:$0xff] %v5479_v8 }
 0x2e9   : > { %1669 = vrot.lane.b32.xlu1 %v4746_v4, %s6862_s21  ;;  %v5485_v36 = vpop.permute.xlu0 %2430 }
 0x2ea   : > { %6908 = vst [vmem:[#allocation44_spill] sm:$0xff] %v5485_v36 }
 0x2eb   : > { %v5487_v34 = vpop.permute.xlu1 %2536  ;;  %2542 = vrot.lane.b32.xlu0 %v5306_v22, %s6861_s20 }
 0x2ec   : > { %6909 = vst [vmem:[#allocation45_spill] sm:$0xff] %v5487_v34 }
 0x2ed   : > { %1709 = vrot.lane.b32.xlu1 %v4646_v35, %s6863_s22  ;;  %v5493_v31 = vpop.permute.xlu0 %2538 }
 0x2ee   : > { %6910 = vst [vmem:[#allocation46_spill] sm:$0xff] %v5493_v31 }
 0x2ef   : > { %v5495_v33 = vpop.permute.xlu1 %2628  ;;  %1715 = vrot.lane.b32.xlu0 %v4729_v61, %s6863_s22 }
 0x2f0   : > { %6911 = vst [vmem:[#allocation47_spill] sm:$0xff] %v5495_v33  ;;  %v6914_v33 = vld [vmem:[#allocation4_spill] sm:$0xff] }
 0x2f1   : > { %1717 = vrot.lane.b32.xlu1 %v4680_v14, %s6863_s22  ;;  %v5501_v51 = vpop.permute.xlu0 %2630 }
 0x2f2   : > { %6912 = vst [vmem:[#allocation48_spill] sm:$0xff] %v5501_v51  ;;  %v6916_v51 = vld [vmem:[#allocation3_spill] sm:$0xff] }
 0x2f3   : > { %v2141_v3 = vpop.permute.xlu1 %2140  ;;  %1723 = vrot.lane.b32.xlu0 %v4751_v7, %s6863_s22 }
 0x2f5   : > { %1713 = vrot.lane.b32.xlu1 %v4722_v48, %s6863_s22  ;;  %v2143_v13 = vpop.permute.xlu0 %2142 }
 0x2f7   : > { %v5507_v46 = vpop.permute.xlu1 %2232  ;;  %2790 = vrot.lane.b32.xlu0 %v6914_v33, %s6913_s26 }
 0x2f9   : > { %1721 = vrot.lane.b32.xlu1 %v4746_v4, %s6863_s22  ;;  %v5513_v34 = vpop.permute.xlu0 %2234 }
 0x2fb   : > { %v5515_v31 = vpop.permute.xlu1 %2324  ;;  %2634 = vrot.lane.b32.xlu0 %v5306_v22, %s6862_s21 }
 0x2fc   : > { %6915 = vst [vmem:[#allocation49_spill] sm:$0xff] %v5515_v31 }
 0x2fd   : > { %2788 = vrot.lane.b32.xlu1 %v6916_v51, %s6913_s26  ;;  %v5521_v8 = vpop.permute.xlu0 %2326 }
 0x2fe   : > { %6917 = vst [vmem:[#allocation50_spill] sm:$0xff] %v5521_v8 }
 0x2ff   : > { %v5523_v36 = vpop.permute.xlu1 %2416  ;;  %2806 = vrot.lane.b32.xlu0 %v6883_v54, %s6913_s26 }
 0x300   : > { %6918 = vst [vmem:[#allocation51_spill] sm:$0xff] %v5523_v36  ;;  %v3737_v36 = vld [vmem:[%s6762_s1 + $0x2] sm:$0x3] }
 0x301   : > { %2804 = vrot.lane.b32.xlu1 %v4811_v52, %s6913_s26  ;;  %v5529_v33 = vpop.permute.xlu0 %2418  ;;  %v5547_v52 = vrot.slane %v3737_v36, %v4397_v40  ;;  %v5575_v8 = vrot.slane %v3737_v36, %v4395_v39 }
 0x302   : > { %6919 = vst [vmem:[#allocation52_spill] sm:$0xff] %v5529_v33 }
 0x303   : > { %v5531_v16 = vpop.permute.xlu1 %2524  ;;  %2794 = vrot.lane.b32.xlu0 %v6886_v62, %s6913_s26  ;;  %v2252_v62 = vsel %vm558_vm2, %v5125_v24, %v5247_v1 }
 0x304   : > { %6920 = vst [vmem:[#allocation53_spill] sm:$0xff] %v5531_v16  ;;  %v2253_v16 = vsel %vm558_vm2, %v5140_v5, %v5260_v29  ;;  %v2281_v31 = vmul.f32 %v5547_v52, %v2252_v62 }
 0x305   : > { %2792 = vrot.lane.b32.xlu1 %v6891_v37, %s6913_s26  ;;  %v5537_v51 = vpop.permute.xlu0 %2526 }
 0x306   : > { %6921 = vst [vmem:[#allocation54_spill] sm:$0xff] %v5537_v51 }
 0x307   : > { %v5542_v54 = vpop.permute.xlu1 %2616  ;;  %2810 = vrot.lane.b32.xlu0 %v6889_v32, %s6913_s26  ;;  %v3742_v32 = vld [vmem:[%s6762_s1 + $0xe] sm:$0x3] }
 0x308   : > { %6922 = vst [vmem:[#allocation55_spill] sm:$0xff] %v5542_v54  ;;  %v3973_v54 = vld [vmem:[%s6766_s5 + $0x4] ss:$12 sps:$4 sm:$0xff]   ;;  %v5607_v27 = vrot.slane %v3742_v32, %v4397_v40 }
 0x309   : > { %2808 = vrot.lane.b32.xlu1 %v6893_v47, %s6913_s26  ;;  %v5555_v51 = vpop.permute.xlu0 %2618  ;;  %1926 = vmatprep.mubr.bf16.mxu0 %v3973_v54  ;;  %v2261_v54 = vsel %vm558_vm2, %v5260_v29, %v5140_v5 }
 0x30a   : > { %6923 = vst [vmem:[#allocation56_spill] sm:$0xff] %v5555_v51  ;;  %v2283_v51 = vmul.f32 %v5547_v52, %v2253_v16  ;;  %v2282_v23 = vmul.f32 %v5575_v8, %v2261_v54 }
 0x30b   : > { %v2157_v37 = vpop.permute.xlu1 %2156  ;;  %2726 = vrot.lane.b32.xlu0 %v5306_v22, %s6863_s22  ;;  %v2260_v22 = vsel %vm558_vm2, %v5247_v1, %v5125_v24  ;;  %v5597_v1 = vrot.slane %v3742_v32, %v4395_v39  ;;  %s6669_s22 = scalar_lea.vmem %s6775_s14, %s3787_s16 }
 0x30c   : > { %v2166_v47 = vsel %vm525_vm1, %v2141_v3, %v2157_v37  ;;  %v2174_v33 = vsel %vm525_vm1, %v2157_v37, %v2141_v3  ;;  %v2255_v37 = vsel %vm558_vm2, %v5310_v0, %v5366_v43 }
 0x30d   : > { %1761 = vrot.lane.b32.xlu1 %v4646_v35, %s6913_s26  ;;  %v2159_v16 = vpop.permute.xlu0 %2158  ;;  %v2200_v5 = vmul.f32 %v5228_v60, %v2174_v33  ;;  %v2201_v29 = vmul.f32 %v5225_v30, %v2166_v47  ;;  %v2297_v33 = vpack.c.bf16 %v2283_v51, %v2281_v31  ;;  %v2263_v31 = vsel %vm558_vm2, %v5366_v43, %v5310_v0 }
 0x30e   : > { %v2167_v36 = vsel %vm525_vm1, %v2143_v13, %v2159_v16  ;;  %v2175_v24 = vsel %vm525_vm1, %v2159_v16, %v2143_v13  ;;  %v2287_v51 = vmul.f32 %v5547_v52, %v2255_v37  ;;  %v2280_v43 = vmul.f32 %v5575_v8, %v2260_v22 }
 0x30f   : > { %v2202_v35 = vmul.f32 %v5228_v60, %v2175_v24  ;;  %v2203_v62 = vmul.f32 %v5225_v30, %v2167_v36  ;;  %v2713_v3 = vpop.permute.xlu1 %2712  ;;  %1763 = vrot.lane.b32.xlu0 %v4649_v49, %s6913_s26  ;;  %v2254_v60 = vsel %vm558_vm2, %v5301_v21, %v5360_v57  ;;  %v2262_v24 = vsel %vm558_vm2, %v5360_v57, %v5301_v21 }
 0x310   : > { %v2728_v13 = vsel %vm740_vm7, %v5211_v63, %v2713_v3  ;;  %v2736_v30 = vsel %vm740_vm7, %v2713_v3, %v5211_v63  ;;  %v2265_v21 = vsel %vm558_vm2, %v5469_v45, %v5413_v6 }
 0x311   : > { %1769 = vrot.lane.b32.xlu1 %v4680_v14, %s6913_s26  ;;  %v2715_v49 = vpop.permute.xlu0 %2714  ;;  %v2211_v32 = vpack.c.bf16 %v2203_v62, %v2201_v29  ;;  %v2210_v47 = vpack.c.bf16 %v2202_v35, %v2200_v5  ;;  %v5633_v14 = vmul.f32 %v5597_v1, %v2728_v13  ;;  %v5649_v37 = vmul.f32 %v5607_v27, %v2736_v30 }
 0x312   : > { %v2729_v54 = vsel %vm740_vm7, %v5220_v28, %v2715_v49  ;;  %v2737_v63 = vsel %vm740_vm7, %v2715_v49, %v5220_v28  ;;  %v2257_v28 = vsel %vm558_vm2, %v5413_v6, %v5469_v45  ;;  %v2285_v5 = vmul.f32 %v5547_v52, %v2254_v60 }
 0x313   : > { %v5636_v16 = vmul.f32 %v5597_v1, %v2729_v54  ;;  %v5639_v36 = vmul.f32 %v5607_v27, %v2737_v63  ;;  %v2249_v0 = vpop.permute.xlu1 %2248  ;;  %1771 = vrot.lane.b32.xlu0 %v4687_v18, %s6913_s26  ;;  %3095 = vmatprep.subr.bf16.mxu1 %v2211_v32  ;;  %v2286_v29 = vmul.f32 %v5575_v8, %v2263_v31 }
 0x314   : > { %3096 = vmatpush1.bf16.msra.mxu1 %v2210_v47  ;;  %v2256_v35 = vsel %vm558_vm2, %v5404_v11, %v5463_v56  ;;  %v2296_v62 = vpack.c.bf16 %v2282_v23, %v2280_v43  ;;  %v2291_v3 = vmul.f32 %v5547_v52, %v2257_v28  ;;  %v2284_v60 = vmul.f32 %v5575_v8, %v2262_v24  ;;  %v3738_v23 = vld [vmem:[%s6762_s1 + $0x4] sm:$0x3] }
 0x315   : > { %2796 = vrot.lane.b32.xlu1 %v4990_v15, %s6913_s26  ;;  %3097 = vmatprep.subr.bf16.mxu1 %v2297_v33  ;;  %v2703_v22 = vpop.permute.xlu0 %2702  ;;  %v2773_v57 = vpack.c.bf16 %v5639_v36, %v5649_v37  ;;  %v2299_v33 = vpack.c.bf16 %v2287_v51, %v2285_v5  ;;  %v2264_v6 = vsel %vm558_vm2, %v5463_v56, %v5404_v11  ;;  %v3981_v36 = vld [vmem:[%s6766_s5 + $0x18] ss:$12 sps:$4 sm:$0xff]  }
 0x316   : > { %v2289_v45 = vmul.f32 %v5547_v52, %v2256_v35  ;;  %v2290_v49 = vmul.f32 %v5575_v8, %v2265_v21  ;;  %v2298_v31 = vpack.c.bf16 %v2286_v29, %v2284_v60  ;;  %v2345_v56 = vsel %vm592_vm3, %v5165_v25, %v5268_v17 }
 0x317   : > { %v5672_v13 = vpop.permute.xlu1 %2340  ;;  %2798 = vrot.lane.b32.xlu0 %v5003_v42, %s6913_s26  ;;  %v5705_v54 = vrot.slane %v3738_v23, %v4397_v40  ;;  %v2288_v63 = vmul.f32 %v5575_v8, %v2264_v6  ;;  %v2258_v43 = vsel %vm558_vm2, %v5507_v46, %v2249_v0  ;;  %v2266_v28 = vsel %vm558_vm2, %v2249_v0, %v5507_v46 }
 0x318   : > { %3098 = vmatpush1.bf16.msra.mxu1 %v2296_v62  ;;  %v2301_v51 = vpack.c.bf16 %v2291_v3, %v2289_v45  ;;  %v2344_v24 = vsel %vm592_vm3, %v5152_v41, %v5262_v2  ;;  %v2353_v5 = vsel %vm592_vm3, %v5268_v17, %v5165_v25  ;;  %v3739_v25 = vld [vmem:[%s6762_s1 + $0x6] sm:$0x3]  ;;  %v2292_v17 = vmul.f32 %v5575_v8, %v2266_v28 }
 0x319   : > { %2812 = vrot.lane.b32.xlu1 %v5147_v9, %s6913_s26  ;;  %3099 = vmatprep.subr.bf16.mxu1 %v2299_v33  ;;  %v2719_v30 = vpop.permute.xlu0 %2718  ;;  %v2375_v29 = vmul.f32 %v5705_v54, %v2345_v56  ;;  %v2300_v35 = vpack.c.bf16 %v2290_v49, %v2288_v63  ;;  %v2347_v33 = vsel %vm592_vm3, %v5318_v59, %v5374_v44 }
 0x31a   : > { %v5690_v32 = vsel %vm740_vm7, %v2703_v22, %v2719_v30  ;;  %v5694_v47 = vsel %vm740_vm7, %v2719_v30, %v2703_v22  ;;  %v5760_v45 = vrot.slane %v3739_v25, %v4395_v39  ;;  %v5763_v30 = vrot.slane %v3739_v25, %v4397_v40 }
 0x31b   : > { %v5700_v11 = vpop.permute.xlu1 %2432  ;;  %2814 = vrot.lane.b32.xlu0 %v5157_v50, %s6913_s26 }
 0x31c   : > { %3100 = vmatpush1.bf16.msra.mxu1 %v2298_v31 }
 0x31d   : > { %1765 = vrot.lane.b32.xlu1 %v4722_v48, %s6913_s26  ;;  %3101 = vmatprep.subr.bf16.mxu1 %v2301_v51  ;;  %v2251_v22 = vpop.permute.xlu0 %2250  ;;  %v2293_v48 = vmul.f32 %v5547_v52, %v2258_v43  ;;  %v2436_v51 = vsel %vm626_vm4, %v5167_v55, %v5270_v53  ;;  %v2357_v43 = vsel %vm592_vm3, %v5477_v58, %v5421_v26 }
 0x31e   : > { %v2259_v46 = vsel %vm558_vm2, %v5513_v34, %v2251_v22  ;;  %v2267_v0 = vsel %vm558_vm2, %v2251_v22, %v5513_v34  ;;  %v5743_v34 = vrot.slane %v3738_v23, %v4395_v39 }
 0x31f   : > { %v2294_v62 = vmul.f32 %v5575_v8, %v2267_v0  ;;  %v2295_v21 = vmul.f32 %v5547_v52, %v2259_v46  ;;  %v5738_v3 = vpop.permute.xlu1 %2540  ;;  %1767 = vrot.lane.b32.xlu0 %v4729_v61, %s6913_s26  ;;  %v2352_v8 = vsel %vm592_vm3, %v5262_v2, %v5152_v41  ;;  %v2373_v52 = vmul.f32 %v5705_v54, %v2344_v24  ;;  %v6926_v24 = vld [vmem:[#allocation35_spill] sm:$0xff]  ;;  %v6927_v0 = vld [vmem:[#allocation16_spill] sm:$0xff] }
 0x320   : > { %3102 = vmatpush1.bf16.msra.mxu1 %v2300_v35  ;;  %v2374_v6 = vmul.f32 %v5743_v34, %v2353_v5  ;;  %v2346_v41 = vsel %vm592_vm3, %v5312_v10, %v5368_v20  ;;  %v2379_v2 = vmul.f32 %v5705_v54, %v2347_v33  ;;  %v2372_v56 = vmul.f32 %v5743_v34, %v2352_v8 }
 0x321   : > { %1773 = vrot.lane.b32.xlu1 %v4746_v4, %s6913_s26  ;;  %v5756_v61 = vpop.permute.xlu0 %1607  ;;  %v2303_v60 = vpack.c.bf16 %v2295_v21, %v2293_v48  ;;  %v2302_v23 = vpack.c.bf16 %v2294_v62, %v2292_v17  ;;  %v2355_v4 = vsel %vm592_vm3, %v5374_v44, %v5318_v59  ;;  %v2389_v31 = vpack.c.bf16 %v2375_v29, %v2373_v52  ;;  %v6928_v21 = vld [vmem:[#allocation21_spill] sm:$0xff] }
 0x322   : > { %v2444_v59 = vsel %vm626_vm4, %v5270_v53, %v5167_v55  ;;  %v2349_v44 = vsel %vm592_vm3, %v5421_v26, %v5477_v58  ;;  %v2377_v63 = vmul.f32 %v5705_v54, %v2346_v41  ;;  %v6924_v53 = vld [vmem:[#allocation11_spill] sm:$0xff]  ;;  %v2388_v22 = vpack.c.bf16 %v2374_v6, %v2372_v56  ;;  %v6929_v41 = vld [vmem:[#allocation30_spill] sm:$0xff] }
 0x323   : > { %v5774_v49 = vpop.permute.xlu1 %2632  ;;  %1775 = vrot.lane.b32.xlu0 %v4751_v7, %s6913_s26  ;;  %3103 = vmatprep.subr.bf16.mxu1 %v2303_v60  ;;  %v2354_v7 = vsel %vm592_vm3, %v5368_v20, %v5312_v10  ;;  %v2437_v28 = vsel %vm626_vm4, %v6924_v53, %v5276_v19  ;;  %v2378_v10 = vmul.f32 %v5743_v34, %v2355_v4  ;;  %v6925_v20 = vld [vmem:[#allocation42_spill] sm:$0xff]  ;;  %v2000_v6 = vld [vmem:[%s6767_s6] sm:$0xff]  ;;  %v6930_v4 = vld [vmem:[#allocation24_spill] sm:$0xff] }
 0x324   : > { %3104 = vmatpush1.bf16.msra.mxu1 %v2302_v23  ;;  %v2348_v5 = vsel %vm592_vm3, %v6926_v24, %v6925_v20  ;;  %v2445_v26 = vsel %vm626_vm4, %v5276_v19, %v6924_v53  ;;  %v2356_v58 = vsel %vm592_vm3, %v6925_v20, %v6926_v24  ;;  %v2383_v29 = vmul.f32 %v5705_v54, %v2349_v44  ;;  %v6932_v44 = vld [vmem:[#allocation22_spill] sm:$0xff] }
 0x325   : > { %2800 = vrot.lane.b32.xlu1 %v5239_v12, %s6913_s26  ;;  %3105 = vmatprep.subr.bf16.mxu1 %v2389_v31  ;;  %v5802_v55 = vpop.permute.xlu0 %1615  ;;  %v2391_v35 = vpack.c.bf16 %v2379_v2, %v2377_v63  ;;  %v2376_v25 = vmul.f32 %v5743_v34, %v2354_v7  ;;  %v2382_v17 = vmul.f32 %v5743_v34, %v2357_v43  ;;  %v6931_v31 = vld [vmem:[#allocation49_spill] sm:$0xff] }
 0x326   : > { %v5827_v48 = vmul.f32 %v5760_v45, %v2444_v59  ;;  %v5830_v19 = vmul.f32 %v5763_v30, %v2436_v51  ;;  %v2381_v62 = vmul.f32 %v5705_v54, %v2348_v5  ;;  %v5836_v8 = vmul.f32 %v5760_v45, %v2445_v26 }
 0x327   : > { %v2701_v46 = vpop.permute.xlu1 %2700  ;;  %2802 = vrot.lane.b32.xlu0 %v6927_v0, %s6913_s26  ;;  %v5839_v52 = vmul.f32 %v5763_v30, %v2437_v28  ;;  %v2380_v60 = vmul.f32 %v5743_v34, %v2356_v58  ;;  %v2390_v23 = vpack.c.bf16 %v2378_v10, %v2376_v25  ;;  %v2439_v2 = vsel %vm626_vm4, %v6930_v4, %v6929_v41  ;;  %v6933_v58 = vld [vmem:[#allocation50_spill] sm:$0xff] }
 0x328   : > { %3106 = vmatpush1.bf16.msra.mxu1 %v2388_v22  ;;  %v2350_v56 = vsel %vm592_vm3, %v6931_v31, %v5672_v13  ;;  %v2358_v51 = vsel %vm592_vm3, %v5672_v13, %v6931_v31  ;;  %v2393_v7 = vpack.c.bf16 %v2383_v29, %v2381_v62  ;;  %v5861_v63 = vmul.f32 %v5597_v1, %v5690_v32  ;;  %v2001_v13 = vld [vmem:[%s6767_s6 + $0x8] sm:$0xff] }
 0x329   : > { %2816 = vrot.lane.b32.xlu1 %v6928_v21, %s6913_s26  ;;  %3107 = vmatprep.subr.bf16.mxu1 %v2391_v35  ;;  %v2707_v33 = vpop.permute.xlu0 %2706  ;;  %v2392_v28 = vpack.c.bf16 %v2382_v17, %v2380_v60  ;;  %v5872_v10 = vmul.f32 %v5607_v27, %v5694_v47  ;;  %v3717_v32 = vld [vmem:[%s6762_s1 + $0xa] sm:$0x3]  ;;  %v2384_v22 = vmul.f32 %v5743_v34, %v2358_v51 }
 0x32a   : > { %v2385_v26 = vmul.f32 %v5705_v54, %v2350_v56  ;;  %v5905_v56 = vrot.slane %v3717_v32, %v4395_v39  ;;  %v5908_v51 = vrot.slane %v3717_v32, %v4397_v40 }
 0x32b   : > { %v2717_v59 = vpop.permute.xlu1 %2716  ;;  %2818 = vrot.lane.b32.xlu0 %v6932_v44, %s6913_s26 }
 0x32c   : > { %v2730_v43 = vsel %vm740_vm7, %v2701_v46, %v2717_v59  ;;  %v2738_v53 = vsel %vm740_vm7, %v2717_v59, %v2701_v46  ;;  %3108 = vmatpush1.bf16.msra.mxu1 %v2390_v23  ;;  %v2002_v46 = vld [vmem:[%s6767_s6 + $0x10] sm:$0xff] }
 0x32d   : > { %v5878_v20 = vmul.f32 %v5597_v1, %v2730_v43  ;;  %v5881_v24 = vmul.f32 %v5607_v27, %v2738_v53  ;;  %2006 = vperm.xlu1 %3935, %v2000_v6   ;;  %3109 = vmatprep.subr.bf16.mxu1 %v2393_v7  ;;  %v2343_v5 = vpop.permute.xlu0 %2342  ;;  %v6934_v23 = vld [vmem:[#allocation29_spill] sm:$0xff]  ;;  %v6935_v6 = vld [vmem:[#allocation23_spill] sm:$0xff]  ;;  %v1622_v7 = vsel %vm672_vm5, %v5756_v61, %v5802_v55 }
 0x32e   : > { %v2351_v47 = vsel %vm592_vm3, %v6933_v58, %v2343_v5  ;;  %v2359_v29 = vsel %vm592_vm3, %v2343_v5, %v6933_v58  ;;  %v2438_v31 = vsel %vm626_vm4, %v6935_v6, %v6934_v23  ;;  %v2446_v59 = vsel %vm626_vm4, %v6934_v23, %v6935_v6  ;;  %v3308_v5 = vld [vmem:[%s6773_s12] sm:$0xff]  ;;  %v6937_v58 = vld [vmem:[#allocation37_spill] sm:$0xff] }
 0x32f   : > { %v2386_v25 = vmul.f32 %v5743_v34, %v2359_v29  ;;  %v2387_v17 = vmul.f32 %v5705_v54, %v2351_v47  ;;  %v1606_v62 = vpop.permute.xlu1 %1605  ;;  %2011 = vperm.xlu0 %3934, %v2001_v13   ;;  %v2003_v54 = vld [vmem:[%s6767_s6 + $0x18] sm:$0xff]  ;;  %v2481_v34 = vpack.c.bf16 %v5839_v52, %v5830_v19  ;;  %v1626_v19 = vsel %vm672_vm5, %v5802_v55, %v5756_v61 }
 0x330   : > { %3110 = vmatpush1.bf16.msra.mxu1 %v2392_v28  ;;  %v2471_v28 = vmul.f32 %v5763_v30, %v2439_v2  ;;  %v2447_v2 = vsel %vm626_vm4, %v6929_v41, %v6930_v4  ;;  %v1643_v47 = vmul.f32 %v5905_v56, %v1622_v7  ;;  %v3309_v4 = vld [vmem:[%s6773_s12 + $0x8] sm:$0xff]  ;;  %v2480_v7 = vpack.c.bf16 %v5836_v8, %v5827_v48  ;;  %v3311_v8 = vld [vmem:[%s6773_s12 + $0x18] sm:$0xff] }
 0x331   : > { %2016 = vperm.xlu1 %3935, %v2002_v46   ;;  %v2723_v43 = vpop.permute.xlu0 %2722  ;;  %v2395_v53 = vpack.c.bf16 %v2387_v17, %v2385_v26  ;;  %v2394_v13 = vpack.c.bf16 %v2386_v25, %v2384_v22  ;;  %v2469_v26 = vmul.f32 %v5763_v30, %v2438_v31  ;;  %v6936_v22 = vld [vmem:[#allocation44_spill] sm:$0xff]  ;;  %v1644_v46 = vmul.f32 %v5908_v51, %v1626_v19  ;;  %v6938_v31 = vld [vmem:[#allocation43_spill] sm:$0xff] }
 0x332   : > { %v2733_v52 = vsel %vm740_vm7, %v2707_v33, %v2723_v43  ;;  %v2741_v32 = vsel %vm740_vm7, %v2723_v43, %v2707_v33  ;;  %v2441_v61 = vsel %vm626_vm4, %v6937_v58, %v6936_v22  ;;  %v2449_v33 = vsel %vm626_vm4, %v6936_v22, %v6937_v58  ;;  %v3310_v43 = vld [vmem:[%s6773_s12 + $0x10] sm:$0xff] }
 0x333   : > { %v1614_v55 = vpop.permute.xlu1 %1613  ;;  %2021 = vperm.xlu0 %3934, %v2003_v54   ;;  %3111 = vmatprep.subr.bf16.mxu1 %v2395_v53  ;;  %v2470_v6 = vmul.f32 %v5760_v45, %v2447_v2  ;;  %v6939_v54 = vld [vmem:[#allocation36_spill] sm:$0xff]  ;;  %v2483_v53 = vpack.c.bf16 %v2471_v28, %v2469_v26  ;;  %v2468_v22 = vmul.f32 %v5760_v45, %v2446_v59  ;;  %v3312_v59 = vld [vmem:[%s6773_s12 + $0x20] sm:$0xff] }
 0x334   : > { %v1621_v29 = vsel %vm672_vm5, %v1606_v62, %v1614_v55  ;;  %v1625_v41 = vsel %vm672_vm5, %v1614_v55, %v1606_v62  ;;  %3112 = vmatpush1.bf16.msra.mxu1 %v2394_v13  ;;  %v2440_v62 = vsel %vm626_vm4, %v6939_v54, %v6938_v31  ;;  %v2475_v13 = vmul.f32 %v5763_v30, %v2441_v61  ;;  %v6940_v55 = vld [vmem:[#allocation51_spill] sm:$0xff] }
 0x335   : > { %v1641_v25 = vmul.f32 %v5905_v56, %v1621_v29  ;;  %v1642_v17 = vmul.f32 %v5908_v51, %v1625_v41  ;;  %3318 = vperm.xlu1 %3935, %v3308_v5   ;;  %3113 = vmatprep.subr.bf16.mxu1 %v2481_v34  ;;  %v1612_v23 = vpop.permute.xlu0 %1611  ;;  %v2448_v34 = vsel %vm626_vm4, %v6938_v31, %v6939_v54 }
 0x336   : > { %v2474_v48 = vmul.f32 %v5760_v45, %v2449_v33  ;;  %v2473_v28 = vmul.f32 %v5763_v30, %v2440_v62  ;;  %v2472_v58 = vmul.f32 %v5760_v45, %v2448_v34  ;;  %v2482_v61 = vpack.c.bf16 %v2470_v6, %v2468_v22  ;;  %v3314_v34 = vld [vmem:[%s6773_s12 + $0x30] sm:$0xff] }
 0x337   : > { %v1649_v19 = vpack.c.bf16 %v1643_v47, %v1641_v25  ;;  %v2705_v5 = vpop.permute.xlu1 %2704  ;;  %3323 = vperm.xlu0 %3934, %v3309_v4   ;;  %v1650_v2 = vpack.c.bf16 %v1644_v46, %v1642_v17  ;;  %v2442_v33 = vsel %vm626_vm4, %v6940_v55, %v5700_v11  ;;  %v2450_v47 = vsel %vm626_vm4, %v5700_v11, %v6940_v55  ;;  %v3313_v17 = vld [vmem:[%s6773_s12 + $0x28] sm:$0xff]  ;;  %v6942_v55 = vld [vmem:[#allocation5_spill] sm:$0xff] }
 0x338   : > { %3114 = vmatpush1.bf16.msra.mxu1 %v2480_v7  ;;  %v2485_v41 = vpack.c.bf16 %v2475_v13, %v2473_v28  ;;  %v5993_v4 = vmul.f32 %v5597_v1, %v2733_v52  ;;  %v2484_v6 = vpack.c.bf16 %v2474_v48, %v2472_v58  ;;  %v6003_v11 = vmul.f32 %v5607_v27, %v2741_v32  ;;  %v3315_v48 = vld [vmem:[%s6773_s12 + $0x38] sm:$0xff]  ;;  %v6963_v13 = vld [vmem:[#allocation39_spill] sm:$0xff] }
 0x339   : > { %3328 = vperm.xlu1 %3935, %v3310_v43   ;;  %3115 = vmatprep.subr.bf16.mxu1 %v2483_v53  ;;  %v1620_v26 = vpop.permute.xlu0 %1619  ;;  %v2476_v62 = vmul.f32 %v5760_v45, %v2450_v47  ;;  %v2477_v7 = vmul.f32 %v5763_v30, %v2442_v33  ;;  %v6941_v43 = vld [vmem:[#allocation52_spill] sm:$0xff]  ;;  %v6943_v33 = vld [vmem:[#allocation6_spill] sm:$0xff] }
 0x33a   : > { %1914 = vmatprep.subr.bf16.mxu0 %v1650_v2  ;;  %v2497_v47 = vpack.c.bf16 %v6943_v33, %v6942_v55  ;;  %v6951_v55 = vld [vmem:[#allocation8_spill] sm:$0xff] }
 0x33b   : > { %1915 = vmatpush1.bf16.msra.mxu0 %v1649_v19  ;;  %v2721_v29 = vpop.permute.xlu1 %2720  ;;  %3333 = vperm.xlu0 %3934, %v3311_v8   ;;  %v1624_v8 = vsel %vm672_vm5, %v1612_v23, %v1620_v26 }
 0x33c   : > { %v2732_v46 = vsel %vm740_vm7, %v2705_v5, %v2721_v29  ;;  %v2740_v25 = vsel %vm740_vm7, %v2721_v29, %v2705_v5  ;;  %3116 = vmatpush1.bf16.msra.mxu1 %v2482_v61  ;;  %v2032_v61 = vld [vmem:[%s6768_s7] sm:$0xff] }
 0x33d   : > { %v6006_v31 = vmul.f32 %v5597_v1, %v2732_v46  ;;  %v6009_v52 = vmul.f32 %v5607_v27, %v2740_v25  ;;  %3338 = vperm.xlu1 %3935, %v3312_v59   ;;  %3117 = vmatprep.subr.bf16.mxu1 %v2485_v41  ;;  %v2435_v54 = vpop.permute.xlu0 %2434  ;;  %v3956_v29 = vld [vmem:[%s6772_s11] ss:$20 sps:$4 sm:$0xff]   ;;  %v1647_v41 = vmul.f32 %v5905_v56, %v1624_v8  ;;  %v2035_v8 = vld [vmem:[%s6768_s7 + $0x18] sm:$0xff] }
 0x33e   : > { %v2443_v53 = vsel %vm626_vm4, %v6941_v43, %v2435_v54  ;;  %v2451_v32 = vsel %vm626_vm4, %v2435_v54, %v6941_v43  ;;  %v3959_v25 = vld [vmem:[%s6772_s11 + $0x2c] ss:$20 sps:$4 sm:$0xff]  }
 0x33f   : > { %v2478_v19 = vmul.f32 %v5760_v45, %v2451_v32  ;;  %v2479_v5 = vmul.f32 %v5763_v30, %v2443_v53  ;;  %v1610_v2 = vpop.permute.xlu1 %1609  ;;  %3343 = vperm.xlu0 %3934, %v3313_v17   ;;  %v1628_v30 = vsel %vm672_vm5, %v1620_v26, %v1612_v23  ;;  %v2033_v26 = vld [vmem:[%s6768_s7 + $0x8] sm:$0xff]  ;;  %v2034_v32 = vld [vmem:[%s6768_s7 + $0x10] sm:$0xff] }
 0x340   : > { %3118 = vmatpush1.bf16.msra.mxu1 %v2484_v6  ;;  %v1648_v17 = vmul.f32 %v5908_v51, %v1628_v30  ;;  %v6945_v43 = vld [vmem:[#allocation4_spill] sm:$0xff]  ;;  %v6949_v30 = vld [vmem:[#allocation13_spill] sm:$0xff] }
 0x341   : > { %3348 = vperm.xlu1 %3935, %v3314_v34   ;;  %v6033_v28 = vpop.permute.xlu0 %2710  ;;  %v2487_v58 = vpack.c.bf16 %v2479_v5, %v2477_v7  ;;  %v2486_v45 = vpack.c.bf16 %v2478_v19, %v2476_v62  ;;  %v6944_v7 = vld [vmem:[#allocation3_spill] sm:$0xff]  ;;  %v6946_v5 = vld [vmem:[#allocation9_spill] sm:$0xff] }
 0x342   : > { %v2496_v53 = vpack.c.bf16 %v6945_v43, %v6944_v7  ;;  %v3373_v7 = vld [vmem:[%s6774_s13 + $0x8] sm:$0xff] }
 0x343   : > { %v1618_v59 = vpop.permute.xlu1 %1617  ;;  %3353 = vperm.xlu0 %3934, %v3315_v48   ;;  %3119 = vmatprep.subr.bf16.mxu1 %v2487_v58  ;;  %v3740_v48 = vld [vmem:[%s6762_s1 + $0xa] sm:$0x3] }
 0x344   : > { %v1623_v46 = vsel %vm672_vm5, %v1610_v2, %v1618_v59  ;;  %v1627_v23 = vsel %vm672_vm5, %v1618_v59, %v1610_v2  ;;  %3120 = vmatpush1.bf16.msra.mxu1 %v2486_v45  ;;  %v6948_v45 = vld [vmem:[#allocation18_spill] sm:$0xff]  ;;  %v6950_v59 = vld [vmem:[#allocation7_spill] sm:$0xff]  ;;  %v3962_v43 = vld [vmem:[%s6772_s11 + $0x54] ss:$20 sps:$4 sm:$0xff]  }
 0x345   : > { %v1645_v6 = vmul.f32 %v5905_v56, %v1623_v46  ;;  %v1646_v54 = vmul.f32 %v5908_v51, %v1627_v23  ;;  %2038 = vperm.xlu1 %3935, %v2032_v61   ;;  %3162 = vmatprep.subr.bf16.mxu1 %v2497_v47  ;;  %v6059_v62 = vpop.permute.xlu0 %1659  ;;  %v6947_v56 = vld [vmem:[#allocation10_spill] sm:$0xff]  ;;  %v2545_v61 = vsel %vm672_vm5, %v6949_v30, %v6948_v45  ;;  %v3372_v47 = vld [vmem:[%s6774_s13] sm:$0xff] }
 0x346   : > { %v2499_v2 = vpack.c.bf16 %v6947_v56, %v6946_v5  ;;  %v2498_v33 = vpack.c.bf16 %v6951_v55, %v6950_v59  ;;  %v6091_v46 = vrot.slane %v3740_v48, %v4397_v40  ;;  %v2553_v23 = vsel %vm672_vm5, %v6948_v45, %v6949_v30  ;;  %v6956_v59 = vld [vmem:[#allocation19_spill] sm:$0xff]  ;;  %v6957_v55 = vld [vmem:[#allocation14_spill] sm:$0xff] }
 0x347   : > { %v1651_v34 = vpack.c.bf16 %v1647_v41, %v1645_v6  ;;  %v6066_v19 = vpop.permute.xlu1 %2708  ;;  %2043 = vperm.xlu0 %3934, %v2033_v26   ;;  %3122 = vmatmul.mubr.bf16.vlgmr.msra.gmra.mrb[0].mxu1 %v3956_v29  ;;  %v1652_v51 = vpack.c.bf16 %v1648_v17, %v1646_v54  ;;  %v2501_v29 = vpack.c.bf16 %v5157_v50, %v5147_v9  ;;  %v3741_v26 = vld [vmem:[%s6762_s1 + $0xc] sm:$0x3]  ;;  %v3961_v9 = vld [vmem:[%s6772_s11 + $0x28] ss:$20 sps:$4 sm:$0xff]   ;;  %v6952_v50 = vld [vmem:[#allocation17_spill] sm:$0xff] }
 0x348   : > { %3163 = vmatpush1.bf16.msra.mxu1 %v2496_v53  ;;  %3131 = vmatprep.mubr.bf16.mxu1 %v3959_v25  ;;  %v6088_v41 = vrot.slane %v3740_v48, %v4395_v39  ;;  %v6953_v17 = vld [vmem:[#allocation12_spill] sm:$0xff]  ;;  %v2500_v5 = vpack.c.bf16 %v5003_v42, %v4990_v15  ;;  %v2502_v56 = vpack.c.bf16 %v6927_v0, %v5239_v12  ;;  %v6954_v12 = vld [vmem:[#allocation26_spill] sm:$0xff] }
 0x349   : > { %2048 = vperm.xlu1 %3935, %v2034_v32   ;;  %3164 = vmatprep.subr.bf16.mxu1 %v2499_v2  ;;  %v1668_v58 = vpop.permute.xlu0 %1667  ;;  %v2544_v6 = vsel %vm672_vm5, %v6953_v17, %v6952_v50  ;;  %v2552_v54 = vsel %vm672_vm5, %v6952_v50, %v6953_v17  ;;  %v3718_v32 = vld [vmem:[%s6762_s1 + $0xc] sm:$0x3]  ;;  %v2575_v2 = vmul.f32 %v6091_v46, %v2553_v23  ;;  %v3375_v23 = vld [vmem:[%s6774_s13 + $0x18] sm:$0xff] }
 0x34a   : > { %1916 = vmatprep.subr.bf16.mxu0 %v1652_v51  ;;  %v6120_v53 = vmul.f32 %v6088_v41, %v2545_v61  ;;  %v6133_v51 = vrot.slane %v3741_v26, %v4395_v39  ;;  %v6136_v48 = vrot.slane %v3741_v26, %v4397_v40  ;;  %v2503_v45 = vpack.c.bf16 %v6932_v44, %v6928_v21  ;;  %v6955_v0 = vld [vmem:[#allocation32_spill] sm:$0xff]  ;;  %v6959_v21 = vld [vmem:[#allocation31_spill] sm:$0xff] }
 0x34b   : > { %1917 = vmatpush1.bf16.msra.mxu0 %v1651_v34  ;;  %v6100_v25 = vpop.permute.xlu1 %2724  ;;  %2053 = vperm.xlu0 %3934, %v2035_v8   ;;  %v3374_v8 = vld [vmem:[%s6774_s13 + $0x10] sm:$0xff]  ;;  %v2572_v15 = vmul.f32 %v6088_v41, %v2544_v6  ;;  %v2573_v42 = vmul.f32 %v6091_v46, %v2552_v54  ;;  %v2555_v30 = vsel %vm672_vm5, %v6955_v0, %v6954_v12  ;;  %v6960_v6 = vld [vmem:[#allocation15_spill] sm:$0xff]  ;;  %v6961_v54 = vld [vmem:[#allocation20_spill] sm:$0xff] }
 0x34c   : > { %3165 = vmatpush1.bf16.msra.mxu1 %v2498_v33  ;;  %v6153_v33 = vsel %vm706_vm6, %v6957_v55, %v6956_v59  ;;  %v1674_v50 = vsel %vm706_vm6, %v6059_v62, %v1668_v58  ;;  %v2644_v60 = vsel %vm706_vm6, %v6956_v59, %v6957_v55  ;;  %v2734_v37 = vsel %vm740_vm7, %v6066_v19, %v6100_v25 }
 0x34d   : > { %3382 = vperm.xlu1 %3935, %v3372_v47   ;;  %3166 = vmatprep.subr.bf16.mxu1 %v2501_v29  ;;  %v6125_v34 = vpop.permute.xlu0 %1663  ;;  %v6958_v47 = vld [vmem:[#allocation25_spill] sm:$0xff]  ;;  %v6160_v29 = vrot.slane %v3718_v32, %v4395_v39  ;;  %v2588_v26 = vpack.c.bf16 %v6120_v53, %v2572_v15  ;;  %v3376_v53 = vld [vmem:[%s6774_s13 + $0x20] sm:$0xff]  ;;  %v2547_v15 = vsel %vm672_vm5, %v6954_v12, %v6955_v0 }
 0x34e   : > { %v2554_v44 = vsel %vm672_vm5, %v6959_v21, %v6958_v47 }
 0x34f   : > { %v1658_v61 = vpop.permute.xlu1 %1657  ;;  %3387 = vperm.xlu0 %3934, %v3373_v7   ;;  %3132 = vmatmul.mubr.bf16.gmra.mrb[4].mxu1 %v3961_v9  ;;  %v6167_v9 = vrot.slane %v3718_v32, %v4397_v40  ;;  %v2645_v7 = vsel %vm706_vm6, %v6961_v54, %v6960_v6  ;;  %v2589_v32 = vpack.c.bf16 %v2575_v2, %v2573_v42  ;;  %v3964_v2 = vld [vmem:[%s6772_s11 + $0x50] ss:$20 sps:$4 sm:$0xff]  }
 0x350   : > { %3167 = vmatpush1.bf16.msra.mxu1 %v2500_v5  ;;  %3141 = vmatprep.mubr.bf16.mxu1 %v3962_v43  ;;  %v2579_v5 = vmul.f32 %v6091_v46, %v2555_v30  ;;  %v1678_v43 = vsel %vm706_vm6, %v1668_v58, %v6059_v62  ;;  %v6962_v30 = vld [vmem:[#allocation46_spill] sm:$0xff] }
 0x351   : > { %3392 = vperm.xlu1 %3935, %v3374_v8   ;;  %3168 = vmatprep.subr.bf16.mxu1 %v2503_v45  ;;  %v1672_v17 = vpop.permute.xlu0 %1671  ;;  %v2546_v8 = vsel %vm672_vm5, %v6958_v47, %v6959_v21  ;;  %v2577_v45 = vmul.f32 %v6091_v46, %v2554_v44  ;;  %v2549_v62 = vsel %vm672_vm5, %v6963_v13, %v6962_v30  ;;  %v3377_v21 = vld [vmem:[%s6774_s13 + $0x28] sm:$0xff]  ;;  %v3965_v44 = vld [vmem:[%s6772_s11 + $0x7c] ss:$20 sps:$4 sm:$0xff]  }
 0x352   : > { %v2557_v42 = vsel %vm672_vm5, %v6962_v30, %v6963_v13  ;;  %v1695_v47 = vmul.f32 %v6160_v29, %v1674_v50  ;;  %v2576_v18 = vmul.f32 %v6088_v41, %v2546_v8 }
 0x353   : > { %v1666_v58 = vpop.permute.xlu1 %1665  ;;  %3397 = vperm.xlu0 %3934, %v3375_v23   ;;  %v1696_v23 = vmul.f32 %v6167_v9, %v1678_v43 }
 0x354   : > { %v1673_v12 = vsel %vm706_vm6, %v1658_v61, %v1666_v58  ;;  %v1677_v0 = vsel %vm706_vm6, %v1666_v58, %v1658_v61  ;;  %3169 = vmatpush1.bf16.msra.mxu1 %v2502_v56  ;;  %v2578_v56 = vmul.f32 %v6088_v41, %v2547_v15  ;;  %v6964_v61 = vld [vmem:[#allocation45_spill] sm:$0xff]  ;;  %v6965_v58 = vld [vmem:[#allocation38_spill] sm:$0xff] }
 0x355   : > { %v1693_v13 = vmul.f32 %v6160_v29, %v1673_v12  ;;  %v1694_v50 = vmul.f32 %v6167_v9, %v1677_v0  ;;  %3402 = vperm.xlu1 %3935, %v3376_v53   ;;  %3170 = vmatprep.subr.bf16.mxu1 %v2589_v32  ;;  %v6217_v30 = vpop.permute.xlu0 %1711  ;;  %v2548_v22 = vsel %vm672_vm5, %v6965_v58, %v6964_v61  ;;  %v3378_v12 = vld [vmem:[%s6774_s13 + $0x30] sm:$0xff] }
 0x356   : > { %v2556_v43 = vsel %vm672_vm5, %v6964_v61, %v6965_v58  ;;  %v2591_v53 = vpack.c.bf16 %v2579_v5, %v2577_v45  ;;  %v2583_v32 = vmul.f32 %v6091_v46, %v2557_v42  ;;  %v2582_v61 = vmul.f32 %v6088_v41, %v2549_v62  ;;  %v3379_v5 = vld [vmem:[%s6774_s13 + $0x38] sm:$0xff] }
 0x357   : > { %v1701_v0 = vpack.c.bf16 %v1695_v47, %v1693_v13  ;;  %v1662_v35 = vpop.permute.xlu1 %1661  ;;  %3407 = vperm.xlu0 %3934, %v3377_v21   ;;  %v1702_v15 = vpack.c.bf16 %v1696_v23, %v1694_v50  ;;  %3142 = vmatmul.mubr.bf16.gmra.mrb[8].mxu1 %v3964_v2  ;;  %v2637_v45 = vsel %vm706_vm6, %v6960_v6, %v6961_v54  ;;  %v6966_v6 = vld [vmem:[#allocation53_spill] sm:$0xff]  ;;  %v3967_v47 = vld [vmem:[%s6772_s11 + $0x78] ss:$20 sps:$4 sm:$0xff]  }
 0x358   : > { %3171 = vmatpush1.bf16.msra.mxu1 %v2588_v26  ;;  %3151 = vmatprep.mubr.bf16.mxu1 %v3965_v44  ;;  %v6246_v2 = vmul.f32 %v6136_v48, %v2645_v7  ;;  %v2581_v59 = vmul.f32 %v6091_v46, %v2556_v43  ;;  %v2590_v8 = vpack.c.bf16 %v2578_v56, %v2576_v18  ;;  %v3970_v13 = vld [vmem:[%s6772_s11 + $0xc] ss:$20 sps:$4 sm:$0xff]  }
 0x359   : > { %3412 = vperm.xlu1 %3935, %v3378_v12   ;;  %3172 = vmatprep.subr.bf16.mxu1 %v2591_v53  ;;  %v1720_v55 = vpop.permute.xlu0 %1719  ;;  %v2580_v26 = vmul.f32 %v6088_v41, %v2548_v22  ;;  %v1676_v62 = vsel %vm706_vm6, %v6125_v34, %v1672_v17  ;;  %v1680_v42 = vsel %vm706_vm6, %v1672_v17, %v6125_v34  ;;  %v6967_v34 = vld [vmem:[#allocation28_spill] sm:$0xff]  ;;  %v6968_v17 = vld [vmem:[#allocation34_spill] sm:$0xff] }
 0x35a   : > { %1918 = vmatprep.subr.bf16.mxu0 %v1702_v15  ;;  %v2550_v54 = vsel %vm672_vm5, %v6966_v6, %v5738_v3  ;;  %v2558_v18 = vsel %vm672_vm5, %v5738_v3, %v6966_v6  ;;  %v2593_v7 = vpack.c.bf16 %v2583_v32, %v2581_v59  ;;  %v2647_v21 = vsel %vm706_vm6, %v6968_v17, %v6967_v34  ;;  %v6971_v6 = vld [vmem:[#allocation33_spill] sm:$0xff] }
 0x35b   : > { %1919 = vmatpush1.bf16.msra.mxu0 %v1701_v0  ;;  %v1670_v22 = vpop.permute.xlu1 %1669  ;;  %3417 = vperm.xlu0 %3934, %v3379_v5   ;;  %v2592_v44 = vpack.c.bf16 %v2582_v61, %v2580_v26  ;;  %v1699_v50 = vmul.f32 %v6160_v29, %v1676_v62  ;;  %v1700_v56 = vmul.f32 %v6167_v9, %v1680_v42  ;;  %v6969_v0 = vld [vmem:[#allocation54_spill] sm:$0xff]  ;;  %v6970_v42 = vld [vmem:[#allocation27_spill] sm:$0xff] }
 0x35c   : > { %v1675_v23 = vsel %vm706_vm6, %v1662_v35, %v1670_v22  ;;  %v1679_v3 = vsel %vm706_vm6, %v1670_v22, %v1662_v35  ;;  %3173 = vmatpush1.bf16.msra.mxu1 %v2590_v8  ;;  %v2584_v53 = vmul.f32 %v6088_v41, %v2550_v54  ;;  %v2585_v32 = vmul.f32 %v6091_v46, %v2558_v18  ;;  %v3719_v35 = vld [vmem:[%s6762_s1 + $0xe] sm:$0x3] }
 0x35d   : > { %v1697_v58 = vmul.f32 %v6160_v29, %v1675_v23  ;;  %v1698_v43 = vmul.f32 %v6167_v9, %v1679_v3  ;;  %3174 = vmatprep.subr.bf16.mxu1 %v2593_v7  ;;  %v2543_v12 = vpop.permute.xlu0 %2542  ;;  %v2664_v26 = vmul.f32 %v6133_v51, %v6153_v33  ;;  %v2665_v62 = vmul.f32 %v6136_v48, %v2644_v60 }
 0x35e   : > { %v2551_v15 = vsel %vm672_vm5, %v6969_v0, %v2543_v12  ;;  %v2559_v29 = vsel %vm672_vm5, %v2543_v12, %v6969_v0  ;;  %v2646_v54 = vsel %vm706_vm6, %v6971_v6, %v6970_v42  ;;  %v1738_v18 = vrot.slane %v3719_v35, %v4395_v39  ;;  %v6974_v0 = vld [vmem:[#allocation40_spill] sm:$0xff] }
 0x35f   : > { %v1703_v61 = vpack.c.bf16 %v1699_v50, %v1697_v58  ;;  %v2586_v9 = vmul.f32 %v6088_v41, %v2551_v15  ;;  %v2587_v5 = vmul.f32 %v6091_v46, %v2559_v29  ;;  %v1710_v59 = vpop.permute.xlu1 %1709  ;;  %v1704_v8 = vpack.c.bf16 %v1700_v56, %v1698_v43  ;;  %3152 = vmatmul.mubr.bf16.gmra.mrb[12].mxu1 %v3967_v47  ;;  %v6972_v50 = vld [vmem:[#allocation48_spill] sm:$0xff]  ;;  %v6973_v56 = vld [vmem:[#allocation41_spill] sm:$0xff]  ;;  %v6975_v15 = vld [vmem:[#allocation47_spill] sm:$0xff] }
 0x360   : > { %3175 = vmatpush1.bf16.msra.mxu1 %v2592_v44  ;;  %3194 = vmatprep.mubr.bf16.mxu1 %v3970_v13  ;;  %v1742_v41 = vrot.slane %v3719_v35, %v4397_v40  ;;  %v2666_v47 = vmul.f32 %v6133_v51, %v2637_v45  ;;  %v2671_v33 = vmul.f32 %v6136_v48, %v2647_v21 }
 0x361   : > { %v2594_v46 = vpack.c.bf16 %v2586_v9, %v2584_v53  ;;  %v1716_v22 = vpop.permute.xlu0 %1715  ;;  %1920 = vmatprep.subr.bf16.mxu0 %v1704_v8  ;;  %v2595_v7 = vpack.c.bf16 %v2587_v5, %v2585_v32  ;;  %v1726_v60 = vsel %vm740_vm7, %v6217_v30, %v1720_v55  ;;  %v1730_v44 = vsel %vm740_vm7, %v1720_v55, %v6217_v30 }
 0x362   : > { %1921 = vmatpush1.bf16.msra.mxu0 %v1703_v61  ;;  %v2638_v23 = vsel %vm706_vm6, %v6970_v42, %v6971_v6  ;;  %v2669_v3 = vmul.f32 %v6136_v48, %v2646_v54  ;;  %v2639_v45 = vsel %vm706_vm6, %v6967_v34, %v6968_v17  ;;  %v2681_v13 = vpack.c.bf16 %v6246_v2, %v2665_v62 }
 0x363   : > { %v1718_v21 = vpop.permute.xlu1 %1717  ;;  %3176 = vmatprep.subr.bf16.mxu1 %v2595_v7  ;;  %v2641_v30 = vsel %vm706_vm6, %v6973_v56, %v6972_v50  ;;  %v2649_v55 = vsel %vm706_vm6, %v6972_v50, %v6973_v56  ;;  %v1747_v17 = vmul.f32 %v1738_v18, %v1726_v60  ;;  %v1748_v43 = vmul.f32 %v1742_v41, %v1730_v44  ;;  %v6976_v60 = vld [vmem:[#allocation55_spill] sm:$0xff] }
 0x364   : > { %v1725_v58 = vsel %vm740_vm7, %v1710_v59, %v1718_v21  ;;  %v1729_v34 = vsel %vm740_vm7, %v1718_v21, %v1710_v59  ;;  %3177 = vmatpush1.bf16.msra.mxu1 %v2594_v46  ;;  %v2680_v32 = vpack.c.bf16 %v2666_v47, %v2664_v26  ;;  %v2670_v35 = vmul.f32 %v6133_v51, %v2639_v45 }
 0x365   : > { %v1745_v2 = vmul.f32 %v1738_v18, %v1725_v58  ;;  %v1746_v12 = vmul.f32 %v1742_v41, %v1729_v34  ;;  %3178 = vmatprep.subr.bf16.mxu1 %v2681_v13  ;;  %v1724_v53 = vpop.permute.xlu0 %1723  ;;  %v2648_v29 = vsel %vm706_vm6, %v6975_v15, %v6974_v0  ;;  %v2683_v61 = vpack.c.bf16 %v2671_v33, %v2669_v3 }
 0x366   : > { %v2640_v9 = vsel %vm706_vm6, %v6974_v0, %v6975_v15  ;;  %v2675_v5 = vmul.f32 %v6136_v48, %v2649_v55  ;;  %v2668_v26 = vmul.f32 %v6133_v51, %v2638_v23  ;;  %v2674_v42 = vmul.f32 %v6133_v51, %v2641_v30 }
 0x367   : > { %v1753_v59 = vpack.c.bf16 %v1747_v17, %v1745_v2  ;;  %v1714_v8 = vpop.permute.xlu1 %1713  ;;  %v1754_v62 = vpack.c.bf16 %v1748_v43, %v1746_v12  ;;  %v2673_v6 = vmul.f32 %v6136_v48, %v2648_v29  ;;  %v2672_v7 = vmul.f32 %v6133_v51, %v2640_v9  ;;  %v6977_v17 = vld [vmem:[#allocation56_spill] sm:$0xff] }
 0x368   : > { %3179 = vmatpush1.bf16.msra.mxu1 %v2680_v32  ;;  %v2682_v46 = vpack.c.bf16 %v2670_v35, %v2668_v26  ;;  %v1728_v47 = vsel %vm740_vm7, %v1716_v22, %v1724_v53  ;;  %v1732_v33 = vsel %vm740_vm7, %v1724_v53, %v1716_v22  ;;  %v2642_v44 = vsel %vm706_vm6, %v6976_v60, %v5774_v49  ;;  %v3971_v29 = vld [vmem:[%s6766_s5] ss:$12 sps:$4 sm:$0xff]  }
 0x369   : > { %3180 = vmatprep.subr.bf16.mxu1 %v2683_v61  ;;  %v6347_v54 = vpop.permute.xlu0 %2790  ;;  %1922 = vmatprep.subr.bf16.mxu0 %v1754_v62  ;;  %v2650_v23 = vsel %vm706_vm6, %v5774_v49, %v6976_v60  ;;  %v2685_v45 = vpack.c.bf16 %v2675_v5, %v2673_v6  ;;  %v2684_v21 = vpack.c.bf16 %v2674_v42, %v2672_v7  ;;  %v3977_v61 = vld [vmem:[%s6766_s5 + $0x1c] ss:$12 sps:$4 sm:$0xff]  }
 0x36a   : > { %1923 = vmatpush1.bf16.msra.mxu0 %v1753_v59  ;;  %v1751_v50 = vmul.f32 %v1738_v18, %v1728_v47  ;;  %v1752_v56 = vmul.f32 %v1742_v41, %v1732_v33  ;;  %v2676_v34 = vmul.f32 %v6133_v51, %v2642_v44  ;;  %v2677_v49 = vmul.f32 %v6136_v48, %v2650_v23  ;;  %v3743_v59 = vld [vmem:[%s6762_s1 + $0x10] sm:$0x3] }
 0x36b   : > { %v1722_v3 = vpop.permute.xlu1 %1721  ;;  %v6978_v5 = vpack.c.bf16 %v5636_v16, %v5633_v14  ;;  %v2742_v14 = vsel %vm740_vm7, %v6100_v25, %v6066_v19  ;;  %v2768_v26 = vmul.f32 %v5597_v1, %v2734_v37  ;;  %v6415_v42 = vrot.slane %v3743_v59, %v4395_v39  ;;  %v3720_v23 = vld [vmem:[%s6762_s1 + $0x10] sm:$0x3] }
 0x36c   : > { %v1727_v13 = vsel %vm740_vm7, %v1714_v8, %v1722_v3  ;;  %v1731_v22 = vsel %vm740_vm7, %v1722_v3, %v1714_v8  ;;  %3181 = vmatpush1.bf16.msra.mxu1 %v2682_v46  ;;  %v6979_v8 = vpack.c.bf16 %v5872_v10, %v5881_v24  ;;  %v6980_v24 = vpack.c.bf16 %v5861_v63, %v5878_v20  ;;  %v3979_v37 = vld [vmem:[%s6772_s11 + $0x5c] ss:$20 sps:$4 sm:$0xff]  }
 0x36d   : > { %v1749_v30 = vmul.f32 %v1738_v18, %v1727_v13  ;;  %v1750_v55 = vmul.f32 %v1742_v41, %v1731_v22  ;;  %3182 = vmatprep.subr.bf16.mxu1 %v2685_v45  ;;  %v2635_v58 = vpop.permute.xlu0 %2634  ;;  %v6981_v25 = vpack.c.bf16 %v6003_v11, %v6009_v52  ;;  %v2769_v46 = vmul.f32 %v5607_v27, %v2742_v14 }
 0x36e   : > { %v2643_v43 = vsel %vm706_vm6, %v6977_v17, %v2635_v58  ;;  %v2651_v2 = vsel %vm706_vm6, %v2635_v58, %v6977_v17  ;;  %v6982_v47 = vmov 0   ;;  %v6983_v45 = vpack.c.bf16 %v5993_v4, %v6006_v31  ;;  %v3968_v58 = vld [vmem:[%s6772_s11 + $0x8] ss:$20 sps:$4 sm:$0xff]  }
 0x36f   : > { %v1755_v12 = vpack.c.bf16 %v1751_v50, %v1749_v30  ;;  %v2678_v53 = vmul.f32 %v6133_v51, %v2643_v43  ;;  %v2679_v18 = vmul.f32 %v6136_v48, %v2651_v2  ;;  %v2789_v41 = vpop.permute.xlu1 %2788  ;;  %v1756_v32 = vpack.c.bf16 %v1752_v56, %v1750_v55 }
 0x370   : > { %3183 = vmatpush1.bf16.msra.mxu1 %v2684_v21  ;;  %v6453_v56 = vrot.slane %v3720_v23, %v4395_v39  ;;  %v6459_v4 = vrot.slane %v3720_v23, %v4397_v40 }
 0x371   : > { %v2686_v35 = vpack.c.bf16 %v2678_v53, %v2676_v34  ;;  %v2807_v0 = vpop.permute.xlu0 %2806  ;;  %1924 = vmatprep.subr.bf16.mxu0 %v1756_v32  ;;  %v2687_v15 = vpack.c.bf16 %v2679_v18, %v2677_v49 }
 0x372   : > { %1925 = vmatpush1.bf16.msra.mxu0 %v1755_v12  ;;  %v2829_v19 = vsel %vm774_vm8, %v2807_v0, %v6347_v54 }
 0x373   : > { %v2805_v9 = vpop.permute.xlu1 %2804  ;;  %3184 = vmatprep.subr.bf16.mxu1 %v2687_v15 }
 0x374   : > { %3185 = vmatpush1.bf16.msra.mxu1 %v2686_v35  ;;  %v2828_v10 = vsel %vm774_vm8, %v2805_v9, %v2789_v41  ;;  %v2820_v63 = vsel %vm774_vm8, %v2789_v41, %v2805_v9 }
 0x375   : > { %3186 = vmatprep.subr.bf16.mxu1 %v2773_v57  ;;  %v2795_v51 = vpop.permute.xlu0 %2794  ;;  %1927 = vmatmul.mubr.bf16.vlgmr.msra.gmra.mrb[24].mxu0 %v3971_v29  ;;  %v6406_v57 = vrot.slane %v3743_v59, %v4397_v40  ;;  %v2848_v21 = vmul.f32 %v6415_v42, %v2820_v63  ;;  %v3974_v40 = vld [vmem:[%s6772_s11 + $0x34] ss:$20 sps:$4 sm:$0xff]  }
 0x376   : > { %1936 = vmatprep.mubr.bf16.mxu0 %v3977_v61 }
 0x377   : > { %v2793_v48 = vpop.permute.xlu1 %2792  ;;  %v2849_v11 = vmul.f32 %v6406_v57, %v2828_v10  ;;  %v2851_v3 = vmul.f32 %v6406_v57, %v2829_v19 }
 0x378   : > { %3187 = vmatpush1.bf16.msra.mxu1 %v6978_v5 }
 0x379   : > { %3188 = vmatprep.subr.bf16.mxu1 %v6979_v8  ;;  %v2811_v62 = vpop.permute.xlu0 %2810  ;;  %v6461_v55 = vpack.c.bf16 %v2851_v3, %v2849_v11  ;;  %v3976_v8 = vld [vmem:[%s6772_s11 + $0x30] ss:$20 sps:$4 sm:$0xff]   ;;  %v3982_v11 = vld [vmem:[%s6772_s11 + $0x58] ss:$20 sps:$4 sm:$0xff]  }
 0x37a   : > { %v2823_v43 = vsel %vm774_vm8, %v2795_v51, %v2811_v62 }
 0x37b   : > { %v2809_v16 = vpop.permute.xlu1 %2808  ;;  %v2854_v61 = vmul.f32 %v6415_v42, %v2823_v43 }
 0x37c   : > { %3189 = vmatpush1.bf16.msra.mxu1 %v6980_v24  ;;  %v2830_v52 = vsel %vm774_vm8, %v2809_v16, %v2793_v48  ;;  %v2822_v30 = vsel %vm774_vm8, %v2793_v48, %v2809_v16 }
 0x37d   : > { %3190 = vmatprep.subr.bf16.mxu1 %v6981_v25  ;;  %v2727_v6 = vpop.permute.xlu0 %2726  ;;  %1937 = vmatmul.mubr.bf16.gmra.mrb[28].mxu0 %v3981_v36  ;;  %v2853_v50 = vmul.f32 %v6406_v57, %v2830_v52  ;;  %v2852_v12 = vmul.f32 %v6415_v42, %v2822_v30  ;;  %v3985_v30 = vld [vmem:[%s6766_s5 + $0x8] ss:$12 sps:$4 sm:$0xff]  }
 0x37e   : > { %v2735_v20 = vsel %vm740_vm7, %v6033_v28, %v2727_v6  ;;  %v2743_v7 = vsel %vm740_vm7, %v2727_v6, %v6033_v28  ;;  %1979 = vmatprep.mubr.bf16.mxu0 %v6982_v47  ;;  %v2821_v28 = vsel %vm774_vm8, %v6347_v54, %v2807_v0 }
 0x37f   : > { %v2770_v33 = vmul.f32 %v5597_v1, %v2735_v20  ;;  %v2771_v60 = vmul.f32 %v5607_v27, %v2743_v7  ;;  %v1762_v44 = vpop.permute.xlu1 %1761  ;;  %v2831_v27 = vsel %vm774_vm8, %v2811_v62, %v2795_v51  ;;  %v2850_v54 = vmul.f32 %v6415_v42, %v2821_v28 }
 0x380   : > { %3191 = vmatpush1.bf16.msra.mxu1 %v6983_v45  ;;  %v2855_v34 = vmul.f32 %v6406_v57, %v2831_v27  ;;  %v6493_v5 = vpack.c.bf16 %v2854_v61, %v2852_v12 }
 0x381   : > { %v2778_v1 = vpack.c.bf16 %v2770_v33, %v2768_v26  ;;  %v1764_v13 = vpop.permute.xlu0 %1763  ;;  %v2779_v22 = vpack.c.bf16 %v2771_v60, %v2769_v46  ;;  %v6474_v17 = vpack.c.bf16 %v2850_v54, %v2848_v21  ;;  %v3983_v60 = vld [vmem:[%s6772_s11 + $0x84] ss:$20 sps:$4 sm:$0xff]  }
 0x382   : > { %v6484_v41 = vpack.c.bf16 %v2855_v34, %v2853_v50 }
 0x383   : > { %v1770_v31 = vpop.permute.xlu1 %1769  ;;  %3192 = vmatprep.subr.bf16.mxu1 %v2779_v22 }
 0x384   : > { %v1777_v39 = vsel %vm774_vm8, %v1762_v44, %v1770_v31  ;;  %v1781_v49 = vsel %vm774_vm8, %v1770_v31, %v1762_v44  ;;  %3193 = vmatpush1.bf16.msra.mxu1 %v2778_v1  ;;  %v3986_v31 = vld [vmem:[%s6772_s11 + $0x80] ss:$20 sps:$4 sm:$0xff]  }
 0x385   : > { %3789 = vmatprep.subr.bf16.mxu1 %v6461_v55  ;;  %v1772_v2 = vpop.permute.xlu0 %1771  ;;  %v1797_v32 = vmul.f32 %v6453_v56, %v1777_v39  ;;  %v1798_v35 = vmul.f32 %v6459_v4, %v1781_v49 }
 0x386   : > { %v1778_v53 = vsel %vm774_vm8, %v1764_v13, %v1772_v2  ;;  %v1782_v18 = vsel %vm774_vm8, %v1772_v2, %v1764_v13 }
 0x387   : > { %v1799_v0 = vmul.f32 %v6453_v56, %v1778_v53  ;;  %v1800_v15 = vmul.f32 %v6459_v4, %v1782_v18  ;;  %v2797_v29 = vpop.permute.xlu1 %2796  ;;  %3195 = vmatmul.mubr.bf16.vlgmr.msra.gmra.mrb[0].mxu1 %v3968_v58  ;;  %v3991_v53 = vld [vmem:[%s6772_s11 + $0x88] ss:$20 sps:$4 sm:$0xff]  }
 0x388   : > { %3793 = vmatpush1.bf16.msra.mxu1 %v6474_v17  ;;  %3204 = vmatprep.mubr.bf16.mxu1 %v3974_v40 }
 0x389   : > { %v1805_v9 = vpack.c.bf16 %v1799_v0, %v1797_v32  ;;  %3790 = vmatprep.subr.bf16.mxu1 %v6484_v41  ;;  %v2799_v51 = vpop.permute.xlu0 %2798  ;;  %v1806_v48 = vpack.c.bf16 %v1800_v15, %v1798_v35 }
 0x38b   : > { %v2813_v59 = vpop.permute.xlu1 %2812  ;;  %1947 = vmatprep.subr.bf16.mxu0 %v1806_v48 }
 0x38c   : > { %v2824_v62 = vsel %vm774_vm8, %v2797_v29, %v2813_v59  ;;  %v2832_v36 = vsel %vm774_vm8, %v2813_v59, %v2797_v29  ;;  %1948 = vmatpush1.bf16.msra.mxu0 %v1805_v9  ;;  %3794 = vmatpush1.bf16.msra.mxu1 %v6493_v5 }
 0x38d   : > { %v2815_v14 = vpop.permute.xlu0 %2814  ;;  %v2856_v24 = vmul.f32 %v6415_v42, %v2824_v62  ;;  %v2857_v26 = vmul.f32 %v6406_v57, %v2832_v36 }
 0x38e   : > { %v2825_v16 = vsel %vm774_vm8, %v2799_v51, %v2815_v14  ;;  %v2833_v10 = vsel %vm774_vm8, %v2815_v14, %v2799_v51 }
 0x38f   : > { %v2858_v19 = vmul.f32 %v6415_v42, %v2825_v16  ;;  %v2859_v25 = vmul.f32 %v6406_v57, %v2833_v10  ;;  %v1766_v6 = vpop.permute.xlu1 %1765  ;;  %3205 = vmatmul.mubr.bf16.gmra.mrb[4].mxu1 %v3976_v8 }
 0x390   : > { %3214 = vmatprep.mubr.bf16.mxu1 %v3979_v37 }
 0x391   : > { %v2868_v46 = vpack.c.bf16 %v2858_v19, %v2856_v24  ;;  %v1768_v63 = vpop.permute.xlu0 %1767  ;;  %v2869_v20 = vpack.c.bf16 %v2859_v25, %v2857_v26 }
 0x393   : > { %v1774_v7 = vpop.permute.xlu1 %1773  ;;  %3791 = vmatprep.subr.bf16.mxu1 %v2869_v20 }
 0x394   : > { %v1779_v52 = vsel %vm774_vm8, %v1766_v6, %v1774_v7  ;;  %v1783_v33 = vsel %vm774_vm8, %v1774_v7, %v1766_v6  ;;  %3795 = vmatpush1.bf16.msra.mxu1 %v2868_v46 }
 0x395   : > { %v1776_v44 = vpop.permute.xlu0 %1775  ;;  %v1801_v3 = vmul.f32 %v6453_v56, %v1779_v52  ;;  %v1802_v45 = vmul.f32 %v6459_v4, %v1783_v33 }
 0x396   : > { %v1780_v23 = vsel %vm774_vm8, %v1768_v63, %v1776_v44  ;;  %v1784_v28 = vsel %vm774_vm8, %v1776_v44, %v1768_v63 }
 0x397   : > { %v1803_v21 = vmul.f32 %v6453_v56, %v1780_v23  ;;  %v1804_v27 = vmul.f32 %v6459_v4, %v1784_v28  ;;  %v2801_v1 = vpop.permute.xlu1 %2800  ;;  %3215 = vmatmul.mubr.bf16.gmra.mrb[8].mxu1 %v3982_v11 }
 0x398   : > { %3224 = vmatprep.mubr.bf16.mxu1 %v3983_v60 }
 0x399   : > { %v1807_v13 = vpack.c.bf16 %v1803_v21, %v1801_v3  ;;  %v2803_v22 = vpop.permute.xlu0 %2802  ;;  %v1808_v50 = vpack.c.bf16 %v1804_v27, %v1802_v45 }
 0x39b   : > { %v2817_v54 = vpop.permute.xlu1 %2816  ;;  %1949 = vmatprep.subr.bf16.mxu0 %v1808_v50 }
 0x39c   : > { %v2826_v56 = vsel %vm774_vm8, %v2801_v1, %v2817_v54  ;;  %v2834_v4 = vsel %vm774_vm8, %v2817_v54, %v2801_v1  ;;  %1950 = vmatpush1.bf16.msra.mxu0 %v1807_v13 }
 0x39d   : > { %v2819_v58 = vpop.permute.xlu0 %2818  ;;  %3235 = vmatprep.subr.bf16.mxu0 %v6461_v55  ;;  %v2860_v34 = vmul.f32 %v6415_v42, %v2826_v56  ;;  %v2861_v40 = vmul.f32 %v6406_v57, %v2834_v4 }
 0x39e   : > { %v2827_v39 = vsel %vm774_vm8, %v2803_v22, %v2819_v58  ;;  %v2835_v49 = vsel %vm774_vm8, %v2819_v58, %v2803_v22 }
 0x39f   : > { %v2862_v43 = vmul.f32 %v6415_v42, %v2827_v39  ;;  %v2863_v2 = vmul.f32 %v6406_v57, %v2835_v49  ;;  %3727 = vmatmul.mubr.msk.bf16.vlgmr.msra.gmra.mrb[24].mxu0 %vm1887_vm9, %v3985_v30  ;;  %3225 = vmatmul.mubr.bf16.gmra.mrb[12].mxu1 %v3986_v31  ;;  %v3988_v57 = vld [vmem:[%s6772_s11 + $0x38] ss:$20 sps:$4 sm:$0xff]   ;;  %v3989_v42 = vld [vmem:[%s6772_s11 + $0x10] ss:$20 sps:$4 sm:$0xff]  }
 0x3a0   : > { %3236 = vmatpush1.bf16.msra.mxu0 %v6474_v17  ;;  %1989 = vmatprep.mubr.bf16.mxu0 %v6982_v47  ;;  %v3990_v17 = vld [vmem:[%s6772_s11 + $0x60] ss:$20 sps:$4 sm:$0xff]  }
 0x3a1   : > { %v2870_v55 = vpack.c.bf16 %v2862_v43, %v2860_v34  ;;  %3237 = vmatprep.subr.bf16.mxu0 %v6484_v41  ;;  %v2871_v12 = vpack.c.bf16 %v2863_v2, %v2861_v40  ;;  %3277 = vmatprep.mubr.bf16.mxu1 %v6982_v47 }
 0x3a3   : > { %3792 = vmatprep.subr.bf16.mxu1 %v2871_v12 }
 0x3a4   : > { %3238 = vmatpush1.bf16.msra.mxu0 %v6493_v5  ;;  %3796 = vmatpush1.bf16.msra.mxu1 %v2870_v55 }
 0x3a5   : > { %3239 = vmatprep.subr.bf16.mxu0 %v2869_v20 }
 0x3a7   : > { %3728 = vmatmul.mubr.msk.bf16.gmra.mrb[28].mxu0 %vm1887_vm9, %v3987_v38  ;;  %3765 = vmatmul.mubr.msk.bf16.vlgmr.msra.gmra.mrb[4].mxu1 %vm3076_vm10, %v3988_v57 }
 0x3a8   : > { %3240 = vmatpush1.bf16.msra.mxu0 %v2868_v46  ;;  %3287 = vmatprep.mubr.bf16.mxu1 %v6982_v47 }
 0x3a9   : > { %3241 = vmatprep.subr.bf16.mxu0 %v2871_v12  ;;  %3267 = vmatprep.mubr.bf16.mxu0 %v6982_v47 }
 0x3ac   : > { %3242 = vmatpush1.bf16.msra.mxu0 %v2870_v55  ;;  %v2007_v18 = vpop.permute.xlu1 %2006 }
 0x3ae   : > { %v2012_v41 = vpop.permute.xlu0 %2011 }
 0x3af   : > { %3764 = vmatmul.mubr.msk.bf16.vlgmr.msra.gmra.mrb[32].mxu0 %vm3076_vm10, %v3989_v42  ;;  %3766 = vmatmul.mubr.msk.bf16.gmra.mrb[8].mxu1 %vm3076_vm10, %v3990_v17 }
 0x3b0   : > { %3297 = vmatprep.mubr.bf16.mxu1 %v6982_v47  ;;  %v2017_v32 = vpop.permute.xlu1 %2016 }
 0x3b2   : > { %v2022_v35 = vpop.permute.xlu0 %2021 }
 0x3b4   : > { %v6576_v0 = vpop.permute.xlu1 %3318 }
 0x3b6   : > { %v6578_v15 = vpop.permute.xlu0 %3323 }
 0x3b7   : > { %3767 = vmatmul.mubr.msk.bf16.gmra.mrb[12].mxu1 %vm3076_vm10, %v3991_v53 }
 0x3b8   : > { %v3329_v29 = vpop.permute.xlu1 %3328 }
 0x3ba   : > { %v3334_v61 = vpop.permute.xlu0 %3333 }
 0x3bc   : > { %v6582_v51 = vpop.permute.xlu1 %3338 }
 0x3be   : > { %v6590_v59 = vpop.permute.xlu0 %3343 }
 0x3c0   : > { %v6592_v8 = vpop.permute.xlu1 %3348 }
 0x3c2   : > { %v6594_v62 = vpop.permute.xlu0 %3353 }
 0x3c4   : > { %v2039_v36 = vpop.permute.xlu1 %2038 }
 0x3c6   : > { %v2044_v37 = vpop.permute.xlu0 %2043 }
 0x3c8   : > { %v2049_v14 = vpop.permute.xlu1 %2048 }
 0x3ca   : > { %v2054_v16 = vpop.permute.xlu0 %2053 }
 0x3cc   : > { %v6596_v24 = vpop.permute.xlu1 %3382 }
 0x3ce   : > { %v6608_v23 = vpop.permute.xlu0 %3387 }
 0x3d0   : > { %v3393_v28 = vpop.permute.xlu1 %3392 }
 0x45a   : > { %v6580_v9 = vpop.f32.mrb[0].mxu1 }
 0x45b   : > { %v6584_v47 = vpop.f32.mrb[1].mxu1 }
 0x45c   : > { %v6586_v48 = vpop.f32.mrb[2].mxu1 }
 0x45d   : > { %v6588_v5 = vpop.f32.mrb[3].mxu1 }
 0x472   : > { %v1981_v10 = vpop.f32.mrb[24].mxu0 }
 0x473   : > { %v2024_v26 = vmul.f32 %v2007_v18, %v1981_v10  ;;  %v1983_v19 = vpop.f32.mrb[25].mxu0 }
 0x474   : > { %v2025_v25 = vmul.f32 %v2007_v18, %v1983_v19  ;;  %v1985_v6 = vpop.f32.mrb[26].mxu0  ;;  %v3398_v18 = vpop.permute.xlu0 %3397 }
 0x475   : > { %v6598_v46 = vadd.f32 %v2039_v36, %v2024_v26  ;;  %v2026_v63 = vmul.f32 %v2012_v41, %v1985_v6  ;;  %v1987_v20 = vpop.f32.mrb[27].mxu0 }
 0x476   : > { %v6600_v7 = vadd.f32 %v2039_v36, %v2025_v25  ;;  %v2027_v11 = vmul.f32 %v2012_v41, %v1987_v20 }
 0x477   : > { %v3729_v52 = vmul.f32 -1.442695, %v6598_v46  ;;  %v6603_v33 = vadd.f32 %v2044_v37, %v2026_v63 }
 0x478   : > { %v3730_v60 = vmul.f32 -1.442695, %v6600_v7  ;;  %v6606_v44 = vadd.f32 %v2044_v37, %v2027_v11 }
 0x479   : > { %4088 = vpow2.f32 %v3729_v52  ;;  %v3731_v3 = vmul.f32 -1.442695, %v6603_v33 }
 0x47a   : > { %4090 = vpow2.f32 %v3730_v60  ;;  %v3732_v45 = vmul.f32 -1.442695, %v6606_v44  ;;  %v1991_v21 = vpop.f32.mrb[28].mxu0  ;;  %v3279_v27 = vpop.f32.mrb[4].mxu1 }
 0x47b   : > { %4092 = vpow2.f32 %v3731_v3  ;;  %v2028_v1 = vmul.f32 %v2017_v32, %v1991_v21  ;;  %v3360_v13 = vmul.f32 %v3329_v29, %v3279_v27  ;;  %v1993_v22 = vpop.f32.mrb[29].mxu0  ;;  %v3281_v50 = vpop.f32.mrb[5].mxu1 }
 0x47c   : > { %4094 = vpow2.f32 %v3732_v45  ;;  %v2029_v54 = vmul.f32 %v2017_v32, %v1993_v22  ;;  %v3361_v30 = vmul.f32 %v3329_v29, %v3281_v50  ;;  %v1995_v31 = vpop.f32.mrb[30].mxu0  ;;  %v3283_v56 = vpop.f32.mrb[6].mxu1 }
 0x47d   : > { %v6612_v4 = vadd.f32 %v2049_v14, %v2028_v1  ;;  %v6614_v58 = vadd.f32 %v3393_v28, %v3360_v13  ;;  %v2030_v34 = vmul.f32 %v2022_v35, %v1995_v31  ;;  %v1997_v39 = vpop.f32.mrb[31].mxu0  ;;  %v3285_v49 = vpop.f32.mrb[7].mxu1  ;;  %v3362_v2 = vmul.f32 %v3334_v61, %v3283_v56 }
 0x47e   : > { %v6616_v40 = vadd.f32 %v2049_v14, %v2029_v54  ;;  %v6618_v43 = vadd.f32 %v3393_v28, %v3361_v30  ;;  %v2031_v55 = vmul.f32 %v2022_v35, %v1997_v39  ;;  %v3363_v53 = vmul.f32 %v3334_v61, %v3285_v49  ;;  %v3403_v56 = vpop.permute.xlu1 %3402 }
 0x47f   : > { %v3733_v12 = vmul.f32 -1.442695, %v6612_v4  ;;  %v3772_v38 = vmul.f32 -1.442695, %v6614_v58  ;;  %v6622_v57 = vadd.f32 %v2054_v16, %v2030_v34  ;;  %v6627_v32 = vadd.f32 %v3398_v18, %v3362_v2 }
 0x480   : > { %v3734_v42 = vmul.f32 -1.442695, %v6616_v40  ;;  %v3773_v17 = vmul.f32 -1.442695, %v6618_v43  ;;  %v6629_v29 = vadd.f32 %v2054_v16, %v2031_v55  ;;  %v6632_v61 = vadd.f32 %v3398_v18, %v3363_v53 }
 0x481   : > { %4096 = vpow2.f32 %v3733_v12  ;;  %v3735_v41 = vmul.f32 -1.442695, %v6622_v57  ;;  %v3774_v45 = vmul.f32 -1.442695, %v6627_v32 }
 0x482   : > { %4098 = vpow2.f32 %v3772_v38  ;;  %v3269_v35 = vpop.f32.mrb[32].mxu0  ;;  %v3289_v36 = vpop.f32.mrb[8].mxu1  ;;  %v3736_v21 = vmul.f32 -1.442695, %v6629_v29  ;;  %v3775_v13 = vmul.f32 -1.442695, %v6632_v61 }
 0x483   : > { %v4089_v37 = vpop.eup %4088  ;;  %4100 = vpow2.f32 %v3734_v42  ;;  %v3797_v14 = vadd.f32 %v3269_v35, %v6580_v9  ;;  %v3271_v10 = vpop.f32.mrb[33].mxu0  ;;  %v3364_v1 = vmul.f32 %v6582_v51, %v3289_v36 }
 0x484   : > { %v3291_v26 = vpop.f32.mrb[9].mxu1  ;;  %v4091_v19 = vpop.eup %4090  ;;  %v2088_v25 = vadd.f32 1.0, %v4089_v37  ;;  %4102 = vpow2.f32 %v3773_v17  ;;  %v3798_v6 = vadd.f32 %v3271_v10, %v6584_v47 }
 0x485   : > { %v3273_v63 = vpop.f32.mrb[34].mxu0  ;;  %v3293_v20 = vpop.f32.mrb[10].mxu1  ;;  %v2089_v16 = vadd.f32 1.0, %v4091_v19  ;;  %4104 = vpow2.f32 %v3735_v41  ;;  %v3356_v52 = vmul.f32 %v3797_v14, %v6576_v0  ;;  %v3365_v30 = vmul.f32 %v6582_v51, %v3291_v26 }
 0x486   : > { %v4093_v11 = vpop.eup %4092  ;;  %v3275_v60 = vpop.f32.mrb[35].mxu0  ;;  %4106 = vrcp.f32 %v2088_v25  ;;  %v3357_v22 = vmul.f32 %v3798_v6, %v6576_v0  ;;  %v3799_v50 = vadd.f32 %v3273_v63, %v6586_v48  ;;  %v6649_v2 = vadd.f32 %v3403_v56, %v3364_v1 }
 0x487   : > { %v3295_v28 = vpop.f32.mrb[11].mxu1  ;;  %v4095_v3 = vpop.eup %4094  ;;  %v2090_v9 = vadd.f32 1.0, %v4093_v11  ;;  %4108 = vrcp.f32 %v2089_v16  ;;  %v6639_v47 = vadd.f32 %v6596_v24, %v3356_v52  ;;  %v3800_v31 = vadd.f32 %v3275_v60, %v6588_v5 }
 0x488   : > { %v2091_v27 = vadd.f32 1.0, %v4095_v3  ;;  %v3358_v34 = vmul.f32 %v3799_v50, %v6578_v15  ;;  %v6652_v12 = vadd.f32 %v6596_v24, %v3357_v22  ;;  %v6657_v42 = vadd.f32 %v3403_v56, %v3365_v30  ;;  %v3408_v16 = vpop.permute.xlu0 %3407 }
 0x489   : > { %4110 = vrcp.f32 %v2090_v9  ;;  %v3768_v54 = vmul.f32 -1.442695, %v6639_v47  ;;  %v3776_v36 = vmul.f32 -1.442695, %v6649_v2  ;;  %v3366_v37 = vmul.f32 %v6590_v59, %v3293_v20 }
 0x48a   : > { %4112 = vrcp.f32 %v2091_v27  ;;  %v3299_v39 = vpop.f32.mrb[12].mxu1  ;;  %v6662_v41 = vadd.f32 %v6608_v23, %v3358_v34  ;;  %v3769_v26 = vmul.f32 -1.442695, %v6652_v12  ;;  %v3359_v19 = vmul.f32 %v3800_v31, %v6578_v15  ;;  %v3413_v27 = vpop.permute.xlu1 %3412 }
 0x48b   : > { %4114 = vpow2.f32 %v3774_v45  ;;  %v4097_v49 = vpop.eup %4096  ;;  %v3301_v0 = vpop.f32.mrb[13].mxu1  ;;  %v3777_v63 = vmul.f32 -1.442695, %v6657_v42  ;;  %v3367_v20 = vmul.f32 %v6590_v59, %v3295_v28  ;;  %v3368_v3 = vmul.f32 %v6592_v8, %v3299_v39 }
 0x48c   : > { %4116 = vpow2.f32 %v3736_v21  ;;  %v4099_v55 = vpop.eup %4098  ;;  %v2092_v48 = vadd.f32 1.0, %v4097_v49  ;;  %v6654_v51 = vpop.f32.mrb[14].mxu1  ;;  %v3770_v60 = vmul.f32 -1.442695, %v6662_v41  ;;  %v6681_v9 = vadd.f32 %v3408_v16, %v3366_v37 }
 0x48d   : > { %4118 = vpow2.f32 %v3775_v13  ;;  %v4101_v38 = vpop.eup %4100  ;;  %v3488_v5 = vadd.f32 1.0, %v4099_v55  ;;  %v6659_v17 = vpop.f32.mrb[15].mxu1  ;;  %v3369_v59 = vmul.f32 %v6592_v8, %v3301_v0  ;;  %v6687_v45 = vadd.f32 %v6608_v23, %v3359_v19 }
 0x48e   : > { %4120 = vpow2.f32 %v3768_v54  ;;  %v4103_v53 = vpop.eup %4102  ;;  %v2093_v18 = vadd.f32 1.0, %v4101_v38  ;;  %v6694_v8 = vadd.f32 %v3413_v27, %v3368_v3  ;;  %v3778_v23 = vmul.f32 -1.442695, %v6681_v9 }
 0x48f   : > { %4122 = vrcp.f32 %v2092_v48  ;;  %v4105_v35 = vpop.eup %4104  ;;  %v3489_v24 = vadd.f32 1.0, %v4103_v53  ;;  %v6697_v54 = vadd.f32 %v3413_v27, %v3369_v59  ;;  %v3771_v56 = vmul.f32 -1.442695, %v6687_v45  ;;  %v3418_v53 = vpop.permute.xlu0 %3417 }
 0x490   : > { %4124 = vrcp.f32 %v3488_v5  ;;  %v4107_v14 = vpop.eup %4106  ;;  %v2094_v10 = vadd.f32 1.0, %v4105_v35  ;;  %v3370_v34 = vmul.f32 %v6594_v62, %v6654_v51  ;;  %v3371_v55 = vmul.f32 %v6594_v62, %v6659_v17 }
 0x491   : > { %4126 = vrcp.f32 %v2093_v18  ;;  %v4109_v25 = vpop.eup %4108  ;;  %v2112_v6 = vmul.f32 %v4107_v14, %v6598_v46  ;;  %v3780_v51 = vmul.f32 -1.442695, %v6694_v8 }
 0x492   : > { %4128 = vrcp.f32 %v3489_v24  ;;  %v2113_v52 = vmul.f32 %v4109_v25, %v6600_v7  ;;  %v6718_v17 = vadd.f32 %v3418_v53, %v3370_v34 }
 0x493   : > { %v4111_v11 = vpop.eup %4110  ;;  %4130 = vrcp.f32 %v2094_v10  ;;  %2120 = vst [vmem:[%s6669_s22] sm:$0xff] %v2112_v6 }
 0x494   : > { %v4113_v15 = vpop.eup %4112  ;;  %v2114_v46 = vmul.f32 %v4111_v11, %v6603_v33  ;;  %4132 = vpow2.f32 %v3776_v36  ;;  %2121 = vst [vmem:[%s6669_s22 + $0x8] sm:$0xff] %v2113_v52  ;;  %v6690_v33 = vadd.f32 %v3408_v16, %v3367_v20  ;;  %v6722_v36 = vadd.f32 %v3418_v53, %v3371_v55 }
 0x495   : > { %v4115_v28 = vpop.eup %4114  ;;  %v2115_v7 = vmul.f32 %v4113_v15, %v6606_v44  ;;  %4134 = vpow2.f32 %v3769_v26  ;;  %v3782_v19 = vmul.f32 -1.442695, %v6718_v17 }
 0x496   : > { %v4117_v21 = vpop.eup %4116  ;;  %2122 = vst [vmem:[%s6669_s22 + $0x10] sm:$0xff] %v2114_v46  ;;  %v3490_v1 = vadd.f32 1.0, %v4115_v28  ;;  %4136 = vpow2.f32 %v3777_v63  ;;  %v3779_v0 = vmul.f32 -1.442695, %v6690_v33  ;;  %v3783_v6 = vmul.f32 -1.442695, %v6722_v36 }
 0x497   : > { %v4119_v13 = vpop.eup %4118  ;;  %2123 = vst [vmem:[%s6669_s22 + $0x18] sm:$0xff] %v2115_v7  ;;  %v2095_v22 = vadd.f32 1.0, %v4117_v21  ;;  %4138 = vpow2.f32 %v3770_v60 }
 0x498   : > { %v4121_v50 = vpop.eup %4120  ;;  %4140 = vrcp.f32 %v3490_v1  ;;  %v3491_v44 = vadd.f32 1.0, %v4119_v13 }
 0x499   : > { %v4123_v30 = vpop.eup %4122  ;;  %4142 = vrcp.f32 %v2095_v22  ;;  %v3484_v31 = vadd.f32 1.0, %v4121_v50 }
 0x49a   : > { %v4125_v39 = vpop.eup %4124  ;;  %v2116_v49 = vmul.f32 %v4123_v30, %v6612_v4  ;;  %4144 = vrcp.f32 %v3491_v44  ;;  %v3781_v4 = vmul.f32 -1.442695, %v6697_v54 }
 0x49b   : > { %v4127_v48 = vpop.eup %4126  ;;  %v3536_v38 = vmul.f32 %v4125_v39, %v6614_v58  ;;  %4146 = vrcp.f32 %v3484_v31 }
 0x49c   : > { %v4129_v5 = vpop.eup %4128  ;;  %2124 = vst [vmem:[%s6669_s22 + $0x20] sm:$0xff] %v2116_v49  ;;  %v2117_v18 = vmul.f32 %v4127_v48, %v6616_v40  ;;  %4148 = vpow2.f32 %v3778_v23 }
 0x49d   : > { %v4131_v35 = vpop.eup %4130  ;;  %3552 = vst [vmem:[%s6705_s23 + $0x20] sm:$0xff] %v3536_v38  ;;  %v3537_v62 = vmul.f32 %v4129_v5, %v6618_v43  ;;  %4150 = vpow2.f32 %v3771_v56 }
 0x49e   : > { %v4133_v58 = vpop.eup %4132  ;;  %2125 = vst [vmem:[%s6669_s22 + $0x28] sm:$0xff] %v2117_v18  ;;  %v2118_v24 = vmul.f32 %v4131_v35, %v6622_v57  ;;  %4152 = vpow2.f32 %v3779_v0 }
 0x49f   : > { %v4135_v37 = vpop.eup %4134  ;;  %3553 = vst [vmem:[%s6705_s23 + $0x28] sm:$0xff] %v3537_v62  ;;  %v3492_v40 = vadd.f32 1.0, %v4133_v58  ;;  %4154 = vpow2.f32 %v3780_v51 }
 0x4a0   : > { %v4137_v14 = vpop.eup %4136  ;;  %2126 = vst [vmem:[%s6669_s22 + $0x30] sm:$0xff] %v2118_v24  ;;  %v3485_v10 = vadd.f32 1.0, %v4135_v37  ;;  %4156 = vpow2.f32 %v3781_v4 }
 0x4a1   : > { %v4139_v43 = vpop.eup %4138  ;;  %4158 = vrcp.f32 %v3492_v40  ;;  %v3493_v26 = vadd.f32 1.0, %v4137_v14 }
 0x4a2   : > { %v4141_v25 = vpop.eup %4140  ;;  %4160 = vrcp.f32 %v3485_v10  ;;  %v3486_v57 = vadd.f32 1.0, %v4139_v43 }
 0x4a3   : > { %v4143_v63 = vpop.eup %4142  ;;  %v3538_v20 = vmul.f32 %v4141_v25, %v6627_v32  ;;  %4162 = vrcp.f32 %v3493_v26 }
 0x4a4   : > { %v4145_v11 = vpop.eup %4144  ;;  %v2119_v16 = vmul.f32 %v4143_v63, %v6629_v29  ;;  %4164 = vrcp.f32 %v3486_v57 }
 0x4a5   : > { %v4147_v52 = vpop.eup %4146  ;;  %3554 = vst [vmem:[%s6705_s23 + $0x30] sm:$0xff] %v3538_v20  ;;  %v3539_v60 = vmul.f32 %v4145_v11, %v6632_v61  ;;  %4166 = vpow2.f32 %v3782_v19 }
 0x4a6   : > { %v4149_v3 = vpop.eup %4148  ;;  %2127 = vst [vmem:[%s6669_s22 + $0x38] sm:$0xff] %v2119_v16  ;;  %v3532_v15 = vmul.f32 %v4147_v52, %v6639_v47  ;;  %4168 = vpow2.f32 %v3783_v6 }
 0x4a7   : > { %v4151_v46 = vpop.eup %4150  ;;  %3555 = vst [vmem:[%s6705_s23 + $0x38] sm:$0xff] %v3539_v60  ;;  %v3494_v59 = vadd.f32 1.0, %v4149_v3 }
 0x4a8   : > { %v4153_v32 = vpop.eup %4152  ;;  %3548 = vst [vmem:[%s6705_s23] sm:$0xff] %v3532_v15  ;;  %v3487_v28 = vadd.f32 1.0, %v4151_v46 }
 0x4a9   : > { %v4155_v7 = vpop.eup %4154  ;;  %4170 = vrcp.f32 %v3494_v59  ;;  %v3495_v29 = vadd.f32 1.0, %v4153_v32 }
 0x4aa   : > { %v4157_v21 = vpop.eup %4156  ;;  %4172 = vrcp.f32 %v3487_v28  ;;  %v3496_v61 = vadd.f32 1.0, %v4155_v7 }
 0x4ab   : > { %v4159_v27 = vpop.eup %4158  ;;  %4174 = vrcp.f32 %v3495_v29  ;;  %v3497_v1 = vadd.f32 1.0, %v4157_v21 }
 0x4ac   : > { %v4161_v47 = vpop.eup %4160  ;;  %v3540_v13 = vmul.f32 %v4159_v27, %v6649_v2  ;;  %4176 = vrcp.f32 %v3496_v61 }
 0x4ad   : > { %v4163_v22 = vpop.eup %4162  ;;  %v3533_v50 = vmul.f32 %v4161_v47, %v6652_v12  ;;  %4178 = vrcp.f32 %v3497_v1 }
 0x4ae   : > { %v4165_v44 = vpop.eup %4164  ;;  %3556 = vst [vmem:[%s6705_s23 + $0x40] sm:$0xff] %v3540_v13  ;;  %v3541_v23 = vmul.f32 %v4163_v22, %v6657_v42 }
 0x4af   : > { %v4167_v30 = vpop.eup %4166  ;;  %3549 = vst [vmem:[%s6705_s23 + $0x8] sm:$0xff] %v3533_v50  ;;  %v3534_v31 = vmul.f32 %v4165_v44, %v6662_v41 }
 0x4b0   : > { %v4169_v56 = vpop.eup %4168  ;;  %3557 = vst [vmem:[%s6705_s23 + $0x48] sm:$0xff] %v3541_v23  ;;  %v3498_v34 = vadd.f32 1.0, %v4167_v30 }
 0x4b1   : > { %3550 = vst [vmem:[%s6705_s23 + $0x10] sm:$0xff] %v3534_v31  ;;  %v3499_v2 = vadd.f32 1.0, %v4169_v56 }
 0x4b2   : > { %4180 = vrcp.f32 %v3498_v34 }
 0x4b3   : > { %v4171_v12 = vpop.eup %4170  ;;  %4182 = vrcp.f32 %v3499_v2 }
 0x4b4   : > { %v4173_v39 = vpop.eup %4172  ;;  %v3542_v42 = vmul.f32 %v4171_v12, %v6681_v9 }
 0x4b5   : > { %v4175_v49 = vpop.eup %4174  ;;  %v3535_v0 = vmul.f32 %v4173_v39, %v6687_v45 }
 0x4b6   : > { %v4177_v41 = vpop.eup %4176  ;;  %3558 = vst [vmem:[%s6705_s23 + $0x50] sm:$0xff] %v3542_v42  ;;  %v3543_v55 = vmul.f32 %v4175_v49, %v6690_v33 }
 0x4b7   : > { %v4179_v48 = vpop.eup %4178  ;;  %3551 = vst [vmem:[%s6705_s23 + $0x18] sm:$0xff] %v3535_v0  ;;  %v3544_v38 = vmul.f32 %v4177_v41, %v6694_v8 }
 0x4b8   : > { %3559 = vst [vmem:[%s6705_s23 + $0x58] sm:$0xff] %v3543_v55  ;;  %v3545_v51 = vmul.f32 %v4179_v48, %v6697_v54 }
 0x4b9   : > { %3560 = vst [vmem:[%s6705_s23 + $0x60] sm:$0xff] %v3544_v38 }
 0x4ba   : > { %3561 = vst [vmem:[%s6705_s23 + $0x68] sm:$0xff] %v3545_v51 }
 0x4bc   : > { %v4181_v5 = vpop.eup %4180 }
 0x4bd   : > { %v4183_v9 = vpop.eup %4182  ;;  %v3546_v53 = vmul.f32 %v4181_v5, %v6718_v17 }
 0x4be   : > { %v3547_v45 = vmul.f32 %v4183_v9, %v6722_v36 }
 0x4bf   : > { %3562 = vst [vmem:[%s6705_s23 + $0x70] sm:$0xff] %v3546_v53 }
 0x4c0   : > { %3563 = vst [vmem:[%s6705_s23 + $0x78] sm:$0xff] %v3547_v45 }
 0x4c1 PF: > { %s26_s18 = sadd.s32 1, %s4190_s18  }
 0x4c2   : > { %p23_p4 = scmp.ge.s32.totalorder %s26_s18, 4  }
 0x4c4   :  { %25 = sbr.rel (!%p23_p4) target bundleno = 1 (0x1), region = 125 }

</bundles_post_ra>
